<compile_context>
chip_gen: v7x
topology: tpu7x:2x2x1
jax: 0.10.0
libtpu: 0.0.40
codegen_flags: <defaults>
</compile_context>

<pallas_src>
import functools

import jax
import jax.numpy as jnp
from jax.experimental import pallas as pl
from jax.experimental.pallas import tpu as pltpu

NEG_SLOPE = 0.01                 # F.leaky_relu default negative slope
COMPUTE_DTYPE = jnp.bfloat16     # MXU input dtype (f32 accumulate)
TM_MAX = 8192                    # max columns (frames * output positions) per grid step
_LANE = 128


def _round_up(x, n):
    return ((x + n - 1) // n) * n


def _leaky(x):
    return jnp.where(x >= 0.0, x, NEG_SLOPE * x)


# ----------------------------------------------------------------------------
# Per-generation VMEM budget & M-tile selection
# ----------------------------------------------------------------------------
_VMEM_LIMIT_CACHE = None


def _vmem_limit_bytes():
    """Scoped-VMEM budget derived from the chip (review: don't hard-code 32 MiB)."""
    global _VMEM_LIMIT_CACHE
    if _VMEM_LIMIT_CACHE is None:
        cap = 0
        try:
            info_fn = getattr(pltpu, "get_tpu_info", None)
            if info_fn is not None:
                cap = int(getattr(info_fn(), "vmem_capacity_bytes", 0) or 0)
        except Exception:
            cap = 0
        if not cap:
            cap = 64 * 1024 * 1024          # conservative: v7x physical VMEM per TC
        # never request more than half physical; 32 MiB floor, 64 MiB cap
        _VMEM_LIMIT_CACHE = max(32 * 1024 * 1024, min(cap // 2, 64 * 1024 * 1024))
    return _VMEM_LIMIT_CACHE


def _choose_tile(m, k, vmem_limit):
    """Tile width along the lane-dense M axis.

    * as large as possible (amortizes ~0.35 µs per-grid-step overhead, esp. on v7x),
    * capped so the double-buffered bf16 (k, tm) input tile uses <= half the VMEM budget,
    * >= 2 grid steps whenever m allows it (keeps both v7x TensorCores busy).
    Caller guarantees m >= 128.
    """
    budget = vmem_limit // 2
    tm_cap = min(TM_MAX, max(_LANE, ((budget // (4 * k)) // _LANE) * _LANE))
    nblocks = max(2, pl.cdiv(m, tm_cap))
    tm = min(tm_cap, _round_up(pl.cdiv(m, nblocks), _LANE))
    return tm


# ----------------------------------------------------------------------------
# Kernel 1: transposed GEMM + bias (+ leaky-relu):  out^T = act(W @ x^T + b)
# ----------------------------------------------------------------------------
def _tgemm_bias_act_kernel(w_ref, b_ref, x_ref, o_ref, *, apply_leaky):
    acc = jnp.dot(w_ref[...], x_ref[...], preferred_element_type=jnp.float32)
    acc = acc + b_ref[...]                 # (Cout, 1) broadcast along lanes, f32
    if apply_leaky:
        acc = _leaky(acc)
    o_ref[...] = acc.astype(o_ref.dtype)   # single cast at the store


def tgemm_bias_act(w, b, xt, *, apply_leaky=True, out_dtype=COMPUTE_DTYPE):
    """w: (Cout, K), b: (Cout,), xt: (K, M)  ->  (Cout, M) = act(w @ xt + b)."""
    cout, k = w.shape
    k2, m = xt.shape
    assert k == k2
    m_valid = m
    if m < _LANE:                          # tiny-M fallback only; normal path is un-padded
        xt = jnp.pad(xt, ((0, 0), (0, _LANE - m)))
        m = _LANE
    vmem_limit = _vmem_limit_bytes()
    tm = _choose_tile(m, k, vmem_limit)
    grid = (pl.cdiv(m, tm),)               # ragged tail block handled by Pallas masking

    w = w.astype(COMPUTE_DTYPE)
    xt = xt.astype(COMPUTE_DTYPE)
    b2 = b.reshape(cout, 1).astype(jnp.float32)

    out_bytes = jnp.dtype(out_dtype).itemsize
    cost = pl.CostEstimate(
        flops=2 * cout * k * m_valid,
        transcendentals=0,
        bytes_accessed=(k * m_valid * 2 + cout * k * 2 + cout * 4
                        + cout * m_valid * out_bytes),
    )
    kernel = functools.partial(_tgemm_bias_act_kernel, apply_leaky=apply_leaky)
    out = pl.pallas_call(
        kernel,
        out_shape=jax.ShapeDtypeStruct((cout, m), out_dtype),
        grid=grid,
        in_specs=[
            pl.BlockSpec((cout, k), lambda i: (0, 0)),   # weights: VMEM-resident
            pl.BlockSpec((cout, 1), lambda i: (0, 0)),   # bias: VMEM-resident
            pl.BlockSpec((k, tm), lambda i: (0, i)),     # streamed, double-buffered
        ],
        out_specs=pl.BlockSpec((cout, tm), lambda i: (0, i)),
        compiler_params=pltpu.CompilerParams(
            dimension_semantics=("parallel",),
            vmem_limit_bytes=vmem_limit),
        cost_estimate=cost,
    )(w, b2, xt)
    return out[:, :m_valid] if m_valid != m else out


# ----------------------------------------------------------------------------
# Kernel 2: fused fc1 + fc2 head:  r^T = W2 @ leaky(W1 @ x^T + b1) + b2
# ----------------------------------------------------------------------------
def _fc_head_kernel(w1_ref, b1_ref, w2_ref, b2_ref, x_ref, o_ref):
    h = jnp.dot(w1_ref[...], x_ref[...], preferred_element_type=jnp.float32)
    h = _leaky(h + b1_ref[...])                          # (64, TM) stays in VMEM
    r = jnp.dot(w2_ref[...], h.astype(w2_ref.dtype),
                preferred_element_type=jnp.float32)
    o_ref[...] = r + b2_ref[...]


def fc_head(w1, b1, w2, b2, xt):
    """w1: (H, K), w2: (1, H); xt: (K, F) -> per-frame rewards (1, F) f32."""
    hdim, k = w1.shape
    k2, f = xt.shape
    assert k == k2 and w2.shape == (1, hdim)
    f_valid = f
    if f < _LANE:
        xt = jnp.pad(xt, ((0, 0), (0, _LANE - f)))
        f = _LANE
    vmem_limit = _vmem_limit_bytes()
    tm = _choose_tile(f, k, vmem_limit)
    grid = (pl.cdiv(f, tm),)

    w1c = w1.astype(COMPUTE_DTYPE)
    w2c = w2.astype(COMPUTE_DTYPE)
    xt = xt.astype(COMPUTE_DTYPE)
    b1c = b1.reshape(hdim, 1).astype(jnp.float32)
    b2c = b2.reshape(1, 1).astype(jnp.float32)

    cost = pl.CostEstimate(                               # fixed: f32 b1, include w2/b2/out
        flops=2 * hdim * k * f_valid + 2 * hdim * f_valid,
        transcendentals=0,
        bytes_accessed=(k * f_valid * 2 + hdim * k * 2 + hdim * 4
                        + hdim * 2 + 4 + f_valid * 4),
    )
    out = pl.pallas_call(
        _fc_head_kernel,
        out_shape=jax.ShapeDtypeStruct((1, f), jnp.float32),
        grid=grid,
        in_specs=[
            pl.BlockSpec((hdim, k), lambda i: (0, 0)),
            pl.BlockSpec((hdim, 1), lambda i: (0, 0)),
            pl.BlockSpec((1, hdim), lambda i: (0, 0)),
            pl.BlockSpec((1, 1), lambda i: (0, 0)),
            pl.BlockSpec((k, tm), lambda i: (0, i)),
        ],
        out_specs=pl.BlockSpec((1, tm), lambda i: (0, i)),
        compiler_params=pltpu.CompilerParams(
            dimension_semantics=("parallel",),
            vmem_limit_bytes=vmem_limit),
        cost_estimate=cost,
    )(w1c, b1c, w2c, b2c, xt)
    return out[:, :f_valid] if f_valid != f else out


# ----------------------------------------------------------------------------
# Conv layers via transposed im2col (plain-JAX glue) + Pallas transposed GEMM
# ----------------------------------------------------------------------------
def _im2col_t(a, kh, kw, stride):
    """a: (C, F, H, W) channel-major -> patches^T (C*kh*kw, F*OH*OW).  VALID padding."""
    c, f, h, w = a.shape
    oh = (h - kh) // stride + 1
    ow = (w - kw) // stride + 1
    cols = []
    for ki in range(kh):
        for kj in range(kw):
            cols.append(a[:, :, ki:ki + stride * oh:stride, kj:kj + stride * ow:stride])
    p = jnp.stack(cols, axis=1)                          # (C, kh*kw, F, OH, OW)
    return p.reshape(c * kh * kw, f * oh * ow), oh, ow


def conv2d_t_leaky(a, w, b, stride):
    """a: (Cin, F, H, W); w: (Cout, Cin, KH, KW) PyTorch OIHW; VALID conv.
    Returns channel-major activations (Cout, F, OH, OW) in bf16."""
    cout, cin, kh, kw = w.shape
    f = a.shape[1]
    patches_t, oh, ow = _im2col_t(a, kh, kw, stride)     # (Cin*KH*KW, F*OH*OW) bf16
    w_mat = w.reshape(cout, cin * kh * kw)               # (ci, ki, kj) order matches patches
    out_t = tgemm_bias_act(w_mat, b, patches_t, apply_leaky=True)
    return out_t.reshape(cout, f, oh, ow)


# ----------------------------------------------------------------------------
# Net forward (Pallas-backed)
# ----------------------------------------------------------------------------
def per_frame_rewards(params, frames):
    """frames: (F, 84, 84, 4) NHWC f32 -> per-frame reward (F,) f32."""
    f = frames.shape[0]
    # TODO(synk): fold this cast+transpose and the im2col above into a single fused
    # per-frame-tile Pallas kernel (raw frames in, rewards out, activations VMEM-resident).
    a = jnp.transpose(frames.astype(COMPUTE_DTYPE), (3, 0, 1, 2))         # (4, F, 84, 84)
    a = conv2d_t_leaky(a, params["conv1_w"], params["conv1_b"], 3)        # (16, F, 26, 26)
    a = conv2d_t_leaky(a, params["conv2_w"], params["conv2_b"], 2)        # (16, F, 11, 11)
    a = conv2d_t_leaky(a, params["conv3_w"], params["conv3_b"], 1)        # (16, F,  9,  9)
    a = conv2d_t_leaky(a, params["conv4_w"], params["conv4_b"], 1)        # (16, F,  7,  7)
    # PyTorch view(-1, 784) flattens NCHW (c, h, w)-major: build x^T of shape (784, F).
    xt = jnp.transpose(a, (0, 2, 3, 1)).reshape(16 * 7 * 7, f)
    r = fc_head(params["fc1_w"], params["fc1_b"],
                params["fc2_w"], params["fc2_b"], xt)                     # (1, F) f32
    return r[0]


def cum_return(params, traj):
    """traj: (T, N, 84, 84, 4) -> sum over T of per-frame reward, (N, 1)."""
    t, n = traj.shape[:2]
    r = per_frame_rewards(params, traj.reshape((t * n,) + traj.shape[2:]))
    return jnp.sum(r.reshape(t, n), axis=0)[:, None]


@jax.jit
def net_forward(params, traj_i, traj_j):
    """Both trajectories run through ONE pipeline (amortizes per-call overhead, doubles M)."""
    ti, ni = traj_i.shape[:2]
    tj, nj = traj_j.shape[:2]
    fi, fj = ti * ni, tj * nj
    frames = jnp.concatenate(
        [traj_i.reshape((fi,) + traj_i.shape[2:]),
         traj_j.reshape((fj,) + traj_j.shape[2:])], axis=0)
    r = per_frame_rewards(params, frames)                                 # (fi + fj,)
    cum_i = jnp.sum(r[:fi].reshape(ti, ni), axis=0)[:, None]
    cum_j = jnp.sum(r[fi:].reshape(tj, nj), axis=0)[:, None]
    return cum_i, cum_j


# ----------------------------------------------------------------------------
# Deterministic parameter init (PyTorch-like uniform(-1/sqrt(fan_in), 1/sqrt(fan_in)))
# ----------------------------------------------------------------------------
def init_params(key):
    def uni(k, shape, fan_in):
        bound = 1.0 / jnp.sqrt(jnp.float32(fan_in))
        return jax.random.uniform(k, shape, jnp.float32, -bound, bound)

    ks = jax.random.split(key, 12)
    p = {}
    p["conv1_w"] = uni(ks[0], (16, 4, 7, 7), 4 * 7 * 7)
    p["conv1_b"] = uni(ks[1], (16,), 4 * 7 * 7)
    p["conv2_w"] = uni(ks[2], (16, 16, 5, 5), 16 * 5 * 5)
    p["conv2_b"] = uni(ks[3], (16,), 16 * 5 * 5)
    p["conv3_w"] = uni(ks[4], (16, 16, 3, 3), 16 * 3 * 3)
    p["conv3_b"] = uni(ks[5], (16,), 16 * 3 * 3)
    p["conv4_w"] = uni(ks[6], (16, 16, 3, 3), 16 * 3 * 3)
    p["conv4_b"] = uni(ks[7], (16,), 16 * 3 * 3)
    p["fc1_w"] = uni(ks[8], (64, 784), 784)    # PyTorch Linear: (out, in)
    p["fc1_b"] = uni(ks[9], (64,), 784)
    p["fc2_w"] = uni(ks[10], (1, 64), 64)
    p["fc2_b"] = uni(ks[11], (1,), 64)
    return p


# ----------------------------------------------------------------------------
# Pure-JAX f32 reference (lax.conv, NCHW like PyTorch) for the sanity check
# ----------------------------------------------------------------------------
def ref_cum_return(params, traj):
    t, n, h, w, c = traj.shape
    x = jnp.transpose(traj.reshape(t * n, h, w, c), (0, 3, 1, 2))  # NCHW

    def conv(x, w_, b, stride):
        y = jax.lax.conv_general_dilated(
            x, w_, window_strides=(stride, stride), padding="VALID",
            dimension_numbers=("NCHW", "OIHW", "NCHW"),
            precision=jax.lax.Precision.HIGHEST)
        y = y + b.reshape(1, -1, 1, 1)
        return jnp.where(y >= 0.0, y, NEG_SLOPE * y)

    x = conv(x, params["conv1_w"], params["conv1_b"], 3)
    x = conv(x, params["conv2_w"], params["conv2_b"], 2)
    x = conv(x, params["conv3_w"], params["conv3_b"], 1)
    x = conv(x, params["conv4_w"], params["conv4_b"], 1)
    x = x.reshape(t * n, 784)
    x = jnp.dot(x, params["fc1_w"].T, precision=jax.lax.Precision.HIGHEST) + params["fc1_b"]
    x = jnp.where(x >= 0.0, x, NEG_SLOPE * x)
    r = jnp.dot(x, params["fc2_w"].T, precision=jax.lax.Precision.HIGHEST) + params["fc2_b"]
    return jnp.sum(r.reshape(t, n, 1), axis=0)


if __name__ == "__main__":
    key = jax.random.PRNGKey(0)
    kp, ki, kj = jax.random.split(key, 3)
    params = init_params(kp)

    T, N, H, W, C = 2, 2, 84, 84, 4   # 84x84 required so the conv stack flattens to 784
    traj_i = jax.random.normal(ki, (T, N, H, W, C), jnp.float32)
    traj_j = jax.random.normal(kj, (T, N, H, W, C), jnp.float32)

    cum_r_i, cum_r_j = net_forward(params, traj_i, traj_j)
    cum_r_i = jax.block_until_ready(cum_r_i)
    cum_r_j = jax.block_until_ready(cum_r_j)

    assert cum_r_i.shape == (N, 1) and cum_r_j.shape == (N, 1)
    assert bool(jnp.all(jnp.isfinite(cum_r_i))) and bool(jnp.all(jnp.isfinite(cum_r_j)))

    # bf16 MXU inputs / bf16 inter-layer activations with f32 accumulation vs an f32
    # HIGHEST-precision reference -> slightly loose tolerance.
    ref_i = ref_cum_return(params, traj_i)
    ref_j = ref_cum_return(params, traj_j)
    assert bool(jnp.allclose(cum_r_i, ref_i, rtol=2.5e-2, atol=2.5e-2)), (cum_r_i, ref_i)
    assert bool(jnp.allclose(cum_r_j, ref_j, rtol=2.5e-2, atol=2.5e-2)), (cum_r_j, ref_j)

    print("KERNEL_OK")
</pallas_src>

<mosaic_0001>
module attributes {stable_mosaic.version = 11 : i64} {
  func.func @_tgemm_bias_act_kernel(%arg0: i32, %arg1: memref<16x196xbf16, #tpu.memory_space<vmem>>, %arg2: memref<16x1xf32, #tpu.memory_space<vmem>>, %arg3: memref<196x2816xbf16, #tpu.memory_space<vmem>>, %arg4: memref<16x2816xbf16, #tpu.memory_space<vmem>>) attributes {dimension_semantics = [#tpu.dimension_semantics<parallel>], iteration_bounds = array<i64: 2>, scalar_prefetch = 0 : i64, scratch_operands = 0 : i64, tpu.core_type = #tpu.core_type<tc>, window_params = [{pipeline_mode = #tpu.pipeline_mode<synchronous>, transform_indices = @transform_0, window_bounds = array<i64: 16, 196>}, {pipeline_mode = #tpu.pipeline_mode<synchronous>, transform_indices = @transform_1, window_bounds = array<i64: 16, 1>}, {transform_indices = @transform_2, window_bounds = array<i64: 196, 2816>}, {transform_indices = @transform_3, window_bounds = array<i64: 16, 2816>}]} {
    %c0 = arith.constant 0 : index
    %c0_0 = arith.constant 0 : index
    %0 = vector.load %arg1[%c0, %c0_0] : memref<16x196xbf16, #tpu.memory_space<vmem>>, vector<16x196xbf16>
    %c0_1 = arith.constant 0 : index
    %c0_2 = arith.constant 0 : index
    %1 = vector.load %arg3[%c0_1, %c0_2] : memref<196x2816xbf16, #tpu.memory_space<vmem>>, vector<196x2816xbf16>
    %cst = arith.constant dense<0.000000e+00> : vector<16x2816xf32>
    %2 = tpu.matmul %0, %1, %cst {dimension_numbers = #tpu.dot_dimension_numbers<[1], [0], [0], [1], [0, 0, 1, 1], [], []>} : vector<16x196xbf16>, vector<196x2816xbf16>, vector<16x2816xf32> -> vector<16x2816xf32>
    %c0_3 = arith.constant 0 : index
    %c0_4 = arith.constant 0 : index
    %3 = vector.load %arg2[%c0_3, %c0_4] : memref<16x1xf32, #tpu.memory_space<vmem>>, vector<16x1xf32>
    %4 = vector.broadcast %3 : vector<16x1xf32> to vector<16x2816xf32>
    %5 = arith.addf %2, %4 : vector<16x2816xf32>
    %cst_5 = arith.constant 0.000000e+00 : f32
    %6 = vector.broadcast %cst_5 : f32 to vector<16x2816xf32>
    %7 = arith.cmpf oge, %5, %6 : vector<16x2816xf32>
    %cst_6 = arith.constant 0.00999999977 : f32
    %8 = vector.broadcast %cst_6 : f32 to vector<16x2816xf32>
    %9 = arith.mulf %8, %5 : vector<16x2816xf32>
    %10 = arith.select %7, %5, %9 : vector<16x2816xi1>, vector<16x2816xf32>
    %11 = arith.truncf %10 : vector<16x2816xf32> to vector<16x2816xbf16>
    %c0_7 = arith.constant 0 : index
    %c0_8 = arith.constant 0 : index
    %12 = vector.load %arg4[%c0_7, %c0_8] : memref<16x2816xbf16, #tpu.memory_space<vmem>>, vector<16x2816xbf16>
    tpu.vector_store %arg4[%c0_7, %c0_8], %11 {strides = array<i32>} : memref<16x2816xbf16, #tpu.memory_space<vmem>>, vector<16x2816xbf16>,
    return
  }
  func.func @transform_0(%arg0: i32) -> (i32, i32) {
    %c0_i32 = arith.constant 0 : i32
    %c0_i32_0 = arith.constant 0 : i32
    %c0_i32_1 = arith.constant 0 : i32
    return %c0_i32, %c0_i32_0 : i32, i32
  }
  func.func @transform_1(%arg0: i32) -> (i32, i32) {
    %c0_i32 = arith.constant 0 : i32
    %c0_i32_0 = arith.constant 0 : i32
    %c0_i32_1 = arith.constant 0 : i32
    return %c0_i32, %c0_i32_0 : i32, i32
  }
  func.func @transform_2(%arg0: i32) -> (i32, i32) {
    %c0_i32 = arith.constant 0 : i32
    %c0_i32_0 = arith.constant 0 : i32
    return %c0_i32, %arg0 : i32, i32
  }
  func.func @transform_3(%arg0: i32) -> (i32, i32) {
    %c0_i32 = arith.constant 0 : i32
    %c0_i32_0 = arith.constant 0 : i32
    return %c0_i32, %arg0 : i32, i32
  }
}

module attributes {stable_mosaic.version = 11 : i64} {
  func.func @_tgemm_bias_act_kernel(%arg0: i32, %arg1: memref<16x400xbf16, #tpu.memory_space<vmem>>, %arg2: memref<16x1xf32, #tpu.memory_space<vmem>>, %arg3: memref<400x512xbf16, #tpu.memory_space<vmem>>, %arg4: memref<16x512xbf16, #tpu.memory_space<vmem>>) attributes {dimension_semantics = [#tpu.dimension_semantics<parallel>], iteration_bounds = array<i64: 2>, scalar_prefetch = 0 : i64, scratch_operands = 0 : i64, tpu.core_type = #tpu.core_type<tc>, window_params = [{pipeline_mode = #tpu.pipeline_mode<synchronous>, transform_indices = @transform_0, window_bounds = array<i64: 16, 400>}, {pipeline_mode = #tpu.pipeline_mode<synchronous>, transform_indices = @transform_1, window_bounds = array<i64: 16, 1>}, {transform_indices = @transform_2, window_bounds = array<i64: 400, 512>}, {transform_indices = @transform_3, window_bounds = array<i64: 16, 512>}]} {
    %c0 = arith.constant 0 : index
    %c0_0 = arith.constant 0 : index
    %0 = vector.load %arg1[%c0, %c0_0] : memref<16x400xbf16, #tpu.memory_space<vmem>>, vector<16x400xbf16>
    %c0_1 = arith.constant 0 : index
    %c0_2 = arith.constant 0 : index
    %1 = vector.load %arg3[%c0_1, %c0_2] : memref<400x512xbf16, #tpu.memory_space<vmem>>, vector<400x512xbf16>
    %cst = arith.constant dense<0.000000e+00> : vector<16x512xf32>
    %2 = tpu.matmul %0, %1, %cst {dimension_numbers = #tpu.dot_dimension_numbers<[1], [0], [0], [1], [0, 0, 1, 1], [], []>} : vector<16x400xbf16>, vector<400x512xbf16>, vector<16x512xf32> -> vector<16x512xf32>
    %c0_3 = arith.constant 0 : index
    %c0_4 = arith.constant 0 : index
    %3 = vector.load %arg2[%c0_3, %c0_4] : memref<16x1xf32, #tpu.memory_space<vmem>>, vector<16x1xf32>
    %4 = vector.broadcast %3 : vector<16x1xf32> to vector<16x512xf32>
    %5 = arith.addf %2, %4 : vector<16x512xf32>
    %cst_5 = arith.constant 0.000000e+00 : f32
    %6 = vector.broadcast %cst_5 : f32 to vector<16x512xf32>
    %7 = arith.cmpf oge, %5, %6 : vector<16x512xf32>
    %cst_6 = arith.constant 0.00999999977 : f32
    %8 = vector.broadcast %cst_6 : f32 to vector<16x512xf32>
    %9 = arith.mulf %8, %5 : vector<16x512xf32>
    %10 = arith.select %7, %5, %9 : vector<16x512xi1>, vector<16x512xf32>
    %11 = arith.truncf %10 : vector<16x512xf32> to vector<16x512xbf16>
    %c0_7 = arith.constant 0 : index
    %c0_8 = arith.constant 0 : index
    %12 = vector.load %arg4[%c0_7, %c0_8] : memref<16x512xbf16, #tpu.memory_space<vmem>>, vector<16x512xbf16>
    tpu.vector_store %arg4[%c0_7, %c0_8], %11 {strides = array<i32>} : memref<16x512xbf16, #tpu.memory_space<vmem>>, vector<16x512xbf16>,
    return
  }
  func.func @transform_0(%arg0: i32) -> (i32, i32) {
    %c0_i32 = arith.constant 0 : i32
    %c0_i32_0 = arith.constant 0 : i32
    %c0_i32_1 = arith.constant 0 : i32
    return %c0_i32, %c0_i32_0 : i32, i32
  }
  func.func @transform_1(%arg0: i32) -> (i32, i32) {
    %c0_i32 = arith.constant 0 : i32
    %c0_i32_0 = arith.constant 0 : i32
    %c0_i32_1 = arith.constant 0 : i32
    return %c0_i32, %c0_i32_0 : i32, i32
  }
  func.func @transform_2(%arg0: i32) -> (i32, i32) {
    %c0_i32 = arith.constant 0 : i32
    %c0_i32_0 = arith.constant 0 : i32
    return %c0_i32, %arg0 : i32, i32
  }
  func.func @transform_3(%arg0: i32) -> (i32, i32) {
    %c0_i32 = arith.constant 0 : i32
    %c0_i32_0 = arith.constant 0 : i32
    return %c0_i32, %arg0 : i32, i32
  }
}

module attributes {stable_mosaic.version = 11 : i64} {
  func.func @_tgemm_bias_act_kernel(%arg0: i32, %arg1: memref<16x144xbf16, #tpu.memory_space<vmem>>, %arg2: memref<16x1xf32, #tpu.memory_space<vmem>>, %arg3: memref<144x384xbf16, #tpu.memory_space<vmem>>, %arg4: memref<16x384xbf16, #tpu.memory_space<vmem>>) attributes {dimension_semantics = [#tpu.dimension_semantics<parallel>], iteration_bounds = array<i64: 2>, scalar_prefetch = 0 : i64, scratch_operands = 0 : i64, tpu.core_type = #tpu.core_type<tc>, window_params = [{pipeline_mode = #tpu.pipeline_mode<synchronous>, transform_indices = @transform_0, window_bounds = array<i64: 16, 144>}, {pipeline_mode = #tpu.pipeline_mode<synchronous>, transform_indices = @transform_1, window_bounds = array<i64: 16, 1>}, {transform_indices = @transform_2, window_bounds = array<i64: 144, 384>}, {transform_indices = @transform_3, window_bounds = array<i64: 16, 384>}]} {
    %c0 = arith.constant 0 : index
    %c0_0 = arith.constant 0 : index
    %0 = vector.load %arg1[%c0, %c0_0] : memref<16x144xbf16, #tpu.memory_space<vmem>>, vector<16x144xbf16>
    %c0_1 = arith.constant 0 : index
    %c0_2 = arith.constant 0 : index
    %1 = vector.load %arg3[%c0_1, %c0_2] : memref<144x384xbf16, #tpu.memory_space<vmem>>, vector<144x384xbf16>
    %cst = arith.constant dense<0.000000e+00> : vector<16x384xf32>
    %2 = tpu.matmul %0, %1, %cst {dimension_numbers = #tpu.dot_dimension_numbers<[1], [0], [0], [1], [0, 0, 1, 1], [], []>} : vector<16x144xbf16>, vector<144x384xbf16>, vector<16x384xf32> -> vector<16x384xf32>
    %c0_3 = arith.constant 0 : index
    %c0_4 = arith.constant 0 : index
    %3 = vector.load %arg2[%c0_3, %c0_4] : memref<16x1xf32, #tpu.memory_space<vmem>>, vector<16x1xf32>
    %4 = vector.broadcast %3 : vector<16x1xf32> to vector<16x384xf32>
    %5 = arith.addf %2, %4 : vector<16x384xf32>
    %cst_5 = arith.constant 0.000000e+00 : f32
    %6 = vector.broadcast %cst_5 : f32 to vector<16x384xf32>
    %7 = arith.cmpf oge, %5, %6 : vector<16x384xf32>
    %cst_6 = arith.constant 0.00999999977 : f32
    %8 = vector.broadcast %cst_6 : f32 to vector<16x384xf32>
    %9 = arith.mulf %8, %5 : vector<16x384xf32>
    %10 = arith.select %7, %5, %9 : vector<16x384xi1>, vector<16x384xf32>
    %11 = arith.truncf %10 : vector<16x384xf32> to vector<16x384xbf16>
    %c0_7 = arith.constant 0 : index
    %c0_8 = arith.constant 0 : index
    %12 = vector.load %arg4[%c0_7, %c0_8] : memref<16x384xbf16, #tpu.memory_space<vmem>>, vector<16x384xbf16>
    tpu.vector_store %arg4[%c0_7, %c0_8], %11 {strides = array<i32>} : memref<16x384xbf16, #tpu.memory_space<vmem>>, vector<16x384xbf16>,
    return
  }
  func.func @transform_0(%arg0: i32) -> (i32, i32) {
    %c0_i32 = arith.constant 0 : i32
    %c0_i32_0 = arith.constant 0 : i32
    %c0_i32_1 = arith.constant 0 : i32
    return %c0_i32, %c0_i32_0 : i32, i32
  }
  func.func @transform_1(%arg0: i32) -> (i32, i32) {
    %c0_i32 = arith.constant 0 : i32
    %c0_i32_0 = arith.constant 0 : i32
    %c0_i32_1 = arith.constant 0 : i32
    return %c0_i32, %c0_i32_0 : i32, i32
  }
  func.func @transform_2(%arg0: i32) -> (i32, i32) {
    %c0_i32 = arith.constant 0 : i32
    %c0_i32_0 = arith.constant 0 : i32
    return %c0_i32, %arg0 : i32, i32
  }
  func.func @transform_3(%arg0: i32) -> (i32, i32) {
    %c0_i32 = arith.constant 0 : i32
    %c0_i32_0 = arith.constant 0 : i32
    return %c0_i32, %arg0 : i32, i32
  }
}

module attributes {stable_mosaic.version = 11 : i64} {
  func.func @_tgemm_bias_act_kernel(%arg0: i32, %arg1: memref<16x144xbf16, #tpu.memory_space<vmem>>, %arg2: memref<16x1xf32, #tpu.memory_space<vmem>>, %arg3: memref<144x256xbf16, #tpu.memory_space<vmem>>, %arg4: memref<16x256xbf16, #tpu.memory_space<vmem>>) attributes {dimension_semantics = [#tpu.dimension_semantics<parallel>], iteration_bounds = array<i64: 2>, scalar_prefetch = 0 : i64, scratch_operands = 0 : i64, tpu.core_type = #tpu.core_type<tc>, window_params = [{pipeline_mode = #tpu.pipeline_mode<synchronous>, transform_indices = @transform_0, window_bounds = array<i64: 16, 144>}, {pipeline_mode = #tpu.pipeline_mode<synchronous>, transform_indices = @transform_1, window_bounds = array<i64: 16, 1>}, {transform_indices = @transform_2, window_bounds = array<i64: 144, 256>}, {transform_indices = @transform_3, window_bounds = array<i64: 16, 256>}]} {
    %c0 = arith.constant 0 : index
    %c0_0 = arith.constant 0 : index
    %0 = vector.load %arg1[%c0, %c0_0] : memref<16x144xbf16, #tpu.memory_space<vmem>>, vector<16x144xbf16>
    %c0_1 = arith.constant 0 : index
    %c0_2 = arith.constant 0 : index
    %1 = vector.load %arg3[%c0_1, %c0_2] : memref<144x256xbf16, #tpu.memory_space<vmem>>, vector<144x256xbf16>
    %cst = arith.constant dense<0.000000e+00> : vector<16x256xf32>
    %2 = tpu.matmul %0, %1, %cst {dimension_numbers = #tpu.dot_dimension_numbers<[1], [0], [0], [1], [0, 0, 1, 1], [], []>} : vector<16x144xbf16>, vector<144x256xbf16>, vector<16x256xf32> -> vector<16x256xf32>
    %c0_3 = arith.constant 0 : index
    %c0_4 = arith.constant 0 : index
    %3 = vector.load %arg2[%c0_3, %c0_4] : memref<16x1xf32, #tpu.memory_space<vmem>>, vector<16x1xf32>
    %4 = vector.broadcast %3 : vector<16x1xf32> to vector<16x256xf32>
    %5 = arith.addf %2, %4 : vector<16x256xf32>
    %cst_5 = arith.constant 0.000000e+00 : f32
    %6 = vector.broadcast %cst_5 : f32 to vector<16x256xf32>
    %7 = arith.cmpf oge, %5, %6 : vector<16x256xf32>
    %cst_6 = arith.constant 0.00999999977 : f32
    %8 = vector.broadcast %cst_6 : f32 to vector<16x256xf32>
    %9 = arith.mulf %8, %5 : vector<16x256xf32>
    %10 = arith.select %7, %5, %9 : vector<16x256xi1>, vector<16x256xf32>
    %11 = arith.truncf %10 : vector<16x256xf32> to vector<16x256xbf16>
    %c0_7 = arith.constant 0 : index
    %c0_8 = arith.constant 0 : index
    %12 = vector.load %arg4[%c0_7, %c0_8] : memref<16x256xbf16, #tpu.memory_space<vmem>>, vector<16x256xbf16>
    tpu.vector_store %arg4[%c0_7, %c0_8], %11 {strides = array<i32>} : memref<16x256xbf16, #tpu.memory_space<vmem>>, vector<16x256xbf16>,
    return
  }
  func.func @transform_0(%arg0: i32) -> (i32, i32) {
    %c0_i32 = arith.constant 0 : i32
    %c0_i32_0 = arith.constant 0 : i32
    %c0_i32_1 = arith.constant 0 : i32
    return %c0_i32, %c0_i32_0 : i32, i32
  }
  func.func @transform_1(%arg0: i32) -> (i32, i32) {
    %c0_i32 = arith.constant 0 : i32
    %c0_i32_0 = arith.constant 0 : i32
    %c0_i32_1 = arith.constant 0 : i32
    return %c0_i32, %c0_i32_0 : i32, i32
  }
  func.func @transform_2(%arg0: i32) -> (i32, i32) {
    %c0_i32 = arith.constant 0 : i32
    %c0_i32_0 = arith.constant 0 : i32
    return %c0_i32, %arg0 : i32, i32
  }
  func.func @transform_3(%arg0: i32) -> (i32, i32) {
    %c0_i32 = arith.constant 0 : i32
    %c0_i32_0 = arith.constant 0 : i32
    return %c0_i32, %arg0 : i32, i32
  }
}

module attributes {stable_mosaic.version = 11 : i64} {
  func.func @_fc_head_kernel(%arg0: i32, %arg1: memref<64x784xbf16, #tpu.memory_space<vmem>>, %arg2: memref<64x1xf32, #tpu.memory_space<vmem>>, %arg3: memref<1x64xbf16, #tpu.memory_space<vmem>>, %arg4: memref<1x1xf32, #tpu.memory_space<vmem>>, %arg5: memref<784x128xbf16, #tpu.memory_space<vmem>>, %arg6: memref<1x128xf32, #tpu.memory_space<vmem>>) attributes {dimension_semantics = [#tpu.dimension_semantics<parallel>], iteration_bounds = array<i64: 1>, scalar_prefetch = 0 : i64, scratch_operands = 0 : i64, tpu.core_type = #tpu.core_type<tc>, window_params = [{pipeline_mode = #tpu.pipeline_mode<synchronous>, transform_indices = @transform_0, window_bounds = array<i64: 64, 784>}, {pipeline_mode = #tpu.pipeline_mode<synchronous>, transform_indices = @transform_1, window_bounds = array<i64: 64, 1>}, {pipeline_mode = #tpu.pipeline_mode<synchronous>, transform_indices = @transform_2, window_bounds = array<i64: 1, 64>}, {pipeline_mode = #tpu.pipeline_mode<synchronous>, transform_indices = @transform_3, window_bounds = array<i64: 1, 1>}, {transform_indices = @transform_4, window_bounds = array<i64: 784, 128>}, {transform_indices = @transform_5, window_bounds = array<i64: 1, 128>}]} {
    %c0 = arith.constant 0 : index
    %c0_0 = arith.constant 0 : index
    %0 = vector.load %arg1[%c0, %c0_0] : memref<64x784xbf16, #tpu.memory_space<vmem>>, vector<64x784xbf16>
    %c0_1 = arith.constant 0 : index
    %c0_2 = arith.constant 0 : index
    %1 = vector.load %arg5[%c0_1, %c0_2] : memref<784x128xbf16, #tpu.memory_space<vmem>>, vector<784x128xbf16>
    %cst = arith.constant dense<0.000000e+00> : vector<64x128xf32>
    %2 = tpu.matmul %0, %1, %cst {dimension_numbers = #tpu.dot_dimension_numbers<[1], [0], [0], [1], [0, 0, 1, 1], [], []>} : vector<64x784xbf16>, vector<784x128xbf16>, vector<64x128xf32> -> vector<64x128xf32>
    %c0_3 = arith.constant 0 : index
    %c0_4 = arith.constant 0 : index
    %3 = vector.load %arg2[%c0_3, %c0_4] : memref<64x1xf32, #tpu.memory_space<vmem>>, vector<64x1xf32>
    %4 = vector.broadcast %3 : vector<64x1xf32> to vector<64x128xf32>
    %5 = arith.addf %2, %4 : vector<64x128xf32>
    %cst_5 = arith.constant 0.000000e+00 : f32
    %6 = vector.broadcast %cst_5 : f32 to vector<64x128xf32>
    %7 = arith.cmpf oge, %5, %6 : vector<64x128xf32>
    %cst_6 = arith.constant 0.00999999977 : f32
    %8 = vector.broadcast %cst_6 : f32 to vector<64x128xf32>
    %9 = arith.mulf %8, %5 : vector<64x128xf32>
    %10 = arith.select %7, %5, %9 : vector<64x128xi1>, vector<64x128xf32>
    %c0_7 = arith.constant 0 : index
    %c0_8 = arith.constant 0 : index
    %11 = vector.load %arg3[%c0_7, %c0_8] : memref<1x64xbf16, #tpu.memory_space<vmem>>, vector<1x64xbf16>
    %12 = arith.truncf %10 : vector<64x128xf32> to vector<64x128xbf16>
    %cst_9 = arith.constant dense<0.000000e+00> : vector<1x128xf32>
    %13 = tpu.matmul %11, %12, %cst_9 {dimension_numbers = #tpu.dot_dimension_numbers<[1], [0], [0], [1], [0, 0, 1, 1], [], []>} : vector<1x64xbf16>, vector<64x128xbf16>, vector<1x128xf32> -> vector<1x128xf32>
    %c0_10 = arith.constant 0 : index
    %c0_11 = arith.constant 0 : index
    %14 = vector.load %arg4[%c0_10, %c0_11] : memref<1x1xf32, #tpu.memory_space<vmem>>, vector<1x1xf32>
    %15 = vector.broadcast %14 : vector<1x1xf32> to vector<1x128xf32>
    %16 = arith.addf %13, %15 : vector<1x128xf32>
    %c0_12 = arith.constant 0 : index
    %c0_13 = arith.constant 0 : index
    %17 = vector.load %arg6[%c0_12, %c0_13] : memref<1x128xf32, #tpu.memory_space<vmem>>, vector<1x128xf32>
    tpu.vector_store %arg6[%c0_12, %c0_13], %16 {strides = array<i32>} : memref<1x128xf32, #tpu.memory_space<vmem>>, vector<1x128xf32>,
    return
  }
  func.func @transform_0(%arg0: i32) -> (i32, i32) {
    %c0_i32 = arith.constant 0 : i32
    %c0_i32_0 = arith.constant 0 : i32
    %c0_i32_1 = arith.constant 0 : i32
    return %c0_i32, %c0_i32_0 : i32, i32
  }
  func.func @transform_1(%arg0: i32) -> (i32, i32) {
    %c0_i32 = arith.constant 0 : i32
    %c0_i32_0 = arith.constant 0 : i32
    %c0_i32_1 = arith.constant 0 : i32
    return %c0_i32, %c0_i32_0 : i32, i32
  }
  func.func @transform_2(%arg0: i32) -> (i32, i32) {
    %c0_i32 = arith.constant 0 : i32
    %c0_i32_0 = arith.constant 0 : i32
    %c0_i32_1 = arith.constant 0 : i32
    return %c0_i32, %c0_i32_0 : i32, i32
  }
  func.func @transform_3(%arg0: i32) -> (i32, i32) {
    %c0_i32 = arith.constant 0 : i32
    %c0_i32_0 = arith.constant 0 : i32
    %c0_i32_1 = arith.constant 0 : i32
    return %c0_i32, %c0_i32_0 : i32, i32
  }
  func.func @transform_4(%arg0: i32) -> (i32, i32) {
    %c0_i32 = arith.constant 0 : i32
    %c0_i32_0 = arith.constant 0 : i32
    return %c0_i32, %arg0 : i32, i32
  }
  func.func @transform_5(%arg0: i32) -> (i32, i32) {
    %c0_i32 = arith.constant 0 : i32
    %c0_i32_0 = arith.constant 0 : i32
    return %c0_i32, %arg0 : i32, i32
  }
}

</mosaic_0001>

<bundles_post_ra>
// kernel: net_forward.5
= control target key start
LH: loop header
LB: loop body
LE: loop exit
PB: predicated region body
PF: predicated region fallthrough
CT: control target
= control target key end

     0   :  { %s5407_s12 = smov 0   ;;  %s5409_s13 = smov 0   ;;  %s7120_s0 = inlined_call_operand.vmem [shape: bf16[16,196], index: 0, kind: input, shape index: {}]   ;;  %s7121_s1 = inlined_call_operand.vmem [shape: f32[16,1], index: 1, kind: input, shape index: {}]   ;;  %s7122_s2 = inlined_call_operand.vmem [shape: bf16[196,5408], index: 2, kind: input, shape index: {}]   ;;  %s7123_s3 = inlined_call_operand.vmem [shape: bf16[16,5408], index: 3, kind: output, shape index: {}]  }
   0x1   :  { %s5411_s14 = smov 0  }
   0x2 LB: > { %s5423_s15 = sadd.s32 4294967295, %s5252_s14   ;;  %s5426_s16 = sadd.s32 1, %s5252_s14   ;;  %s5252_s14 = sphi %s5411_s14, %s7159_s14   ;;  %s5248_s13 = sphi %s5409_s13, %s7158_s13   ;;  %s5244_s12 = sphi %s5407_s12, %s7157_s12  }
   0x3   : > { %s59_s17 = ssub.s32 %s5252_s14, %s5426_s16  ;;  %s62_s18 = sadd.s32 1, %s5248_s13 }
   0x4   : > { %p60_p0 = scmp.eq.s32.totalorder %s59_s17, 0  ;;  %p69_p1 = scmp.ne.s32.totalorder %s5248_s13, %s5244_s12 }
   0x5   : > { %p70_p2 = scmp.eq.s32.totalorder %s5252_s14, 0  ;;  %p99_p3 = scmp.eq.s32.totalorder %s5423_s15, 1 }
   0x6   : > { %s5436_s19 = scalar_select %p60_p0, %s5248_s13, %s62_s18  }
   0x7   : > { %p71_p4 = por %p70_p2, %p69_p1  ;;  %p5438_p5 = por %p99_p3, %p69_p1 }
   0x8   : > { %p3973_p6 = scmp.ge.s32.totalorder %s5252_s14, 2 }
   0xa   : > { %127 = sbr.rel (%p3973_p6) target bundleno = 285 (0x11d), region = 24 }
  0x11   : > { %130 = sbr.rel (!%p71_p4) target bundleno = 285 (0x11d), region = 28  ;;  %s132_s21 = sand.u32 (%p71_p4), 1, %s5248_s13  }
  0x12   : > { %s135_s22 = smul.u32 (%p71_p4), 22, %s5252_s14 }
  0x13   : > { %s4380_s23 = smul.u32 (%p71_p4), 2200, %s132_s21 }
  0x14   : > { %s136_s24 = ssub.s32 (%p71_p4), 43, %s135_s22  ;;  %s4352_s25 = smul.u32 (%p71_p4), 88, %s5252_s14 }
  0x15   : > { %p137_p7 = scmp.lt.s32.totalorder (%p71_p4), %s136_s24, 22  ;;  %s5453_s4 = scalar_lea.vmem (%p71_p4), [#allocation2], %s4380_s23  }
  0x16   : > { %s5449_s28 = scalar_lea.vmem (%p71_p4), %s7122_s2, %s4352_s25  }
  0x18   : > { %s7161_s24 = smov (!%p137_p7, %s136_s24), 22 }
  0x19   : > { %s139_s29 = smul.u32 1600, %s7161_s24  ;;  %s5451_s30 = sshll.u32 %s7161_s24, 2 }
  0x1b   : > { %p3977_p8 = scmp.eq.s32.totalorder %s139_s29, 0 }
  0x1c   : > { %p147_p9 = scmp.lt.u32.totalorder (!%p3977_p8), %s5451_s30, 8 }
  0x1d   : > { %146 = sbr.rel (%p3977_p8) target bundleno = 285 (0x11d), region = 32 }
  0x24   : > { %150 = sbr.rel (%p147_p9) target bundleno = 256 (0x100), region = 36  ;;  %s5457_s5 = sand.u32 (!%p147_p9), 7, %s5451_s30  }
  0x25   : > { %p214_p10 = scmp.eq.s32.totalorder (!%p147_p9), %s5457_s5, 0  ;;  %p3978_p11 = scmp.ne.s32.totalorder (!%p147_p9), %s5457_s5, 0 }
  0x2b   : > { %217 = sbr.rel (%p3978_p11) target bundleno = 135 (0x87), region = 51  ;;  %s218_s6 = sshrl.u32 (!%p3978_p11), %s5451_s30, 3 }
  0x2c   : > { %4670 = sdivrem.u32 (!%p3978_p11), %s218_s6, 3 }
  0x35   : > { %s5464_s7 = spop.drf %4670 }
  0x36   : > { %p3979_p12 = scmp.le.s32.totalorder %s5464_s7, 0 }
  0x37   : > { %s7125_s8 = smov (!%p3979_p12), %s5453_s4  ;;  %s7126_s9 = smov (!%p3979_p12), %s5449_s28 }
  0x38   : > { %3843 = sbr.rel (%p3979_p12) target bundleno = 102 (0x66), region = 229  ;;  %s5473_s10 = smov (!%p3979_p12), 0  }
  0x39   : > { %s5475_s11 = smov (!%p3979_p12), 0  }
  0x3f LB: >> { %v232_v0 = vld [vmem:[%s5260_s9] sm:$0xff]  ;;  %v234_v1 = vld [vmem:[%s5260_s9 + $0x8] sm:$0xff]  ;;  %v236_v2 = vld [vmem:[%s5260_s9 + $0x10] sm:$0xff]  ;;  %s382_s17 = sadd.s32 1, %s5264_s10  ;;  %s226_s11 = sadd.s32 1, %s5268_s11   ;;  %s5268_s11 = sphi %s5475_s11, %s226_s11   ;;  %s5264_s10 = sphi %s5473_s10, %s7129_s10   ;;  %s5260_s9 = sphi %s7126_s9, %s7128_s9   ;;  %s5256_s8 = sphi %s7125_s8, %s7127_s8  }
  0x40   : >> { %233 = vst [vmem:[%s5256_s8] sm:$0xff] %v232_v0  ;;  %235 = vst [vmem:[%s5256_s8 + $0x8] sm:$0xff] %v234_v1  ;;  %v238_v3 = vld [vmem:[%s5260_s9 + $0xac] sm:$0xff]  ;;  %v240_v4 = vld [vmem:[%s5260_s9 + $0xb4] sm:$0xff]  ;;  %p383_p13 = scmp.ge.s32.totalorder %s382_s17, %s5464_s7  ;;  %p225_p0 = scmp.ge.s32.totalorder %s226_s11, %s5464_s7 }
  0x41   : >> { %237 = vst [vmem:[%s5256_s8 + $0x10] sm:$0xff] %v236_v2  ;;  %v242_v5 = vld [vmem:[%s5260_s9 + $0xbc] sm:$0xff]  ;;  %239 = vst [vmem:[%s5256_s8 + $0x58] sm:$0xff] %v238_v3  ;;  %v248_v8 = vld [vmem:[%s5260_s9 + $0x168] sm:$0xff] }
  0x42   : >> { %241 = vst [vmem:[%s5256_s8 + $0x60] sm:$0xff] %v240_v4  ;;  %243 = vst [vmem:[%s5256_s8 + $0x68] sm:$0xff] %v242_v5  ;;  %v244_v6 = vld [vmem:[%s5260_s9 + $0x158] sm:$0xff]  ;;  %v246_v7 = vld [vmem:[%s5260_s9 + $0x160] sm:$0xff]  ;;  %s7163_s17 = smov (%p383_p13, %s382_s17), 0 }
  0x43   : >> { %245 = vst [vmem:[%s5256_s8 + $0xb0] sm:$0xff] %v244_v6  ;;  %247 = vst [vmem:[%s5256_s8 + $0xb8] sm:$0xff] %v246_v7  ;;  %v250_v9 = vld [vmem:[%s5260_s9 + $0x204] sm:$0xff]  ;;  %v252_v10 = vld [vmem:[%s5260_s9 + $0x20c] sm:$0xff]  ;;  %s385_s18 = smul.u32 24, %s7163_s17  ;;  %s7129_s10 = smov %s7163_s17 }
  0x44   : >> { %249 = vst [vmem:[%s5256_s8 + $0xc0] sm:$0xff] %v248_v8  ;;  %v254_v11 = vld [vmem:[%s5260_s9 + $0x214] sm:$0xff]  ;;  %251 = vst [vmem:[%s5256_s8 + $0x108] sm:$0xff] %v250_v9  ;;  %v260_v14 = vld [vmem:[%s5260_s9 + $0x2c0] sm:$0xff] }
  0x45   : >> { %253 = vst [vmem:[%s5256_s8 + $0x110] sm:$0xff] %v252_v10  ;;  %255 = vst [vmem:[%s5256_s8 + $0x118] sm:$0xff] %v254_v11  ;;  %v256_v12 = vld [vmem:[%s5260_s9 + $0x2b0] sm:$0xff]  ;;  %v258_v13 = vld [vmem:[%s5260_s9 + $0x2b8] sm:$0xff]  ;;  %s5537_s21 = scalar_lea.vmem %s5449_s28, %s385_s18   ;;  %s5540_s22 = scalar_lea.vmem %s5453_s4, %s385_s18 [#allocation2]  }
  0x46   : >> { %257 = vst [vmem:[%s5256_s8 + $0x160] sm:$0xff] %v256_v12  ;;  %259 = vst [vmem:[%s5256_s8 + $0x168] sm:$0xff] %v258_v13  ;;  %v262_v15 = vld [vmem:[%s5260_s9 + $0x35c] sm:$0xff]  ;;  %v264_v16 = vld [vmem:[%s5260_s9 + $0x364] sm:$0xff] }
  0x47   : >> { %261 = vst [vmem:[%s5256_s8 + $0x170] sm:$0xff] %v260_v14  ;;  %v266_v17 = vld [vmem:[%s5260_s9 + $0x36c] sm:$0xff]  ;;  %263 = vst [vmem:[%s5256_s8 + $0x1b8] sm:$0xff] %v262_v15  ;;  %v272_v20 = vld [vmem:[%s5260_s9 + $0x418] sm:$0xff] }
  0x48   : >> { %265 = vst [vmem:[%s5256_s8 + $0x1c0] sm:$0xff] %v264_v16  ;;  %267 = vst [vmem:[%s5256_s8 + $0x1c8] sm:$0xff] %v266_v17  ;;  %v268_v18 = vld [vmem:[%s5260_s9 + $0x408] sm:$0xff]  ;;  %v270_v19 = vld [vmem:[%s5260_s9 + $0x410] sm:$0xff] }
  0x49   : >> { %269 = vst [vmem:[%s5256_s8 + $0x210] sm:$0xff] %v268_v18  ;;  %271 = vst [vmem:[%s5256_s8 + $0x218] sm:$0xff] %v270_v19  ;;  %v274_v21 = vld [vmem:[%s5260_s9 + $0x4b4] sm:$0xff]  ;;  %v276_v22 = vld [vmem:[%s5260_s9 + $0x4bc] sm:$0xff] }
  0x4a   : >> { %273 = vst [vmem:[%s5256_s8 + $0x220] sm:$0xff] %v272_v20  ;;  %v278_v23 = vld [vmem:[%s5260_s9 + $0x4c4] sm:$0xff]  ;;  %275 = vst [vmem:[%s5256_s8 + $0x268] sm:$0xff] %v274_v21  ;;  %v284_v26 = vld [vmem:[%s5260_s9 + $0x570] sm:$0xff] }
  0x4b   : >> { %277 = vst [vmem:[%s5256_s8 + $0x270] sm:$0xff] %v276_v22  ;;  %279 = vst [vmem:[%s5256_s8 + $0x278] sm:$0xff] %v278_v23  ;;  %v280_v24 = vld [vmem:[%s5260_s9 + $0x560] sm:$0xff]  ;;  %v282_v25 = vld [vmem:[%s5260_s9 + $0x568] sm:$0xff] }
  0x4c   : >> { %281 = vst [vmem:[%s5256_s8 + $0x2c0] sm:$0xff] %v280_v24  ;;  %283 = vst [vmem:[%s5256_s8 + $0x2c8] sm:$0xff] %v282_v25  ;;  %v286_v27 = vld [vmem:[%s5260_s9 + $0x60c] sm:$0xff]  ;;  %v288_v28 = vld [vmem:[%s5260_s9 + $0x614] sm:$0xff] }
  0x4d   : >> { %285 = vst [vmem:[%s5256_s8 + $0x2d0] sm:$0xff] %v284_v26  ;;  %v290_v29 = vld [vmem:[%s5260_s9 + $0x61c] sm:$0xff]  ;;  %287 = vst [vmem:[%s5256_s8 + $0x318] sm:$0xff] %v286_v27  ;;  %v296_v32 = vld [vmem:[%s5260_s9 + $0x6c8] sm:$0xff] }
  0x4e   : >> { %289 = vst [vmem:[%s5256_s8 + $0x320] sm:$0xff] %v288_v28  ;;  %291 = vst [vmem:[%s5256_s8 + $0x328] sm:$0xff] %v290_v29  ;;  %v292_v30 = vld [vmem:[%s5260_s9 + $0x6b8] sm:$0xff]  ;;  %v294_v31 = vld [vmem:[%s5260_s9 + $0x6c0] sm:$0xff] }
  0x4f   : >> { %293 = vst [vmem:[%s5256_s8 + $0x370] sm:$0xff] %v292_v30  ;;  %295 = vst [vmem:[%s5256_s8 + $0x378] sm:$0xff] %v294_v31  ;;  %v298_v33 = vld [vmem:[%s5260_s9 + $0x764] sm:$0xff]  ;;  %v300_v34 = vld [vmem:[%s5260_s9 + $0x76c] sm:$0xff] }
  0x50   : >> { %297 = vst [vmem:[%s5256_s8 + $0x380] sm:$0xff] %v296_v32  ;;  %v302_v35 = vld [vmem:[%s5260_s9 + $0x774] sm:$0xff]  ;;  %299 = vst [vmem:[%s5256_s8 + $0x3c8] sm:$0xff] %v298_v33  ;;  %v308_v38 = vld [vmem:[%s5260_s9 + $0x820] sm:$0xff] }
  0x51   : >> { %301 = vst [vmem:[%s5256_s8 + $0x3d0] sm:$0xff] %v300_v34  ;;  %303 = vst [vmem:[%s5256_s8 + $0x3d8] sm:$0xff] %v302_v35  ;;  %v304_v36 = vld [vmem:[%s5260_s9 + $0x810] sm:$0xff]  ;;  %v306_v37 = vld [vmem:[%s5260_s9 + $0x818] sm:$0xff] }
  0x52   : >> { %305 = vst [vmem:[%s5256_s8 + $0x420] sm:$0xff] %v304_v36  ;;  %307 = vst [vmem:[%s5256_s8 + $0x428] sm:$0xff] %v306_v37  ;;  %v310_v39 = vld [vmem:[%s5260_s9 + $0x8bc] sm:$0xff]  ;;  %v312_v40 = vld [vmem:[%s5260_s9 + $0x8c4] sm:$0xff] }
  0x53   : >> { %309 = vst [vmem:[%s5256_s8 + $0x430] sm:$0xff] %v308_v38  ;;  %v314_v41 = vld [vmem:[%s5260_s9 + $0x8cc] sm:$0xff]  ;;  %311 = vst [vmem:[%s5256_s8 + $0x478] sm:$0xff] %v310_v39  ;;  %v320_v44 = vld [vmem:[%s5260_s9 + $0x978] sm:$0xff] }
  0x54   : >> { %313 = vst [vmem:[%s5256_s8 + $0x480] sm:$0xff] %v312_v40  ;;  %315 = vst [vmem:[%s5256_s8 + $0x488] sm:$0xff] %v314_v41  ;;  %v316_v42 = vld [vmem:[%s5260_s9 + $0x968] sm:$0xff]  ;;  %v318_v43 = vld [vmem:[%s5260_s9 + $0x970] sm:$0xff] }
  0x55   : >> { %317 = vst [vmem:[%s5256_s8 + $0x4d0] sm:$0xff] %v316_v42  ;;  %319 = vst [vmem:[%s5256_s8 + $0x4d8] sm:$0xff] %v318_v43  ;;  %v322_v45 = vld [vmem:[%s5260_s9 + $0xa14] sm:$0xff]  ;;  %v324_v46 = vld [vmem:[%s5260_s9 + $0xa1c] sm:$0xff] }
  0x56   : >> { %321 = vst [vmem:[%s5256_s8 + $0x4e0] sm:$0xff] %v320_v44  ;;  %v326_v47 = vld [vmem:[%s5260_s9 + $0xa24] sm:$0xff]  ;;  %323 = vst [vmem:[%s5256_s8 + $0x528] sm:$0xff] %v322_v45  ;;  %v332_v50 = vld [vmem:[%s5260_s9 + $0xad0] sm:$0xff] }
  0x57   : >> { %325 = vst [vmem:[%s5256_s8 + $0x530] sm:$0xff] %v324_v46  ;;  %327 = vst [vmem:[%s5256_s8 + $0x538] sm:$0xff] %v326_v47  ;;  %v328_v48 = vld [vmem:[%s5260_s9 + $0xac0] sm:$0xff]  ;;  %v330_v49 = vld [vmem:[%s5260_s9 + $0xac8] sm:$0xff] }
  0x58   : >> { %329 = vst [vmem:[%s5256_s8 + $0x580] sm:$0xff] %v328_v48  ;;  %331 = vst [vmem:[%s5256_s8 + $0x588] sm:$0xff] %v330_v49  ;;  %v334_v51 = vld [vmem:[%s5260_s9 + $0xb6c] sm:$0xff]  ;;  %v336_v52 = vld [vmem:[%s5260_s9 + $0xb74] sm:$0xff] }
  0x59   : >> { %333 = vst [vmem:[%s5256_s8 + $0x590] sm:$0xff] %v332_v50  ;;  %v338_v53 = vld [vmem:[%s5260_s9 + $0xb7c] sm:$0xff]  ;;  %335 = vst [vmem:[%s5256_s8 + $0x5d8] sm:$0xff] %v334_v51  ;;  %v344_v56 = vld [vmem:[%s5260_s9 + $0xc28] sm:$0xff] }
  0x5a   : >> { %337 = vst [vmem:[%s5256_s8 + $0x5e0] sm:$0xff] %v336_v52  ;;  %339 = vst [vmem:[%s5256_s8 + $0x5e8] sm:$0xff] %v338_v53  ;;  %v340_v54 = vld [vmem:[%s5260_s9 + $0xc18] sm:$0xff]  ;;  %v342_v55 = vld [vmem:[%s5260_s9 + $0xc20] sm:$0xff] }
  0x5b   : >> { %341 = vst [vmem:[%s5256_s8 + $0x630] sm:$0xff] %v340_v54  ;;  %343 = vst [vmem:[%s5256_s8 + $0x638] sm:$0xff] %v342_v55  ;;  %v346_v57 = vld [vmem:[%s5260_s9 + $0xcc4] sm:$0xff]  ;;  %v348_v58 = vld [vmem:[%s5260_s9 + $0xccc] sm:$0xff] }
  0x5c   : >> { %345 = vst [vmem:[%s5256_s8 + $0x640] sm:$0xff] %v344_v56  ;;  %v350_v59 = vld [vmem:[%s5260_s9 + $0xcd4] sm:$0xff]  ;;  %347 = vst [vmem:[%s5256_s8 + $0x688] sm:$0xff] %v346_v57  ;;  %v356_v62 = vld [vmem:[%s5260_s9 + $0xd80] sm:$0xff] }
  0x5d   : >> { %349 = vst [vmem:[%s5256_s8 + $0x690] sm:$0xff] %v348_v58  ;;  %351 = vst [vmem:[%s5256_s8 + $0x698] sm:$0xff] %v350_v59  ;;  %v352_v60 = vld [vmem:[%s5260_s9 + $0xd70] sm:$0xff]  ;;  %v354_v61 = vld [vmem:[%s5260_s9 + $0xd78] sm:$0xff] }
  0x5e   : >> { %353 = vst [vmem:[%s5256_s8 + $0x6e0] sm:$0xff] %v352_v60  ;;  %355 = vst [vmem:[%s5256_s8 + $0x6e8] sm:$0xff] %v354_v61  ;;  %v358_v63 = vld [vmem:[%s5260_s9 + $0xe1c] sm:$0xff]  ;;  %v360_v0 = vld [vmem:[%s5260_s9 + $0xe24] sm:$0xff] }
  0x5f   : >> { %357 = vst [vmem:[%s5256_s8 + $0x6f0] sm:$0xff] %v356_v62  ;;  %v362_v1 = vld [vmem:[%s5260_s9 + $0xe2c] sm:$0xff]  ;;  %359 = vst [vmem:[%s5256_s8 + $0x738] sm:$0xff] %v358_v63  ;;  %v368_v4 = vld [vmem:[%s5260_s9 + $0xed8] sm:$0xff]  ;;  %228 = sbr.rel (!%p225_p0) target bundleno = 63 (0x3f), region = 235 }
  0x60   : >> { %361 = vst [vmem:[%s5256_s8 + $0x740] sm:$0xff] %v360_v0  ;;  %363 = vst [vmem:[%s5256_s8 + $0x748] sm:$0xff] %v362_v1  ;;  %v364_v2 = vld [vmem:[%s5260_s9 + $0xec8] sm:$0xff]  ;;  %v366_v3 = vld [vmem:[%s5260_s9 + $0xed0] sm:$0xff] }
  0x61   : >> { %365 = vst [vmem:[%s5256_s8 + $0x790] sm:$0xff] %v364_v2  ;;  %367 = vst [vmem:[%s5256_s8 + $0x798] sm:$0xff] %v366_v3  ;;  %v370_v5 = vld [vmem:[%s5260_s9 + $0xf74] sm:$0xff]  ;;  %v372_v6 = vld [vmem:[%s5260_s9 + $0xf7c] sm:$0xff] }
  0x62   : >> { %369 = vst [vmem:[%s5256_s8 + $0x7a0] sm:$0xff] %v368_v4  ;;  %v374_v7 = vld [vmem:[%s5260_s9 + $0xf84] sm:$0xff]  ;;  %371 = vst [vmem:[%s5256_s8 + $0x7e8] sm:$0xff] %v370_v5  ;;  %v380_v10 = vld [vmem:[%s5260_s9 + $0x1030] sm:$0xff] }
  0x63   : >> { %373 = vst [vmem:[%s5256_s8 + $0x7f0] sm:$0xff] %v372_v6  ;;  %375 = vst [vmem:[%s5256_s8 + $0x7f8] sm:$0xff] %v374_v7  ;;  %v376_v8 = vld [vmem:[%s5260_s9 + $0x1020] sm:$0xff]  ;;  %v378_v9 = vld [vmem:[%s5260_s9 + $0x1028] sm:$0xff]  ;;  %s7128_s9 = smov %s5537_s21 }
  0x64   : >> { %377 = vst [vmem:[%s5256_s8 + $0x840] sm:$0xff] %v376_v8  ;;  %379 = vst [vmem:[%s5256_s8 + $0x848] sm:$0xff] %v378_v9 }
  0x65   : >> { %381 = vst [vmem:[%s5256_s8 + $0x850] sm:$0xff] %v380_v10  ;;  %s7127_s8 = smov %s5540_s22 }
  0x66 PF: > { %4672 = sdivrem.u32 %s218_s6, 3 }
  0x67   : > { %s3980_s23 = smul.u32 384, %s5464_s7 }
  0x69   : > { %s393_s24 = sshra.s32 %s3980_s23, 4 }
  0x6a   : > { %s5664_s25 = scalar_lea.vmem %s5449_s28, %s393_s24   ;;  %s5667_s26 = scalar_lea.vmem %s5453_s4, %s393_s24 [#allocation2]  }
  0x6f   : > { %s5669_s27 = spop.drf %4672 }
  0x70   : > { %p3982_p1 = scmp.le.s32.totalorder %s5669_s27, 0 }
  0x71   : > { %s7130_s29 = smov (!%p3982_p1), %s5667_s26  ;;  %s7131_s8 = smov (!%p3982_p1), %s5664_s25 }
  0x72   : > { %3857 = sbr.rel (%p3982_p1) target bundleno = 135 (0x87), region = 240  ;;  %s5678_s9 = smov (!%p3982_p1), 0  }
  0x73   : > { %s5680_s6 = smov (!%p3982_p1), 0  }
  0x79 LB: >> { %v409_v11 = vld [vmem:[%s5276_s8] sm:$0xff]  ;;  %v411_v12 = vld [vmem:[%s5276_s8 + $0xac] sm:$0xff]  ;;  %v413_v13 = vld [vmem:[%s5276_s8 + $0x158] sm:$0xff]  ;;  %s459_s7 = sadd.s32 1, %s5280_s9  ;;  %s403_s6 = sadd.s32 1, %s5284_s6   ;;  %s5284_s6 = sphi %s5680_s6, %s403_s6   ;;  %s5280_s9 = sphi %s5678_s9, %s7134_s9   ;;  %s5276_s8 = sphi %s7131_s8, %s7133_s8   ;;  %s5272_s29 = sphi %s7130_s29, %s7132_s29  }
  0x7a   : >> { %410 = vst [vmem:[%s5272_s29] sm:$0xff] %v409_v11  ;;  %412 = vst [vmem:[%s5272_s29 + $0x58] sm:$0xff] %v411_v12  ;;  %v415_v14 = vld [vmem:[%s5276_s8 + $0x204] sm:$0xff]  ;;  %v417_v15 = vld [vmem:[%s5276_s8 + $0x2b0] sm:$0xff]  ;;  %p460_p2 = scmp.ge.s32.totalorder %s459_s7, %s5669_s27  ;;  %p402_p3 = scmp.ge.s32.totalorder %s403_s6, %s5669_s27 }
  0x7b   : >> { %414 = vst [vmem:[%s5272_s29 + $0xb0] sm:$0xff] %v413_v13  ;;  %v419_v16 = vld [vmem:[%s5276_s8 + $0x35c] sm:$0xff]  ;;  %416 = vst [vmem:[%s5272_s29 + $0x108] sm:$0xff] %v415_v14  ;;  %v421_v17 = vld [vmem:[%s5276_s8 + $0x408] sm:$0xff] }
  0x7c   : >> { %418 = vst [vmem:[%s5272_s29 + $0x160] sm:$0xff] %v417_v15  ;;  %420 = vst [vmem:[%s5272_s29 + $0x1b8] sm:$0xff] %v419_v16  ;;  %v423_v18 = vld [vmem:[%s5276_s8 + $0x4b4] sm:$0xff]  ;;  %v425_v19 = vld [vmem:[%s5276_s8 + $0x560] sm:$0xff]  ;;  %s7165_s7 = smov (%p460_p2, %s459_s7), 0 }
  0x7d   : >> { %422 = vst [vmem:[%s5272_s29 + $0x210] sm:$0xff] %v421_v17  ;;  %424 = vst [vmem:[%s5272_s29 + $0x268] sm:$0xff] %v423_v18  ;;  %v427_v20 = vld [vmem:[%s5276_s8 + $0x60c] sm:$0xff]  ;;  %v429_v21 = vld [vmem:[%s5276_s8 + $0x6b8] sm:$0xff]  ;;  %s3983_s10 = sshll.u32 %s7165_s7, 3  ;;  %s7134_s9 = smov %s7165_s7 }
  0x7e   : >> { %426 = vst [vmem:[%s5272_s29 + $0x2c0] sm:$0xff] %v425_v19  ;;  %v431_v22 = vld [vmem:[%s5276_s8 + $0x764] sm:$0xff]  ;;  %428 = vst [vmem:[%s5272_s29 + $0x318] sm:$0xff] %v427_v20  ;;  %v433_v23 = vld [vmem:[%s5276_s8 + $0x810] sm:$0xff]  ;;  %s464_s11 = scalar_lea.vmem %s5664_s25, %s3983_s10   ;;  %s465_s17 = scalar_lea.vmem %s5667_s26, %s3983_s10 [#allocation2]  }
  0x7f   : >> { %430 = vst [vmem:[%s5272_s29 + $0x370] sm:$0xff] %v429_v21  ;;  %432 = vst [vmem:[%s5272_s29 + $0x3c8] sm:$0xff] %v431_v22  ;;  %v435_v24 = vld [vmem:[%s5276_s8 + $0x8bc] sm:$0xff]  ;;  %v437_v25 = vld [vmem:[%s5276_s8 + $0x968] sm:$0xff] }
  0x80   : >> { %434 = vst [vmem:[%s5272_s29 + $0x420] sm:$0xff] %v433_v23  ;;  %436 = vst [vmem:[%s5272_s29 + $0x478] sm:$0xff] %v435_v24  ;;  %v439_v26 = vld [vmem:[%s5276_s8 + $0xa14] sm:$0xff]  ;;  %v441_v27 = vld [vmem:[%s5276_s8 + $0xac0] sm:$0xff]  ;;  %405 = sbr.rel (!%p402_p3) target bundleno = 121 (0x79), region = 246 }
  0x81   : >> { %438 = vst [vmem:[%s5272_s29 + $0x4d0] sm:$0xff] %v437_v25  ;;  %v443_v28 = vld [vmem:[%s5276_s8 + $0xb6c] sm:$0xff]  ;;  %440 = vst [vmem:[%s5272_s29 + $0x528] sm:$0xff] %v439_v26  ;;  %v445_v29 = vld [vmem:[%s5276_s8 + $0xc18] sm:$0xff] }
  0x82   : >> { %442 = vst [vmem:[%s5272_s29 + $0x580] sm:$0xff] %v441_v27  ;;  %444 = vst [vmem:[%s5272_s29 + $0x5d8] sm:$0xff] %v443_v28  ;;  %v447_v30 = vld [vmem:[%s5276_s8 + $0xcc4] sm:$0xff]  ;;  %v449_v31 = vld [vmem:[%s5276_s8 + $0xd70] sm:$0xff] }
  0x83   : >> { %446 = vst [vmem:[%s5272_s29 + $0x630] sm:$0xff] %v445_v29  ;;  %448 = vst [vmem:[%s5272_s29 + $0x688] sm:$0xff] %v447_v30  ;;  %v451_v32 = vld [vmem:[%s5276_s8 + $0xe1c] sm:$0xff]  ;;  %v453_v33 = vld [vmem:[%s5276_s8 + $0xec8] sm:$0xff] }
  0x84   : >> { %450 = vst [vmem:[%s5272_s29 + $0x6e0] sm:$0xff] %v449_v31  ;;  %v455_v34 = vld [vmem:[%s5276_s8 + $0xf74] sm:$0xff]  ;;  %452 = vst [vmem:[%s5272_s29 + $0x738] sm:$0xff] %v451_v32  ;;  %v457_v35 = vld [vmem:[%s5276_s8 + $0x1020] sm:$0xff]  ;;  %s7133_s8 = smov %s464_s11 }
  0x85   : >> { %454 = vst [vmem:[%s5272_s29 + $0x790] sm:$0xff] %v453_v33  ;;  %456 = vst [vmem:[%s5272_s29 + $0x7e8] sm:$0xff] %v455_v34 }
  0x86   : >> { %458 = vst [vmem:[%s5272_s29 + $0x840] sm:$0xff] %v457_v35  ;;  %s7132_s29 = smov %s465_s17 }
  0x87 PF: > { %468 = sbr.rel (%p214_p10) target bundleno = 256 (0x100), region = 69  ;;  %s470_s18 = ssub.s32 (!%p214_p10), %s5451_s30, %s5457_s5 }
  0x88   : > { %s474_s21 = sshrl.u32 (!%p214_p10), %s5451_s30, 3  ;;  %s5765_s22 = scalar_lea.vmem (!%p214_p10), %s5449_s28, %s470_s18 }
  0x89   : > { %s5768_s23 = scalar_lea.vmem (!%p214_p10), %s5453_s4, %s470_s18 [#allocation2]  ;;  %4674 = sdivrem.u32 (!%p214_p10), %s474_s21, 3 }
  0x92   : > { %s5772_s24 = spop.drf %4674 }
  0x93   : > { %p3985_p4 = scmp.le.s32.totalorder %s5772_s24, 0 }
  0x94   : > { %s7135_s25 = smov (!%p3985_p4), %s5453_s4  ;;  %s7136_s26 = smov (!%p3985_p4), %s5449_s28 }
  0x95   : > { %3871 = sbr.rel (%p3985_p4) target bundleno = 195 (0xc3), region = 251  ;;  %s5781_s27 = smov (!%p3985_p4), 0  }
  0x96   : > { %s5783_s29 = smov (!%p3985_p4), 0  }
  0x9c LB: >> { %v488_v36 = vld [vmem:[%s5292_s26] sm:$0xff]  ;;  %v490_v37 = vld [vmem:[%s5292_s26 + $0x8] sm:$0xff]  ;;  %v492_v38 = vld [vmem:[%s5292_s26 + $0x10] sm:$0xff]  ;;  %s638_s8 = sadd.s32 1, %s5296_s27  ;;  %s482_s29 = sadd.s32 1, %s5300_s29   ;;  %s5300_s29 = sphi %s5783_s29, %s482_s29   ;;  %s5296_s27 = sphi %s5781_s27, %s7139_s27   ;;  %s5292_s26 = sphi %s7136_s26, %s7138_s26   ;;  %s5288_s25 = sphi %s7135_s25, %s7137_s25  }
  0x9d   : >> { %489 = vst [vmem:[%s5288_s25] sm:$0xff] %v488_v36  ;;  %491 = vst [vmem:[%s5288_s25 + $0x8] sm:$0xff] %v490_v37  ;;  %v494_v39 = vld [vmem:[%s5292_s26 + $0xac] sm:$0xff]  ;;  %v496_v40 = vld [vmem:[%s5292_s26 + $0xb4] sm:$0xff]  ;;  %p639_p6 = scmp.ge.s32.totalorder %s638_s8, %s5772_s24  ;;  %p481_p7 = scmp.ge.s32.totalorder %s482_s29, %s5772_s24 }
  0x9e   : >> { %493 = vst [vmem:[%s5288_s25 + $0x10] sm:$0xff] %v492_v38  ;;  %v498_v41 = vld [vmem:[%s5292_s26 + $0xbc] sm:$0xff]  ;;  %495 = vst [vmem:[%s5288_s25 + $0x58] sm:$0xff] %v494_v39  ;;  %v504_v44 = vld [vmem:[%s5292_s26 + $0x168] sm:$0xff] }
  0x9f   : >> { %497 = vst [vmem:[%s5288_s25 + $0x60] sm:$0xff] %v496_v40  ;;  %499 = vst [vmem:[%s5288_s25 + $0x68] sm:$0xff] %v498_v41  ;;  %v500_v42 = vld [vmem:[%s5292_s26 + $0x158] sm:$0xff]  ;;  %v502_v43 = vld [vmem:[%s5292_s26 + $0x160] sm:$0xff]  ;;  %s7167_s8 = smov (%p639_p6, %s638_s8), 0 }
  0xa0   : >> { %501 = vst [vmem:[%s5288_s25 + $0xb0] sm:$0xff] %v500_v42  ;;  %503 = vst [vmem:[%s5288_s25 + $0xb8] sm:$0xff] %v502_v43  ;;  %v506_v45 = vld [vmem:[%s5292_s26 + $0x204] sm:$0xff]  ;;  %v508_v46 = vld [vmem:[%s5292_s26 + $0x20c] sm:$0xff]  ;;  %s641_s9 = smul.u32 24, %s7167_s8  ;;  %s7139_s27 = smov %s7167_s8 }
  0xa1   : >> { %505 = vst [vmem:[%s5288_s25 + $0xc0] sm:$0xff] %v504_v44  ;;  %v510_v47 = vld [vmem:[%s5292_s26 + $0x214] sm:$0xff]  ;;  %507 = vst [vmem:[%s5288_s25 + $0x108] sm:$0xff] %v506_v45  ;;  %v516_v50 = vld [vmem:[%s5292_s26 + $0x2c0] sm:$0xff] }
  0xa2   : >> { %509 = vst [vmem:[%s5288_s25 + $0x110] sm:$0xff] %v508_v46  ;;  %511 = vst [vmem:[%s5288_s25 + $0x118] sm:$0xff] %v510_v47  ;;  %v512_v48 = vld [vmem:[%s5292_s26 + $0x2b0] sm:$0xff]  ;;  %v514_v49 = vld [vmem:[%s5292_s26 + $0x2b8] sm:$0xff]  ;;  %s5845_s6 = scalar_lea.vmem %s5449_s28, %s641_s9   ;;  %s5848_s7 = scalar_lea.vmem %s5453_s4, %s641_s9 [#allocation2]  }
  0xa3   : >> { %513 = vst [vmem:[%s5288_s25 + $0x160] sm:$0xff] %v512_v48  ;;  %515 = vst [vmem:[%s5288_s25 + $0x168] sm:$0xff] %v514_v49  ;;  %v518_v51 = vld [vmem:[%s5292_s26 + $0x35c] sm:$0xff]  ;;  %v520_v52 = vld [vmem:[%s5292_s26 + $0x364] sm:$0xff] }
  0xa4   : >> { %517 = vst [vmem:[%s5288_s25 + $0x170] sm:$0xff] %v516_v50  ;;  %v522_v53 = vld [vmem:[%s5292_s26 + $0x36c] sm:$0xff]  ;;  %519 = vst [vmem:[%s5288_s25 + $0x1b8] sm:$0xff] %v518_v51  ;;  %v528_v56 = vld [vmem:[%s5292_s26 + $0x418] sm:$0xff] }
  0xa5   : >> { %521 = vst [vmem:[%s5288_s25 + $0x1c0] sm:$0xff] %v520_v52  ;;  %523 = vst [vmem:[%s5288_s25 + $0x1c8] sm:$0xff] %v522_v53  ;;  %v524_v54 = vld [vmem:[%s5292_s26 + $0x408] sm:$0xff]  ;;  %v526_v55 = vld [vmem:[%s5292_s26 + $0x410] sm:$0xff] }
  0xa6   : >> { %525 = vst [vmem:[%s5288_s25 + $0x210] sm:$0xff] %v524_v54  ;;  %527 = vst [vmem:[%s5288_s25 + $0x218] sm:$0xff] %v526_v55  ;;  %v530_v57 = vld [vmem:[%s5292_s26 + $0x4b4] sm:$0xff]  ;;  %v532_v58 = vld [vmem:[%s5292_s26 + $0x4bc] sm:$0xff] }
  0xa7   : >> { %529 = vst [vmem:[%s5288_s25 + $0x220] sm:$0xff] %v528_v56  ;;  %v534_v59 = vld [vmem:[%s5292_s26 + $0x4c4] sm:$0xff]  ;;  %531 = vst [vmem:[%s5288_s25 + $0x268] sm:$0xff] %v530_v57  ;;  %v540_v62 = vld [vmem:[%s5292_s26 + $0x570] sm:$0xff] }
  0xa8   : >> { %533 = vst [vmem:[%s5288_s25 + $0x270] sm:$0xff] %v532_v58  ;;  %535 = vst [vmem:[%s5288_s25 + $0x278] sm:$0xff] %v534_v59  ;;  %v536_v60 = vld [vmem:[%s5292_s26 + $0x560] sm:$0xff]  ;;  %v538_v61 = vld [vmem:[%s5292_s26 + $0x568] sm:$0xff] }
  0xa9   : >> { %537 = vst [vmem:[%s5288_s25 + $0x2c0] sm:$0xff] %v536_v60  ;;  %539 = vst [vmem:[%s5288_s25 + $0x2c8] sm:$0xff] %v538_v61  ;;  %v542_v63 = vld [vmem:[%s5292_s26 + $0x60c] sm:$0xff]  ;;  %v544_v0 = vld [vmem:[%s5292_s26 + $0x614] sm:$0xff] }
  0xaa   : >> { %541 = vst [vmem:[%s5288_s25 + $0x2d0] sm:$0xff] %v540_v62  ;;  %v546_v1 = vld [vmem:[%s5292_s26 + $0x61c] sm:$0xff]  ;;  %543 = vst [vmem:[%s5288_s25 + $0x318] sm:$0xff] %v542_v63  ;;  %v552_v4 = vld [vmem:[%s5292_s26 + $0x6c8] sm:$0xff] }
  0xab   : >> { %545 = vst [vmem:[%s5288_s25 + $0x320] sm:$0xff] %v544_v0  ;;  %547 = vst [vmem:[%s5288_s25 + $0x328] sm:$0xff] %v546_v1  ;;  %v548_v2 = vld [vmem:[%s5292_s26 + $0x6b8] sm:$0xff]  ;;  %v550_v3 = vld [vmem:[%s5292_s26 + $0x6c0] sm:$0xff] }
  0xac   : >> { %549 = vst [vmem:[%s5288_s25 + $0x370] sm:$0xff] %v548_v2  ;;  %551 = vst [vmem:[%s5288_s25 + $0x378] sm:$0xff] %v550_v3  ;;  %v554_v5 = vld [vmem:[%s5292_s26 + $0x764] sm:$0xff]  ;;  %v556_v6 = vld [vmem:[%s5292_s26 + $0x76c] sm:$0xff] }
  0xad   : >> { %553 = vst [vmem:[%s5288_s25 + $0x380] sm:$0xff] %v552_v4  ;;  %v558_v7 = vld [vmem:[%s5292_s26 + $0x774] sm:$0xff]  ;;  %555 = vst [vmem:[%s5288_s25 + $0x3c8] sm:$0xff] %v554_v5  ;;  %v564_v10 = vld [vmem:[%s5292_s26 + $0x820] sm:$0xff] }
  0xae   : >> { %557 = vst [vmem:[%s5288_s25 + $0x3d0] sm:$0xff] %v556_v6  ;;  %559 = vst [vmem:[%s5288_s25 + $0x3d8] sm:$0xff] %v558_v7  ;;  %v560_v8 = vld [vmem:[%s5292_s26 + $0x810] sm:$0xff]  ;;  %v562_v9 = vld [vmem:[%s5292_s26 + $0x818] sm:$0xff] }
  0xaf   : >> { %561 = vst [vmem:[%s5288_s25 + $0x420] sm:$0xff] %v560_v8  ;;  %563 = vst [vmem:[%s5288_s25 + $0x428] sm:$0xff] %v562_v9  ;;  %v566_v11 = vld [vmem:[%s5292_s26 + $0x8bc] sm:$0xff]  ;;  %v568_v12 = vld [vmem:[%s5292_s26 + $0x8c4] sm:$0xff] }
  0xb0   : >> { %565 = vst [vmem:[%s5288_s25 + $0x430] sm:$0xff] %v564_v10  ;;  %v570_v13 = vld [vmem:[%s5292_s26 + $0x8cc] sm:$0xff]  ;;  %567 = vst [vmem:[%s5288_s25 + $0x478] sm:$0xff] %v566_v11  ;;  %v576_v16 = vld [vmem:[%s5292_s26 + $0x978] sm:$0xff] }
  0xb1   : >> { %569 = vst [vmem:[%s5288_s25 + $0x480] sm:$0xff] %v568_v12  ;;  %571 = vst [vmem:[%s5288_s25 + $0x488] sm:$0xff] %v570_v13  ;;  %v572_v14 = vld [vmem:[%s5292_s26 + $0x968] sm:$0xff]  ;;  %v574_v15 = vld [vmem:[%s5292_s26 + $0x970] sm:$0xff] }
  0xb2   : >> { %573 = vst [vmem:[%s5288_s25 + $0x4d0] sm:$0xff] %v572_v14  ;;  %575 = vst [vmem:[%s5288_s25 + $0x4d8] sm:$0xff] %v574_v15  ;;  %v578_v17 = vld [vmem:[%s5292_s26 + $0xa14] sm:$0xff]  ;;  %v580_v18 = vld [vmem:[%s5292_s26 + $0xa1c] sm:$0xff] }
  0xb3   : >> { %577 = vst [vmem:[%s5288_s25 + $0x4e0] sm:$0xff] %v576_v16  ;;  %v582_v19 = vld [vmem:[%s5292_s26 + $0xa24] sm:$0xff]  ;;  %579 = vst [vmem:[%s5288_s25 + $0x528] sm:$0xff] %v578_v17  ;;  %v588_v22 = vld [vmem:[%s5292_s26 + $0xad0] sm:$0xff] }
  0xb4   : >> { %581 = vst [vmem:[%s5288_s25 + $0x530] sm:$0xff] %v580_v18  ;;  %583 = vst [vmem:[%s5288_s25 + $0x538] sm:$0xff] %v582_v19  ;;  %v584_v20 = vld [vmem:[%s5292_s26 + $0xac0] sm:$0xff]  ;;  %v586_v21 = vld [vmem:[%s5292_s26 + $0xac8] sm:$0xff] }
  0xb5   : >> { %585 = vst [vmem:[%s5288_s25 + $0x580] sm:$0xff] %v584_v20  ;;  %587 = vst [vmem:[%s5288_s25 + $0x588] sm:$0xff] %v586_v21  ;;  %v590_v23 = vld [vmem:[%s5292_s26 + $0xb6c] sm:$0xff]  ;;  %v592_v24 = vld [vmem:[%s5292_s26 + $0xb74] sm:$0xff] }
  0xb6   : >> { %589 = vst [vmem:[%s5288_s25 + $0x590] sm:$0xff] %v588_v22  ;;  %v594_v25 = vld [vmem:[%s5292_s26 + $0xb7c] sm:$0xff]  ;;  %591 = vst [vmem:[%s5288_s25 + $0x5d8] sm:$0xff] %v590_v23  ;;  %v600_v28 = vld [vmem:[%s5292_s26 + $0xc28] sm:$0xff] }
  0xb7   : >> { %593 = vst [vmem:[%s5288_s25 + $0x5e0] sm:$0xff] %v592_v24  ;;  %595 = vst [vmem:[%s5288_s25 + $0x5e8] sm:$0xff] %v594_v25  ;;  %v596_v26 = vld [vmem:[%s5292_s26 + $0xc18] sm:$0xff]  ;;  %v598_v27 = vld [vmem:[%s5292_s26 + $0xc20] sm:$0xff] }
  0xb8   : >> { %597 = vst [vmem:[%s5288_s25 + $0x630] sm:$0xff] %v596_v26  ;;  %599 = vst [vmem:[%s5288_s25 + $0x638] sm:$0xff] %v598_v27  ;;  %v602_v29 = vld [vmem:[%s5292_s26 + $0xcc4] sm:$0xff]  ;;  %v604_v30 = vld [vmem:[%s5292_s26 + $0xccc] sm:$0xff] }
  0xb9   : >> { %601 = vst [vmem:[%s5288_s25 + $0x640] sm:$0xff] %v600_v28  ;;  %v606_v31 = vld [vmem:[%s5292_s26 + $0xcd4] sm:$0xff]  ;;  %603 = vst [vmem:[%s5288_s25 + $0x688] sm:$0xff] %v602_v29  ;;  %v612_v34 = vld [vmem:[%s5292_s26 + $0xd80] sm:$0xff] }
  0xba   : >> { %605 = vst [vmem:[%s5288_s25 + $0x690] sm:$0xff] %v604_v30  ;;  %607 = vst [vmem:[%s5288_s25 + $0x698] sm:$0xff] %v606_v31  ;;  %v608_v32 = vld [vmem:[%s5292_s26 + $0xd70] sm:$0xff]  ;;  %v610_v33 = vld [vmem:[%s5292_s26 + $0xd78] sm:$0xff] }
  0xbb   : >> { %609 = vst [vmem:[%s5288_s25 + $0x6e0] sm:$0xff] %v608_v32  ;;  %611 = vst [vmem:[%s5288_s25 + $0x6e8] sm:$0xff] %v610_v33  ;;  %v614_v35 = vld [vmem:[%s5292_s26 + $0xe1c] sm:$0xff]  ;;  %v616_v36 = vld [vmem:[%s5292_s26 + $0xe24] sm:$0xff] }
  0xbc   : >> { %613 = vst [vmem:[%s5288_s25 + $0x6f0] sm:$0xff] %v612_v34  ;;  %v618_v37 = vld [vmem:[%s5292_s26 + $0xe2c] sm:$0xff]  ;;  %615 = vst [vmem:[%s5288_s25 + $0x738] sm:$0xff] %v614_v35  ;;  %v624_v40 = vld [vmem:[%s5292_s26 + $0xed8] sm:$0xff]  ;;  %484 = sbr.rel (!%p481_p7) target bundleno = 156 (0x9c), region = 257 }
  0xbd   : >> { %617 = vst [vmem:[%s5288_s25 + $0x740] sm:$0xff] %v616_v36  ;;  %619 = vst [vmem:[%s5288_s25 + $0x748] sm:$0xff] %v618_v37  ;;  %v620_v38 = vld [vmem:[%s5292_s26 + $0xec8] sm:$0xff]  ;;  %v622_v39 = vld [vmem:[%s5292_s26 + $0xed0] sm:$0xff] }
  0xbe   : >> { %621 = vst [vmem:[%s5288_s25 + $0x790] sm:$0xff] %v620_v38  ;;  %623 = vst [vmem:[%s5288_s25 + $0x798] sm:$0xff] %v622_v39  ;;  %v626_v41 = vld [vmem:[%s5292_s26 + $0xf74] sm:$0xff]  ;;  %v628_v42 = vld [vmem:[%s5292_s26 + $0xf7c] sm:$0xff] }
  0xbf   : >> { %625 = vst [vmem:[%s5288_s25 + $0x7a0] sm:$0xff] %v624_v40  ;;  %v630_v43 = vld [vmem:[%s5292_s26 + $0xf84] sm:$0xff]  ;;  %627 = vst [vmem:[%s5288_s25 + $0x7e8] sm:$0xff] %v626_v41  ;;  %v636_v46 = vld [vmem:[%s5292_s26 + $0x1030] sm:$0xff] }
  0xc0   : >> { %629 = vst [vmem:[%s5288_s25 + $0x7f0] sm:$0xff] %v628_v42  ;;  %631 = vst [vmem:[%s5288_s25 + $0x7f8] sm:$0xff] %v630_v43  ;;  %v632_v44 = vld [vmem:[%s5292_s26 + $0x1020] sm:$0xff]  ;;  %v634_v45 = vld [vmem:[%s5292_s26 + $0x1028] sm:$0xff]  ;;  %s7138_s26 = smov %s5845_s6 }
  0xc1   : >> { %633 = vst [vmem:[%s5288_s25 + $0x840] sm:$0xff] %v632_v44  ;;  %635 = vst [vmem:[%s5288_s25 + $0x848] sm:$0xff] %v634_v45 }
  0xc2   : >> { %637 = vst [vmem:[%s5288_s25 + $0x850] sm:$0xff] %v636_v46  ;;  %s7137_s25 = smov %s5848_s7 }
  0xc3 PF: > { %4676 = sdivrem.u32 %s474_s21, 3 }
  0xc4   : > { %s3986_s10 = smul.u32 384, %s5772_s24 }
  0xc6   : > { %s649_s11 = sshra.s32 %s3986_s10, 4 }
  0xc7   : > { %s5972_s17 = scalar_lea.vmem %s5449_s28, %s649_s11   ;;  %s5975_s18 = scalar_lea.vmem %s5453_s4, %s649_s11 [#allocation2]  }
  0xcc   : > { %s5977_s9 = spop.drf %4676 }
  0xcd   : > { %p3988_p8 = scmp.le.s32.totalorder %s5977_s9, 0 }
  0xce   : > { %s7140_s25 = smov (!%p3988_p8), %s5975_s18  ;;  %s7141_s26 = smov (!%p3988_p8), %s5972_s17 }
  0xcf   : > { %3885 = sbr.rel (%p3988_p8) target bundleno = 228 (0xe4), region = 262  ;;  %s5986_s27 = smov (!%p3988_p8), 0  }
  0xd0   : > { %s5988_s21 = smov (!%p3988_p8), 0  }
  0xd6 LB: >> { %v665_v47 = vld [vmem:[%s5308_s26] sm:$0xff]  ;;  %v667_v48 = vld [vmem:[%s5308_s26 + $0xac] sm:$0xff]  ;;  %v669_v49 = vld [vmem:[%s5308_s26 + $0x158] sm:$0xff]  ;;  %s715_s24 = sadd.s32 1, %s5312_s27  ;;  %s659_s21 = sadd.s32 1, %s5316_s21   ;;  %s5316_s21 = sphi %s5988_s21, %s659_s21   ;;  %s5312_s27 = sphi %s5986_s27, %s7144_s27   ;;  %s5308_s26 = sphi %s7141_s26, %s7143_s26   ;;  %s5304_s25 = sphi %s7140_s25, %s7142_s25  }
  0xd7   : >> { %666 = vst [vmem:[%s5304_s25] sm:$0xff] %v665_v47  ;;  %668 = vst [vmem:[%s5304_s25 + $0x58] sm:$0xff] %v667_v48  ;;  %v671_v50 = vld [vmem:[%s5308_s26 + $0x204] sm:$0xff]  ;;  %v673_v51 = vld [vmem:[%s5308_s26 + $0x2b0] sm:$0xff]  ;;  %p716_p9 = scmp.ge.s32.totalorder %s715_s24, %s5977_s9  ;;  %p658_p10 = scmp.ge.s32.totalorder %s659_s21, %s5977_s9 }
  0xd8   : >> { %670 = vst [vmem:[%s5304_s25 + $0xb0] sm:$0xff] %v669_v49  ;;  %v675_v52 = vld [vmem:[%s5308_s26 + $0x35c] sm:$0xff]  ;;  %672 = vst [vmem:[%s5304_s25 + $0x108] sm:$0xff] %v671_v50  ;;  %v677_v53 = vld [vmem:[%s5308_s26 + $0x408] sm:$0xff] }
  0xd9   : >> { %674 = vst [vmem:[%s5304_s25 + $0x160] sm:$0xff] %v673_v51  ;;  %676 = vst [vmem:[%s5304_s25 + $0x1b8] sm:$0xff] %v675_v52  ;;  %v679_v54 = vld [vmem:[%s5308_s26 + $0x4b4] sm:$0xff]  ;;  %v681_v55 = vld [vmem:[%s5308_s26 + $0x560] sm:$0xff]  ;;  %s7169_s24 = smov (%p716_p9, %s715_s24), 0 }
  0xda   : >> { %678 = vst [vmem:[%s5304_s25 + $0x210] sm:$0xff] %v677_v53  ;;  %680 = vst [vmem:[%s5304_s25 + $0x268] sm:$0xff] %v679_v54  ;;  %v683_v56 = vld [vmem:[%s5308_s26 + $0x60c] sm:$0xff]  ;;  %v685_v57 = vld [vmem:[%s5308_s26 + $0x6b8] sm:$0xff]  ;;  %s3989_s29 = sshll.u32 %s7169_s24, 3  ;;  %s7144_s27 = smov %s7169_s24 }
  0xdb   : >> { %682 = vst [vmem:[%s5304_s25 + $0x2c0] sm:$0xff] %v681_v55  ;;  %v687_v58 = vld [vmem:[%s5308_s26 + $0x764] sm:$0xff]  ;;  %684 = vst [vmem:[%s5304_s25 + $0x318] sm:$0xff] %v683_v56  ;;  %v689_v59 = vld [vmem:[%s5308_s26 + $0x810] sm:$0xff]  ;;  %s720_s8 = scalar_lea.vmem %s5972_s17, %s3989_s29   ;;  %s721_s6 = scalar_lea.vmem %s5975_s18, %s3989_s29 [#allocation2]  }
  0xdc   : >> { %686 = vst [vmem:[%s5304_s25 + $0x370] sm:$0xff] %v685_v57  ;;  %688 = vst [vmem:[%s5304_s25 + $0x3c8] sm:$0xff] %v687_v58  ;;  %v691_v60 = vld [vmem:[%s5308_s26 + $0x8bc] sm:$0xff]  ;;  %v693_v61 = vld [vmem:[%s5308_s26 + $0x968] sm:$0xff] }
  0xdd   : >> { %690 = vst [vmem:[%s5304_s25 + $0x420] sm:$0xff] %v689_v59  ;;  %692 = vst [vmem:[%s5304_s25 + $0x478] sm:$0xff] %v691_v60  ;;  %v695_v62 = vld [vmem:[%s5308_s26 + $0xa14] sm:$0xff]  ;;  %v697_v63 = vld [vmem:[%s5308_s26 + $0xac0] sm:$0xff]  ;;  %661 = sbr.rel (!%p658_p10) target bundleno = 214 (0xd6), region = 268 }
  0xde   : >> { %694 = vst [vmem:[%s5304_s25 + $0x4d0] sm:$0xff] %v693_v61  ;;  %v699_v0 = vld [vmem:[%s5308_s26 + $0xb6c] sm:$0xff]  ;;  %696 = vst [vmem:[%s5304_s25 + $0x528] sm:$0xff] %v695_v62  ;;  %v701_v1 = vld [vmem:[%s5308_s26 + $0xc18] sm:$0xff] }
  0xdf   : >> { %698 = vst [vmem:[%s5304_s25 + $0x580] sm:$0xff] %v697_v63  ;;  %700 = vst [vmem:[%s5304_s25 + $0x5d8] sm:$0xff] %v699_v0  ;;  %v703_v2 = vld [vmem:[%s5308_s26 + $0xcc4] sm:$0xff]  ;;  %v705_v3 = vld [vmem:[%s5308_s26 + $0xd70] sm:$0xff] }
  0xe0   : >> { %702 = vst [vmem:[%s5304_s25 + $0x630] sm:$0xff] %v701_v1  ;;  %704 = vst [vmem:[%s5304_s25 + $0x688] sm:$0xff] %v703_v2  ;;  %v707_v4 = vld [vmem:[%s5308_s26 + $0xe1c] sm:$0xff]  ;;  %v709_v5 = vld [vmem:[%s5308_s26 + $0xec8] sm:$0xff] }
  0xe1   : >> { %706 = vst [vmem:[%s5304_s25 + $0x6e0] sm:$0xff] %v705_v3  ;;  %v711_v6 = vld [vmem:[%s5308_s26 + $0xf74] sm:$0xff]  ;;  %708 = vst [vmem:[%s5304_s25 + $0x738] sm:$0xff] %v707_v4  ;;  %v713_v7 = vld [vmem:[%s5308_s26 + $0x1020] sm:$0xff]  ;;  %s7143_s26 = smov %s720_s8 }
  0xe2   : >> { %710 = vst [vmem:[%s5304_s25 + $0x790] sm:$0xff] %v709_v5  ;;  %712 = vst [vmem:[%s5304_s25 + $0x7e8] sm:$0xff] %v711_v6 }
  0xe3   : >> { %714 = vst [vmem:[%s5304_s25 + $0x840] sm:$0xff] %v713_v7  ;;  %s7142_s25 = smov %s721_s6 }
  0xe4 PF: > { %s5382_s7 = smov 0  }
  0xe5   : > { %s6068_s10 = sshllo.u32 %s5382_s7, %s5457_s5 }
  0xe6   : > { %v731_v8 = vld [vmem:[%s5765_s22] sm:%s6068_s10]  ;;  %v733_v9 = vld [vmem:[%s5765_s22 + $0xac] sm:%s6068_s10] }
  0xe7   : > { %732 = vst [vmem:[%s5768_s23] sm:%s6068_s10] %v731_v8  ;;  %734 = vst [vmem:[%s5768_s23 + $0x58] sm:%s6068_s10] %v733_v9 }
  0xe8   : > { %v735_v10 = vld [vmem:[%s5765_s22 + $0x158] sm:%s6068_s10]  ;;  %v737_v11 = vld [vmem:[%s5765_s22 + $0x204] sm:%s6068_s10] }
  0xe9   : > { %736 = vst [vmem:[%s5768_s23 + $0xb0] sm:%s6068_s10] %v735_v10  ;;  %738 = vst [vmem:[%s5768_s23 + $0x108] sm:%s6068_s10] %v737_v11 }
  0xea   : > { %v739_v12 = vld [vmem:[%s5765_s22 + $0x2b0] sm:%s6068_s10]  ;;  %v741_v13 = vld [vmem:[%s5765_s22 + $0x35c] sm:%s6068_s10] }
  0xeb   : > { %740 = vst [vmem:[%s5768_s23 + $0x160] sm:%s6068_s10] %v739_v12  ;;  %742 = vst [vmem:[%s5768_s23 + $0x1b8] sm:%s6068_s10] %v741_v13 }
  0xec   : > { %v743_v14 = vld [vmem:[%s5765_s22 + $0x408] sm:%s6068_s10]  ;;  %v745_v15 = vld [vmem:[%s5765_s22 + $0x4b4] sm:%s6068_s10] }
  0xed   : > { %744 = vst [vmem:[%s5768_s23 + $0x210] sm:%s6068_s10] %v743_v14  ;;  %746 = vst [vmem:[%s5768_s23 + $0x268] sm:%s6068_s10] %v745_v15 }
  0xee   : > { %v747_v16 = vld [vmem:[%s5765_s22 + $0x560] sm:%s6068_s10]  ;;  %v749_v17 = vld [vmem:[%s5765_s22 + $0x60c] sm:%s6068_s10] }
  0xef   : > { %748 = vst [vmem:[%s5768_s23 + $0x2c0] sm:%s6068_s10] %v747_v16  ;;  %750 = vst [vmem:[%s5768_s23 + $0x318] sm:%s6068_s10] %v749_v17 }
  0xf0   : > { %v751_v18 = vld [vmem:[%s5765_s22 + $0x6b8] sm:%s6068_s10]  ;;  %v753_v19 = vld [vmem:[%s5765_s22 + $0x764] sm:%s6068_s10] }
  0xf1   : > { %752 = vst [vmem:[%s5768_s23 + $0x370] sm:%s6068_s10] %v751_v18  ;;  %754 = vst [vmem:[%s5768_s23 + $0x3c8] sm:%s6068_s10] %v753_v19 }
  0xf2   : > { %v755_v20 = vld [vmem:[%s5765_s22 + $0x810] sm:%s6068_s10]  ;;  %v757_v21 = vld [vmem:[%s5765_s22 + $0x8bc] sm:%s6068_s10] }
  0xf3   : > { %756 = vst [vmem:[%s5768_s23 + $0x420] sm:%s6068_s10] %v755_v20  ;;  %758 = vst [vmem:[%s5768_s23 + $0x478] sm:%s6068_s10] %v757_v21 }
  0xf4   : > { %v759_v22 = vld [vmem:[%s5765_s22 + $0x968] sm:%s6068_s10]  ;;  %v761_v23 = vld [vmem:[%s5765_s22 + $0xa14] sm:%s6068_s10] }
  0xf5   : > { %760 = vst [vmem:[%s5768_s23 + $0x4d0] sm:%s6068_s10] %v759_v22  ;;  %762 = vst [vmem:[%s5768_s23 + $0x528] sm:%s6068_s10] %v761_v23 }
  0xf6   : > { %v763_v24 = vld [vmem:[%s5765_s22 + $0xac0] sm:%s6068_s10]  ;;  %v765_v25 = vld [vmem:[%s5765_s22 + $0xb6c] sm:%s6068_s10] }
  0xf7   : > { %764 = vst [vmem:[%s5768_s23 + $0x580] sm:%s6068_s10] %v763_v24  ;;  %766 = vst [vmem:[%s5768_s23 + $0x5d8] sm:%s6068_s10] %v765_v25 }
  0xf8   : > { %v767_v26 = vld [vmem:[%s5765_s22 + $0xc18] sm:%s6068_s10]  ;;  %v769_v27 = vld [vmem:[%s5765_s22 + $0xcc4] sm:%s6068_s10] }
  0xf9   : > { %768 = vst [vmem:[%s5768_s23 + $0x630] sm:%s6068_s10] %v767_v26  ;;  %770 = vst [vmem:[%s5768_s23 + $0x688] sm:%s6068_s10] %v769_v27 }
  0xfa   : > { %v771_v28 = vld [vmem:[%s5765_s22 + $0xd70] sm:%s6068_s10]  ;;  %v773_v29 = vld [vmem:[%s5765_s22 + $0xe1c] sm:%s6068_s10] }
  0xfb   : > { %772 = vst [vmem:[%s5768_s23 + $0x6e0] sm:%s6068_s10] %v771_v28  ;;  %774 = vst [vmem:[%s5768_s23 + $0x738] sm:%s6068_s10] %v773_v29 }
  0xfc   : > { %v775_v30 = vld [vmem:[%s5765_s22 + $0xec8] sm:%s6068_s10]  ;;  %v777_v31 = vld [vmem:[%s5765_s22 + $0xf74] sm:%s6068_s10] }
  0xfd   : > { %776 = vst [vmem:[%s5768_s23 + $0x790] sm:%s6068_s10] %v775_v30  ;;  %778 = vst [vmem:[%s5768_s23 + $0x7e8] sm:%s6068_s10] %v777_v31 }
  0xfe   : > { %v779_v32 = vld [vmem:[%s5765_s22 + $0x1020] sm:%s6068_s10] }
  0xff   : > { %780 = vst [vmem:[%s5768_s23 + $0x840] sm:%s6068_s10] %v779_v32 }
 0x100 PF: > { %p3991_p11 = scmp.ge.u32.totalorder %s5451_s30, 8 }
 0x101   : > { %s5383_s5 = smov (!%p3991_p11), 0  }
 0x102   : > { %153 = sbr.rel (%p3991_p11) target bundleno = 285 (0x11d), region = 40  ;;  %s6172_s22 = sshllo.u32 (!%p3991_p11), %s5383_s5, %s5451_s30 }
 0x103   : > { %v163_v33 = vld [vmem:[%s5449_s28] sm:%s6172_s22] (!%p3991_p11)  ;;  %v165_v34 = vld [vmem:[%s5449_s28 + $0xac] sm:%s6172_s22] (!%p3991_p11) }
 0x104   : > { %164 = vst [vmem:[%s5453_s4] sm:%s6172_s22] (!%p3991_p11), %v163_v33  ;;  %166 = vst [vmem:[%s5453_s4 + $0x58] sm:%s6172_s22] (!%p3991_p11), %v165_v34 }
 0x105   : > { %v167_v35 = vld [vmem:[%s5449_s28 + $0x158] sm:%s6172_s22] (!%p3991_p11)  ;;  %v169_v36 = vld [vmem:[%s5449_s28 + $0x204] sm:%s6172_s22] (!%p3991_p11) }
 0x106   : > { %168 = vst [vmem:[%s5453_s4 + $0xb0] sm:%s6172_s22] (!%p3991_p11), %v167_v35  ;;  %170 = vst [vmem:[%s5453_s4 + $0x108] sm:%s6172_s22] (!%p3991_p11), %v169_v36 }
 0x107   : > { %v171_v37 = vld [vmem:[%s5449_s28 + $0x2b0] sm:%s6172_s22] (!%p3991_p11)  ;;  %v173_v38 = vld [vmem:[%s5449_s28 + $0x35c] sm:%s6172_s22] (!%p3991_p11) }
 0x108   : > { %172 = vst [vmem:[%s5453_s4 + $0x160] sm:%s6172_s22] (!%p3991_p11), %v171_v37  ;;  %174 = vst [vmem:[%s5453_s4 + $0x1b8] sm:%s6172_s22] (!%p3991_p11), %v173_v38 }
 0x109   : > { %v175_v39 = vld [vmem:[%s5449_s28 + $0x408] sm:%s6172_s22]  ;;  %v177_v40 = vld [vmem:[%s5449_s28 + $0x4b4] sm:%s6172_s22] }
 0x10a   : > { %176 = vst [vmem:[%s5453_s4 + $0x210] sm:%s6172_s22] %v175_v39  ;;  %178 = vst [vmem:[%s5453_s4 + $0x268] sm:%s6172_s22] %v177_v40 }
 0x10b   : > { %v179_v41 = vld [vmem:[%s5449_s28 + $0x560] sm:%s6172_s22]  ;;  %v181_v42 = vld [vmem:[%s5449_s28 + $0x60c] sm:%s6172_s22] }
 0x10c   : > { %180 = vst [vmem:[%s5453_s4 + $0x2c0] sm:%s6172_s22] %v179_v41  ;;  %182 = vst [vmem:[%s5453_s4 + $0x318] sm:%s6172_s22] %v181_v42 }
 0x10d   : > { %v183_v43 = vld [vmem:[%s5449_s28 + $0x6b8] sm:%s6172_s22]  ;;  %v185_v44 = vld [vmem:[%s5449_s28 + $0x764] sm:%s6172_s22] }
 0x10e   : > { %184 = vst [vmem:[%s5453_s4 + $0x370] sm:%s6172_s22] %v183_v43  ;;  %186 = vst [vmem:[%s5453_s4 + $0x3c8] sm:%s6172_s22] %v185_v44 }
 0x10f   : > { %v187_v45 = vld [vmem:[%s5449_s28 + $0x810] sm:%s6172_s22]  ;;  %v189_v46 = vld [vmem:[%s5449_s28 + $0x8bc] sm:%s6172_s22] }
 0x110   : > { %188 = vst [vmem:[%s5453_s4 + $0x420] sm:%s6172_s22] %v187_v45  ;;  %190 = vst [vmem:[%s5453_s4 + $0x478] sm:%s6172_s22] %v189_v46 }
 0x111   : > { %v191_v47 = vld [vmem:[%s5449_s28 + $0x968] sm:%s6172_s22]  ;;  %v193_v48 = vld [vmem:[%s5449_s28 + $0xa14] sm:%s6172_s22] }
 0x112   : > { %192 = vst [vmem:[%s5453_s4 + $0x4d0] sm:%s6172_s22] %v191_v47  ;;  %194 = vst [vmem:[%s5453_s4 + $0x528] sm:%s6172_s22] %v193_v48 }
 0x113   : > { %v195_v49 = vld [vmem:[%s5449_s28 + $0xac0] sm:%s6172_s22]  ;;  %v197_v50 = vld [vmem:[%s5449_s28 + $0xb6c] sm:%s6172_s22] }
 0x114   : > { %196 = vst [vmem:[%s5453_s4 + $0x580] sm:%s6172_s22] %v195_v49  ;;  %198 = vst [vmem:[%s5453_s4 + $0x5d8] sm:%s6172_s22] %v197_v50 }
 0x115   : > { %v199_v51 = vld [vmem:[%s5449_s28 + $0xc18] sm:%s6172_s22]  ;;  %v201_v52 = vld [vmem:[%s5449_s28 + $0xcc4] sm:%s6172_s22] }
 0x116   : > { %200 = vst [vmem:[%s5453_s4 + $0x630] sm:%s6172_s22] %v199_v51  ;;  %202 = vst [vmem:[%s5453_s4 + $0x688] sm:%s6172_s22] %v201_v52 }
 0x117   : > { %v203_v53 = vld [vmem:[%s5449_s28 + $0xd70] sm:%s6172_s22]  ;;  %v205_v54 = vld [vmem:[%s5449_s28 + $0xe1c] sm:%s6172_s22] }
 0x118   : > { %204 = vst [vmem:[%s5453_s4 + $0x6e0] sm:%s6172_s22] %v203_v53  ;;  %206 = vst [vmem:[%s5453_s4 + $0x738] sm:%s6172_s22] %v205_v54 }
 0x119   : > { %v207_v55 = vld [vmem:[%s5449_s28 + $0xec8] sm:%s6172_s22]  ;;  %v209_v56 = vld [vmem:[%s5449_s28 + $0xf74] sm:%s6172_s22] }
 0x11a   : > { %208 = vst [vmem:[%s5453_s4 + $0x790] sm:%s6172_s22] %v207_v55  ;;  %210 = vst [vmem:[%s5453_s4 + $0x7e8] sm:%s6172_s22] %v209_v56 }
 0x11b   : > { %v211_v57 = vld [vmem:[%s5449_s28 + $0x1020] sm:%s6172_s22] }
 0x11c   : > { %212 = vst [vmem:[%s5453_s4 + $0x840] sm:%s6172_s22] %v211_v57 }
 0x11d PF: > { %p3992_p12 = scmp.ge.s32.totalorder %s5252_s14, 1  ;;  %p783_p13 = scmp.lt.s32.totalorder %s5252_s14, 3 }
 0x11f   : > { %p784_p0 = pnand %p3992_p12, %p783_p13 }
 0x120   : > { %s790_s30 = sand.u32 (!%p784_p0), 1, %s5244_s12   ;;  %v6280_v58 = vld [vmem:[%s7120_s0 + $0x4] ss:$8 sps:$4 sm:$0xff] (!%p784_p0)   ;;  %vm2496_vm0 = vcmask (!%p784_p0), 556032   ;;  %v5384_v0 = vmov (!%p784_p0), 0   ;;  %vm2500_vm1 = vcmask (!%p784_p0), 1041408  }
 0x121   : > { %787 = sbr.rel (%p784_p0) target bundleno = 994 (0x3e2), region = 94  ;;  %4282 = vmatprep.mubr.msk.bf16.mxu0 (!%p784_p0), %vm2496_vm0, %v6280_v58  ;;  %4284 = vmatprep.mubr.msk.bf16.mxu1 (!%p784_p0), %vm2496_vm0, %v6280_v58  ;;  %v6340_v44 = vld [vmem:[%s7120_s0] ss:$8 sps:$4 sm:$0xff] (!%p784_p0)  }
 0x122   : > { %s4381_s28 = smul.u32 (!%p784_p0), 2200, %s790_s30  ;;  %4678 = vset.pattern.permute.xlu0 (!%p784_p0), %v5384_v0 }
 0x123   : > { %s6617_s8 = smul.u32 (!%p784_p0), 176, %s790_s30 }
 0x124   : > { %s6288_s14 = scalar_lea.vmem (!%p784_p0), [#allocation2], %s4381_s28 }
 0x125   : > { %v4679_v59 = vld [vmem:[%s6288_s14 + $0x4] ss:$88 sps:$4 sm:$0xff] (!%p784_p0)   ;;  %v4681_v60 = vld [vmem:[%s6288_s14] ss:$88 sps:$4 sm:$0xff] (!%p784_p0)   ;;  %v4682_v61 = vld [vmem:[%s6288_s14 + $0xb4] ss:$88 sps:$4 sm:$0xff] (!%p784_p0)  }
 0x126   : > { %2567 = vmatprep.subr.bf16.mxu0 (!%p784_p0), %v4679_v59  ;;  %v4684_v62 = vld [vmem:[%s6288_s14 + $0xb0] ss:$88 sps:$4 sm:$0xff] (!%p784_p0)   ;;  %v4685_v63 = vld [vmem:[%s6288_s14 + $0x164] ss:$88 sps:$4 sm:$0xff] (!%p784_p0)   ;;  %v4687_v1 = vld [vmem:[%s6288_s14 + $0x160] ss:$88 sps:$4 sm:$0xff] (!%p784_p0)  }
 0x127   : > { %2568 = vmatpush1.bf16.msra.mxu0 (!%p784_p0), %v4681_v60  ;;  %v4688_v2 = vld [vmem:[%s6288_s14 + $0x214] ss:$88 sps:$4 sm:$0xff] (!%p784_p0)   ;;  %v4690_v3 = vld [vmem:[%s6288_s14 + $0x210] ss:$88 sps:$4 sm:$0xff] (!%p784_p0)   ;;  %v4691_v4 = vld [vmem:[%s6288_s14 + $0x2c4] ss:$88 sps:$4 sm:$0xff] (!%p784_p0)  }
 0x128   : > { %2569 = vmatprep.subr.bf16.mxu0 %v4682_v61  ;;  %v4693_v5 = vld [vmem:[%s6288_s14 + $0x2c0] ss:$88 sps:$4 sm:$0xff]   ;;  %v4694_v6 = vld [vmem:[%s6288_s14 + $0x374] ss:$88 sps:$4 sm:$0xff]   ;;  %v4696_v9 = vld [vmem:[%s6288_s14 + $0x370] ss:$88 sps:$4 sm:$0xff]  }
 0x129   : > { %v4715_v7 = vld [vmem:[%s6288_s14 + $0xc] ss:$88 sps:$4 sm:$0xff]   ;;  %v4717_v8 = vld [vmem:[%s6288_s14 + $0x8] ss:$88 sps:$4 sm:$0xff]   ;;  %v4720_v10 = vld [vmem:[%s6288_s14 + $0xbc] ss:$88 sps:$4 sm:$0xff]  }
 0x12a   : > { %2610 = vmatprep.subr.bf16.mxu1 %v4715_v7  ;;  %v4724_v11 = vld [vmem:[%s6288_s14 + $0xb8] ss:$88 sps:$4 sm:$0xff]   ;;  %v4697_v12 = vld [vmem:[%s6288_s14 + $0x424] ss:$88 sps:$4 sm:$0xff]   ;;  %v4700_v15 = vld [vmem:[%s6288_s14 + $0x4d4] ss:$88 sps:$4 sm:$0xff]  }
 0x12b   : > { %2570 = vmatpush1.bf16.msra.mxu0 %v4684_v62  ;;  %2611 = vmatpush1.bf16.msra.mxu1 %v4717_v8  ;;  %v4729_v13 = vld [vmem:[%s6288_s14 + $0x16c] ss:$88 sps:$4 sm:$0xff]   ;;  %v4699_v14 = vld [vmem:[%s6288_s14 + $0x420] ss:$88 sps:$4 sm:$0xff]   ;;  %v4735_v17 = vld [vmem:[%s6288_s14 + $0x21c] ss:$88 sps:$4 sm:$0xff]  }
 0x12c   : > { %2571 = vmatprep.subr.bf16.mxu0 %v4685_v63  ;;  %2612 = vmatprep.subr.bf16.mxu1 %v4720_v10  ;;  %v4731_v16 = vld [vmem:[%s6288_s14 + $0x168] ss:$88 sps:$4 sm:$0xff]   ;;  %v4703_v19 = vld [vmem:[%s6288_s14 + $0x584] ss:$88 sps:$4 sm:$0xff]   ;;  %v4737_v20 = vld [vmem:[%s6288_s14 + $0x218] ss:$88 sps:$4 sm:$0xff]  }
 0x12d   : > { %v4702_v18 = vld [vmem:[%s6288_s14 + $0x4d0] ss:$88 sps:$4 sm:$0xff]   ;;  %v4741_v21 = vld [vmem:[%s6288_s14 + $0x2cc] ss:$88 sps:$4 sm:$0xff]   ;;  %v4705_v22 = vld [vmem:[%s6288_s14 + $0x580] ss:$88 sps:$4 sm:$0xff]  }
 0x12e   : > { %v4706_v23 = vld [vmem:[%s6288_s14 + $0x634] ss:$88 sps:$4 sm:$0xff]   ;;  %v4743_v24 = vld [vmem:[%s6288_s14 + $0x2c8] ss:$88 sps:$4 sm:$0xff]   ;;  %v4709_v27 = vld [vmem:[%s6288_s14 + $0x6e4] ss:$88 sps:$4 sm:$0xff]  }
 0x12f   : > { %2572 = vmatpush1.bf16.msra.mxu0 %v4687_v1  ;;  %2613 = vmatpush1.bf16.msra.mxu1 %v4724_v11  ;;  %v4747_v25 = vld [vmem:[%s6288_s14 + $0x37c] ss:$88 sps:$4 sm:$0xff]   ;;  %v4708_v26 = vld [vmem:[%s6288_s14 + $0x630] ss:$88 sps:$4 sm:$0xff]   ;;  %v4753_v29 = vld [vmem:[%s6288_s14 + $0x42c] ss:$88 sps:$4 sm:$0xff]  }
 0x130   : > { %2573 = vmatprep.subr.bf16.mxu0 %v4688_v2  ;;  %2614 = vmatprep.subr.bf16.mxu1 %v4729_v13  ;;  %v4749_v28 = vld [vmem:[%s6288_s14 + $0x378] ss:$88 sps:$4 sm:$0xff]   ;;  %v4712_v31 = vld [vmem:[%s6288_s14 + $0x794] ss:$88 sps:$4 sm:$0xff]   ;;  %v4755_v32 = vld [vmem:[%s6288_s14 + $0x428] ss:$88 sps:$4 sm:$0xff]  }
 0x131   : > { %v4711_v30 = vld [vmem:[%s6288_s14 + $0x6e0] ss:$88 sps:$4 sm:$0xff]   ;;  %v4759_v33 = vld [vmem:[%s6288_s14 + $0x4dc] ss:$88 sps:$4 sm:$0xff]   ;;  %v4714_v35 = vld [vmem:[%s6288_s14 + $0x790] ss:$88 sps:$4 sm:$0xff]  }
 0x132   : > { %v1089_v34 = vld [vmem:[%s6288_s14 + $0x840] sm:$0x33]  ;;  %v4761_v36 = vld [vmem:[%s6288_s14 + $0x4d8] ss:$88 sps:$4 sm:$0xff]   ;;  %v4728_v42 = vld [vmem:[%s6288_s14 + $0x14] ss:$88 sps:$4 sm:$0xff]  }
 0x133   : > { %2574 = vmatpush1.bf16.msra.mxu0 %v4690_v3  ;;  %2615 = vmatpush1.bf16.msra.mxu1 %v4731_v16  ;;  %v4260_v37 = vcombine.high %v1089_v34, %v1089_v34  ;;  %v4259_v38 = vcombine.low %v1089_v34, %v1089_v34  ;;  %v4765_v39 = vld [vmem:[%s6288_s14 + $0x58c] ss:$88 sps:$4 sm:$0xff]   ;;  %v4767_v40 = vld [vmem:[%s6288_s14 + $0x588] ss:$88 sps:$4 sm:$0xff]   ;;  %v4771_v43 = vld [vmem:[%s6288_s14 + $0x63c] ss:$88 sps:$4 sm:$0xff]  }
 0x134   : > { %2575 = vmatprep.subr.bf16.mxu0 %v4691_v4  ;;  %2616 = vmatprep.subr.bf16.mxu1 %v4735_v17  ;;  %v4726_v45 = vld [vmem:[%s6288_s14 + $0x10] ss:$88 sps:$4 sm:$0xff]   ;;  %v4734_v47 = vld [vmem:[%s6288_s14 + $0xc4] ss:$88 sps:$4 sm:$0xff]   ;;  %v4732_v49 = vld [vmem:[%s6288_s14 + $0xc0] ss:$88 sps:$4 sm:$0xff]  }
 0x135   : > { %v2502_v41 = vsel %vm2500_vm1, %v4259_v38, 0  ;;  %v4773_v46 = vld [vmem:[%s6288_s14 + $0x638] ss:$88 sps:$4 sm:$0xff]   ;;  %v4777_v48 = vld [vmem:[%s6288_s14 + $0x6ec] ss:$88 sps:$4 sm:$0xff]   ;;  %s6630_s12 = scalar_lea.vmem [#allocation3], %s6617_s8  }
 0x136   : > { %v4779_v50 = vld [vmem:[%s6288_s14 + $0x6e8] ss:$88 sps:$4 sm:$0xff]   ;;  %v4740_v51 = vld [vmem:[%s6288_s14 + $0x174] ss:$88 sps:$4 sm:$0xff]   ;;  %v4785_v55 = vld [vmem:[%s6288_s14 + $0x798] ss:$88 sps:$4 sm:$0xff]  }
 0x137   : > { %2576 = vmatpush1.bf16.msra.mxu0 %v4693_v5  ;;  %2617 = vmatpush1.bf16.msra.mxu1 %v4737_v20  ;;  %v4783_v52 = vld [vmem:[%s6288_s14 + $0x79c] ss:$88 sps:$4 sm:$0xff]   ;;  %v1090_v53 = vld [vmem:[%s6288_s14 + $0x848] sm:$0x33]  ;;  %v4744_v60 = vld [vmem:[%s6288_s14 + $0x220] ss:$88 sps:$4 sm:$0xff]  }
 0x138   : > { %2577 = vmatprep.subr.bf16.mxu0 %v4694_v6  ;;  %2618 = vmatprep.subr.bf16.mxu1 %v4741_v21  ;;  %v4738_v54 = vld [vmem:[%s6288_s14 + $0x170] ss:$88 sps:$4 sm:$0xff]   ;;  %v4746_v56 = vld [vmem:[%s6288_s14 + $0x224] ss:$88 sps:$4 sm:$0xff]   ;;  %v4262_v57 = vcombine.high %v1090_v53, %v1090_v53  ;;  %v4261_v59 = vcombine.low %v1090_v53, %v1090_v53  ;;  %v4752_v61 = vld [vmem:[%s6288_s14 + $0x2d4] ss:$88 sps:$4 sm:$0xff]  }
 0x139   : > { %v4796_v63 = vld [vmem:[%s6288_s14 + $0x1c] ss:$88 sps:$4 sm:$0xff]   ;;  %v4750_v0 = vld [vmem:[%s6288_s14 + $0x2d0] ss:$88 sps:$4 sm:$0xff]   ;;  %v4801_v3 = vld [vmem:[%s6288_s14 + $0xcc] ss:$88 sps:$4 sm:$0xff]  }
 0x13a   : > { %v2508_v62 = vsel %vm2500_vm1, %v4261_v59, 0  ;;  %v4794_v1 = vld [vmem:[%s6288_s14 + $0x18] ss:$88 sps:$4 sm:$0xff]   ;;  %v4758_v2 = vld [vmem:[%s6288_s14 + $0x384] ss:$88 sps:$4 sm:$0xff]   ;;  %s3333_s6 = smul.u32 (%p5438_p5), 22, %s5423_s15 }
 0x13b   : > { %2578 = vmatpush1.bf16.msra.mxu0 %v4696_v9  ;;  %2619 = vmatpush1.bf16.msra.mxu1 %v4743_v24  ;;  %v4756_v4 = vld [vmem:[%s6288_s14 + $0x380] ss:$88 sps:$4 sm:$0xff]   ;;  %v4764_v5 = vld [vmem:[%s6288_s14 + $0x434] ss:$88 sps:$4 sm:$0xff]   ;;  %v4762_v9 = vld [vmem:[%s6288_s14 + $0x430] ss:$88 sps:$4 sm:$0xff]  }
 0x13c   : > { %2579 = vmatprep.subr.bf16.mxu0 %v4697_v12  ;;  %2620 = vmatprep.subr.bf16.mxu1 %v4747_v25  ;;  %v4799_v6 = vld [vmem:[%s6288_s14 + $0xc8] ss:$88 sps:$4 sm:$0xff]   ;;  %v4807_v8 = vld [vmem:[%s6288_s14 + $0x17c] ss:$88 sps:$4 sm:$0xff]   ;;  %v4805_v12 = vld [vmem:[%s6288_s14 + $0x178] ss:$88 sps:$4 sm:$0xff]  }
 0x13d   : > { %v1100_v7 = vld [vmem:[%s7121_s1] sm:$0xff]  ;;  %v1101_v11 = vld [vmem:[%s7121_s1 + $0x8] sm:$0xff]  ;;  %s4375_s7 = smul.u32 (%p5438_p5), 88, %s5423_s15  ;;  %s3334_s10 = ssub.s32 (%p5438_p5), 43, %s3333_s6 }
 0x13e   : > { %1104 = vperm.xlu0 %4678, %v1100_v7   ;;  %v4770_v10 = vld [vmem:[%s6288_s14 + $0x4e4] ss:$88 sps:$4 sm:$0xff]   ;;  %v4776_v16 = vld [vmem:[%s6288_s14 + $0x594] ss:$88 sps:$4 sm:$0xff]   ;;  %p3335_p1 = scmp.lt.s32.totalorder (%p5438_p5), %s3334_s10, 22 }
 0x13f   : > { %2580 = vmatpush1.bf16.msra.mxu0 %v4699_v14  ;;  %2621 = vmatpush1.bf16.msra.mxu1 %v4749_v28  ;;  %v4813_v13 = vld [vmem:[%s6288_s14 + $0x22c] ss:$88 sps:$4 sm:$0xff]   ;;  %v4768_v14 = vld [vmem:[%s6288_s14 + $0x4e0] ss:$88 sps:$4 sm:$0xff]   ;;  %v4819_v17 = vld [vmem:[%s6288_s14 + $0x2dc] ss:$88 sps:$4 sm:$0xff]   ;;  %s6721_s30 = scalar_lea.vmem (%p5438_p5), %s7123_s3, %s4375_s7  }
 0x140   : > { %2581 = vmatprep.subr.bf16.mxu0 %v4700_v15  ;;  %2622 = vmatprep.subr.bf16.mxu1 %v4753_v29  ;;  %v4811_v15 = vld [vmem:[%s6288_s14 + $0x228] ss:$88 sps:$4 sm:$0xff]   ;;  %v4782_v20 = vld [vmem:[%s6288_s14 + $0x644] ss:$88 sps:$4 sm:$0xff]   ;;  %v4788_v24 = vld [vmem:[%s6288_s14 + $0x6f4] ss:$88 sps:$4 sm:$0xff]  }
 0x141   : > { %v4825_v21 = vld [vmem:[%s6288_s14 + $0x38c] ss:$88 sps:$4 sm:$0xff]   ;;  %v4831_v25 = vld [vmem:[%s6288_s14 + $0x43c] ss:$88 sps:$4 sm:$0xff]  }
 0x142   : > { %1109 = vperm.xlu0 %4678, %v1101_v11   ;;  %v4793_v28 = vld [vmem:[%s6288_s14 + $0x7a4] ss:$88 sps:$4 sm:$0xff]   ;;  %v4850_v11 = vld [vmem:[%s6288_s14 + $0x5a0] ss:$88 sps:$4 sm:$0xff]  }
 0x143   : > { %2582 = vmatpush1.bf16.msra.mxu0 %v4702_v18  ;;  %2623 = vmatpush1.bf16.msra.mxu1 %v4755_v32  ;;  %v4774_v18 = vld [vmem:[%s6288_s14 + $0x590] ss:$88 sps:$4 sm:$0xff]   ;;  %v4837_v29 = vld [vmem:[%s6288_s14 + $0x4ec] ss:$88 sps:$4 sm:$0xff]   ;;  %v4889_v7 = vld [vmem:[%s6288_s14 + $0x23c] ss:$88 sps:$4 sm:$0xff]  }
 0x144   : > { %2583 = vmatprep.subr.bf16.mxu0 %v4703_v19  ;;  %2624 = vmatprep.subr.bf16.mxu1 %v4759_v33  ;;  %v4817_v19 = vld [vmem:[%s6288_s14 + $0x2d8] ss:$88 sps:$4 sm:$0xff]   ;;  %v4835_v32 = vld [vmem:[%s6288_s14 + $0x4e8] ss:$88 sps:$4 sm:$0xff]   ;;  %v4804_v38 = vld [vmem:[%s6288_s14 + $0x24] ss:$88 sps:$4 sm:$0xff]  }
 0x145   : > { %v4872_v59 = vld [vmem:[%s6288_s14 + $0x2c] ss:$88 sps:$4 sm:$0xff]  }
 0x147   : > { %2584 = vmatpush1.bf16.msra.mxu0 %v4705_v22  ;;  %2625 = vmatpush1.bf16.msra.mxu1 %v4761_v36  ;;  %v4780_v22 = vld [vmem:[%s6288_s14 + $0x640] ss:$88 sps:$4 sm:$0xff]  }
 0x148   : > { %2585 = vmatprep.subr.bf16.mxu0 %v4706_v23  ;;  %2626 = vmatprep.subr.bf16.mxu1 %v4765_v39  ;;  %v4823_v23 = vld [vmem:[%s6288_s14 + $0x388] ss:$88 sps:$4 sm:$0xff]   ;;  %v4841_v36 = vld [vmem:[%s6288_s14 + $0x598] ss:$88 sps:$4 sm:$0xff]   ;;  %v4849_v39 = vld [vmem:[%s6288_s14 + $0x64c] ss:$88 sps:$4 sm:$0xff]  }
 0x14b   : > { %2586 = vmatpush1.bf16.msra.mxu0 %v4708_v26  ;;  %2627 = vmatpush1.bf16.msra.mxu1 %v4767_v40  ;;  %v4786_v26 = vld [vmem:[%s6288_s14 + $0x6f0] ss:$88 sps:$4 sm:$0xff]   ;;  %v4802_v40 = vld [vmem:[%s6288_s14 + $0x20] ss:$88 sps:$4 sm:$0xff]  }
 0x14c   : > { %2587 = vmatprep.subr.bf16.mxu0 %v4709_v27  ;;  %2628 = vmatprep.subr.bf16.mxu1 %v4771_v43  ;;  %v4829_v27 = vld [vmem:[%s6288_s14 + $0x438] ss:$88 sps:$4 sm:$0xff]   ;;  %v4855_v43 = vld [vmem:[%s6288_s14 + $0x6fc] ss:$88 sps:$4 sm:$0xff]  }
 0x14f   : > { %2588 = vmatpush1.bf16.msra.mxu0 %v4711_v30  ;;  %2629 = vmatpush1.bf16.msra.mxu1 %v4773_v46  ;;  %v1091_v30 = vld [vmem:[%s6288_s14 + $0x850] sm:$0x33] }
 0x150   : > { %2589 = vmatprep.subr.bf16.mxu0 %v4712_v31  ;;  %2630 = vmatprep.subr.bf16.mxu1 %v4777_v48  ;;  %v4791_v31 = vld [vmem:[%s6288_s14 + $0x7a0] ss:$88 sps:$4 sm:$0xff]   ;;  %v4264_v33 = vcombine.high %v1091_v30, %v1091_v30  ;;  %v4263_v34 = vcombine.low %v1091_v30, %v1091_v30  ;;  %v4861_v48 = vld [vmem:[%s6288_s14 + $0x7ac] ss:$88 sps:$4 sm:$0xff]  }
 0x151   : > { %v4853_v46 = vld [vmem:[%s6288_s14 + $0x6f8] ss:$88 sps:$4 sm:$0xff]  }
 0x153   : > { %2590 = vmatpush1.bf16.msra.mxu0 %v4714_v35  ;;  %2631 = vmatpush1.bf16.msra.mxu1 %v4779_v50  ;;  %v4843_v35 = vld [vmem:[%s6288_s14 + $0x59c] ss:$88 sps:$4 sm:$0xff]   ;;  %v4814_v50 = vld [vmem:[%s6288_s14 + $0x180] ss:$88 sps:$4 sm:$0xff]  }
 0x154   : > { %4281 = vmatprep.subr.msk.bf16.mxu0 %vm2500_vm1, %v4260_v37  ;;  %2632 = vmatprep.subr.bf16.mxu1 %v4783_v52  ;;  %v2514_v37 = vsel %vm2500_vm1, %v4263_v34, 0  ;;  %v4822_v52 = vld [vmem:[%s6288_s14 + $0x234] ss:$88 sps:$4 sm:$0xff]   ;;  %v4923_v34 = vld [vmem:[%s6288_s14 + $0x658] ss:$88 sps:$4 sm:$0xff]  }
 0x157   : > { %2592 = vmatpush1.bf16.msra.mxu0 %v2502_v41  ;;  %2633 = vmatpush1.bf16.msra.mxu1 %v4785_v55  ;;  %v4847_v41 = vld [vmem:[%s6288_s14 + $0x648] ss:$88 sps:$4 sm:$0xff]  }
 0x158   : > { %2653 = vmatprep.subr.bf16.mxu0 %v4728_v42  ;;  %4283 = vmatprep.subr.msk.bf16.mxu1 %vm2500_vm1, %v4262_v57  ;;  %v4810_v42 = vld [vmem:[%s6288_s14 + $0xd4] ss:$88 sps:$4 sm:$0xff]   ;;  %v4820_v55 = vld [vmem:[%s6288_s14 + $0x230] ss:$88 sps:$4 sm:$0xff]  }
 0x15a   : > { %2600 = vmatmul.mubr.bf16.vlgmr.msra.gmra.mrb[0].mxu0 %v6340_v44 }
 0x15b   : > { %2654 = vmatpush1.bf16.msra.mxu0 %v4726_v45  ;;  %4286 = vmatprep.mubr.msk.bf16.mxu0 %vm2496_vm0, %v6280_v58  ;;  %v4808_v45 = vld [vmem:[%s6288_s14 + $0xd0] ss:$88 sps:$4 sm:$0xff]  }
 0x15c   : > { %2655 = vmatprep.subr.bf16.mxu0 %v4734_v47  ;;  %2635 = vmatpush1.bf16.msra.mxu1 %v2508_v62  ;;  %v4816_v47 = vld [vmem:[%s6288_s14 + $0x184] ss:$88 sps:$4 sm:$0xff]   ;;  %v4870_v62 = vld [vmem:[%s6288_s14 + $0x28] ss:$88 sps:$4 sm:$0xff]  }
 0x15d   : > { %2696 = vmatprep.subr.bf16.mxu1 %v4796_v63  ;;  %v4877_v63 = vld [vmem:[%s6288_s14 + $0xdc] ss:$88 sps:$4 sm:$0xff]  }
 0x15f   : > { %2656 = vmatpush1.bf16.msra.mxu0 %v4732_v49  ;;  %2643 = vmatmul.mubr.bf16.vlgmr.msra.gmra.mrb[0].mxu1 %v6340_v44  ;;  %v1092_v49 = vld [vmem:[%s6288_s14 + $0x858] sm:$0x33] }
 0x160   : > { %2657 = vmatprep.subr.bf16.mxu0 %v4740_v51  ;;  %2697 = vmatpush1.bf16.msra.mxu1 %v4794_v1  ;;  %v4859_v51 = vld [vmem:[%s6288_s14 + $0x7a8] ss:$88 sps:$4 sm:$0xff]   ;;  %v4266_v53 = vcombine.high %v1092_v49, %v1092_v49  ;;  %v4840_v1 = vld [vmem:[%s6288_s14 + $0x444] ss:$88 sps:$4 sm:$0xff]  }
 0x161   : > { %2698 = vmatprep.subr.bf16.mxu1 %v4801_v3  ;;  %4288 = vmatprep.mubr.msk.bf16.mxu1 %vm2496_vm0, %v6280_v58  ;;  %v4883_v3 = vld [vmem:[%s6288_s14 + $0x18c] ss:$88 sps:$4 sm:$0xff]  }
 0x163   : > { %2658 = vmatpush1.bf16.msra.mxu0 %v4738_v54  ;;  %v4265_v54 = vcombine.low %v1092_v49, %v1092_v49  ;;  %v4896_v49 = vld [vmem:[%s6288_s14 + $0x240] ss:$88 sps:$4 sm:$0xff]  }
 0x164   : > { %2659 = vmatprep.subr.bf16.mxu0 %v4746_v56  ;;  %2699 = vmatpush1.bf16.msra.mxu1 %v4799_v6  ;;  %v4828_v56 = vld [vmem:[%s6288_s14 + $0x2e4] ss:$88 sps:$4 sm:$0xff]   ;;  %v4881_v6 = vld [vmem:[%s6288_s14 + $0x188] ss:$88 sps:$4 sm:$0xff]  }
 0x165   : > { %2700 = vmatprep.subr.bf16.mxu1 %v4807_v8  ;;  %v2520_v57 = vsel %vm2500_vm1, %v4265_v54, 0  ;;  %v4844_v8 = vld [vmem:[%s6288_s14 + $0x4f0] ss:$88 sps:$4 sm:$0xff]  }
 0x166   : > { %v4946_v54 = vld [vmem:[%s6288_s14 + $0x38] ss:$88 sps:$4 sm:$0xff]  }
 0x167   : > { %2660 = vmatpush1.bf16.msra.mxu0 %v4744_v60  ;;  %v4826_v60 = vld [vmem:[%s6288_s14 + $0x2e0] ss:$88 sps:$4 sm:$0xff]  }
 0x168   : > { %2661 = vmatprep.subr.bf16.mxu0 %v4752_v61  ;;  %2701 = vmatpush1.bf16.msra.mxu1 %v4805_v12  ;;  %v4834_v61 = vld [vmem:[%s6288_s14 + $0x394] ss:$88 sps:$4 sm:$0xff]  }
 0x169   : > { %2702 = vmatprep.subr.bf16.mxu1 %v4813_v13  ;;  %v4858_v12 = vld [vmem:[%s6288_s14 + $0x654] ss:$88 sps:$4 sm:$0xff]   ;;  %v4893_v13 = vld [vmem:[%s6288_s14 + $0x2e8] ss:$88 sps:$4 sm:$0xff]  }
 0x16b   : > { %2662 = vmatpush1.bf16.msra.mxu0 %v4750_v0  ;;  %v4832_v0 = vld [vmem:[%s6288_s14 + $0x390] ss:$88 sps:$4 sm:$0xff]  }
 0x16c   : > { %2663 = vmatprep.subr.bf16.mxu0 %v4758_v2  ;;  %2703 = vmatpush1.bf16.msra.mxu1 %v4811_v15  ;;  %v4875_v2 = vld [vmem:[%s6288_s14 + $0xd8] ss:$88 sps:$4 sm:$0xff]  }
 0x16d   : > { %2704 = vmatprep.subr.bf16.mxu1 %v4819_v17  ;;  %v4856_v15 = vld [vmem:[%s6288_s14 + $0x650] ss:$88 sps:$4 sm:$0xff]  }
 0x16e   : > { %v4899_v17 = vld [vmem:[%s6288_s14 + $0x398] ss:$88 sps:$4 sm:$0xff]  }
 0x16f   : > { %2664 = vmatpush1.bf16.msra.mxu0 %v4756_v4  ;;  %v4838_v4 = vld [vmem:[%s6288_s14 + $0x440] ss:$88 sps:$4 sm:$0xff]  }
 0x170   : > { %2665 = vmatprep.subr.bf16.mxu0 %v4764_v5  ;;  %2705 = vmatpush1.bf16.msra.mxu1 %v4817_v19  ;;  %v4846_v5 = vld [vmem:[%s6288_s14 + $0x4f4] ss:$88 sps:$4 sm:$0xff]   ;;  %v4862_v19 = vld [vmem:[%s6288_s14 + $0x700] ss:$88 sps:$4 sm:$0xff]  }
 0x171   : > { %2706 = vmatprep.subr.bf16.mxu1 %v4825_v21  ;;  %v4905_v21 = vld [vmem:[%s6288_s14 + $0x448] ss:$88 sps:$4 sm:$0xff]  }
 0x173   : > { %2666 = vmatpush1.bf16.msra.mxu0 %v4762_v9  ;;  %v4852_v9 = vld [vmem:[%s6288_s14 + $0x5a4] ss:$88 sps:$4 sm:$0xff]  }
 0x174   : > { %2667 = vmatprep.subr.bf16.mxu0 %v4770_v10  ;;  %2707 = vmatpush1.bf16.msra.mxu1 %v4823_v23  ;;  %v4895_v10 = vld [vmem:[%s6288_s14 + $0x2ec] ss:$88 sps:$4 sm:$0xff]  }
 0x175   : > { %2708 = vmatprep.subr.bf16.mxu1 %v4831_v25  ;;  %v1093_v23 = vld [vmem:[%s6288_s14 + $0x860] sm:$0x33]  ;;  %v4911_v25 = vld [vmem:[%s6288_s14 + $0x4f8] ss:$88 sps:$4 sm:$0xff]  }
 0x177   : > { %2668 = vmatpush1.bf16.msra.mxu0 %v4768_v14  ;;  %v4901_v14 = vld [vmem:[%s6288_s14 + $0x39c] ss:$88 sps:$4 sm:$0xff]  }
 0x178   : > { %2669 = vmatprep.subr.bf16.mxu0 %v4776_v16  ;;  %2709 = vmatpush1.bf16.msra.mxu1 %v4829_v27  ;;  %v4864_v16 = vld [vmem:[%s6288_s14 + $0x704] ss:$88 sps:$4 sm:$0xff]   ;;  %v4267_v27 = vcombine.low %v1093_v23, %v1093_v23 }
 0x179   : > { %2710 = vmatprep.subr.bf16.mxu1 %v4837_v29  ;;  %v4917_v29 = vld [vmem:[%s6288_s14 + $0x5a8] ss:$88 sps:$4 sm:$0xff]  }
 0x17a   : > { %v2526_v30 = vsel %vm2500_vm1, %v4267_v27, 0  ;;  %v4999_v27 = vld [vmem:[%s6288_s14 + $0x668] ss:$88 sps:$4 sm:$0xff]  }
 0x17b   : > { %2670 = vmatpush1.bf16.msra.mxu0 %v4774_v18  ;;  %v4907_v18 = vld [vmem:[%s6288_s14 + $0x44c] ss:$88 sps:$4 sm:$0xff]  }
 0x17c   : > { %2671 = vmatprep.subr.bf16.mxu0 %v4782_v20  ;;  %2711 = vmatpush1.bf16.msra.mxu1 %v4835_v32  ;;  %v4869_v20 = vld [vmem:[%s6288_s14 + $0x7b4] ss:$88 sps:$4 sm:$0xff]  }
 0x17d   : > { %2712 = vmatprep.subr.bf16.mxu1 %v4843_v35  ;;  %v4925_v32 = vld [vmem:[%s6288_s14 + $0x65c] ss:$88 sps:$4 sm:$0xff]  }
 0x17e   : > { %v4886_v35 = vld [vmem:[%s6288_s14 + $0xe4] ss:$88 sps:$4 sm:$0xff]  }
 0x17f   : > { %2672 = vmatpush1.bf16.msra.mxu0 %v4780_v22  ;;  %v4913_v22 = vld [vmem:[%s6288_s14 + $0x4fc] ss:$88 sps:$4 sm:$0xff]  }
 0x180   : > { %2673 = vmatprep.subr.bf16.mxu0 %v4788_v24  ;;  %2713 = vmatpush1.bf16.msra.mxu1 %v4841_v36  ;;  %v4867_v24 = vld [vmem:[%s6288_s14 + $0x7b0] ss:$88 sps:$4 sm:$0xff]   ;;  %v4931_v36 = vld [vmem:[%s6288_s14 + $0x70c] ss:$88 sps:$4 sm:$0xff]  }
 0x181   : > { %2714 = vmatprep.subr.bf16.mxu1 %v4849_v39  ;;  %v4892_v39 = vld [vmem:[%s6288_s14 + $0x194] ss:$88 sps:$4 sm:$0xff]  }
 0x183   : > { %2674 = vmatpush1.bf16.msra.mxu0 %v4786_v26  ;;  %v4268_v26 = vcombine.high %v1093_v23, %v1093_v23 }
 0x184   : > { %2675 = vmatprep.subr.bf16.mxu0 %v4793_v28  ;;  %2715 = vmatpush1.bf16.msra.mxu1 %v4847_v41  ;;  %v4919_v28 = vld [vmem:[%s6288_s14 + $0x5ac] ss:$88 sps:$4 sm:$0xff]  }
 0x185   : > { %2716 = vmatprep.subr.bf16.mxu1 %v4855_v43  ;;  %v1094_v41 = vld [vmem:[%s6288_s14 + $0x868] sm:$0x33] }
 0x186   : > { %v4890_v43 = vld [vmem:[%s6288_s14 + $0x190] ss:$88 sps:$4 sm:$0xff]  }
 0x187   : > { %2676 = vmatpush1.bf16.msra.mxu0 %v4791_v31  ;;  %v4880_v31 = vld [vmem:[%s6288_s14 + $0x34] ss:$88 sps:$4 sm:$0xff]  }
 0x188   : > { %4285 = vmatprep.subr.msk.bf16.mxu0 %vm2500_vm1, %v4264_v33  ;;  %2717 = vmatpush1.bf16.msra.mxu1 %v4853_v46  ;;  %v4878_v33 = vld [vmem:[%s6288_s14 + $0x30] ss:$88 sps:$4 sm:$0xff]   ;;  %v4898_v46 = vld [vmem:[%s6288_s14 + $0x244] ss:$88 sps:$4 sm:$0xff]  }
 0x189   : > { %2718 = vmatprep.subr.bf16.mxu1 %v4861_v48  ;;  %v4269_v48 = vcombine.low %v1094_v41, %v1094_v41 }
 0x18b   : > { %2678 = vmatpush1.bf16.msra.mxu0 %v2514_v37  ;;  %v4884_v37 = vld [vmem:[%s6288_s14 + $0xe0] ss:$88 sps:$4 sm:$0xff]  }
 0x18c   : > { %2739 = vmatprep.subr.bf16.mxu0 %v4804_v38  ;;  %2719 = vmatpush1.bf16.msra.mxu1 %v4859_v51  ;;  %v4929_v38 = vld [vmem:[%s6288_s14 + $0x708] ss:$88 sps:$4 sm:$0xff]   ;;  %v2532_v51 = vsel %vm2500_vm1, %v4269_v48, 0 }
 0x18d   : > { %4287 = vmatprep.subr.msk.bf16.mxu1 %vm2500_vm1, %v4266_v53  ;;  %v4902_v53 = vld [vmem:[%s6288_s14 + $0x2f0] ss:$88 sps:$4 sm:$0xff]  }
 0x18e   : > { %2686 = vmatmul.mubr.bf16.vlgmr.msra.gmra.mrb[4].mxu0 %v6340_v44  ;;  %v5022_v48 = vld [vmem:[%s6288_s14 + $0x48] ss:$88 sps:$4 sm:$0xff]  }
 0x18f   : > { %2740 = vmatpush1.bf16.msra.mxu0 %v4802_v40  ;;  %4290 = vmatprep.mubr.msk.bf16.mxu0 %vm2496_vm0, %v6280_v58  ;;  %v4937_v40 = vld [vmem:[%s6288_s14 + $0x7bc] ss:$88 sps:$4 sm:$0xff]  }
 0x190   : > { %2741 = vmatprep.subr.bf16.mxu0 %v4810_v42  ;;  %2721 = vmatpush1.bf16.msra.mxu1 %v2520_v57  ;;  %v6481_v42 = vld [vmem:[%s7120_s0 + $0x4] ss:$8 sps:$4 sm:$0xff]   ;;  %v4908_v57 = vld [vmem:[%s6288_s14 + $0x3a0] ss:$88 sps:$4 sm:$0xff]  }
 0x191   : > { %2782 = vmatprep.subr.bf16.mxu1 %v4872_v59  ;;  %v4951_v59 = vld [vmem:[%s6288_s14 + $0xe8] ss:$88 sps:$4 sm:$0xff]  }
 0x193   : > { %2742 = vmatpush1.bf16.msra.mxu0 %v4808_v45  ;;  %2729 = vmatmul.mubr.bf16.vlgmr.msra.gmra.mrb[4].mxu1 %v6340_v44  ;;  %v4935_v45 = vld [vmem:[%s6288_s14 + $0x7b8] ss:$88 sps:$4 sm:$0xff]  }
 0x194   : > { %2743 = vmatprep.subr.bf16.mxu0 %v4816_v47  ;;  %2783 = vmatpush1.bf16.msra.mxu1 %v4870_v62  ;;  %v4270_v47 = vcombine.high %v1094_v41, %v1094_v41  ;;  %v4914_v62 = vld [vmem:[%s6288_s14 + $0x450] ss:$88 sps:$4 sm:$0xff]  }
 0x195   : > { %2784 = vmatprep.subr.bf16.mxu1 %v4877_v63  ;;  %4292 = vmatprep.mubr.msk.bf16.mxu1 %vm2496_vm0, %v6280_v58  ;;  %v4887_v58 = vld [vmem:[%s6288_s14 + $0x238] ss:$88 sps:$4 sm:$0xff]   ;;  %v4922_v63 = vld [vmem:[%s6288_s14 + $0x504] ss:$88 sps:$4 sm:$0xff]  }
 0x196   : > { %v4972_v41 = vld [vmem:[%s6288_s14 + $0x250] ss:$88 sps:$4 sm:$0xff]  }
 0x197   : > { %2744 = vmatpush1.bf16.msra.mxu0 %v4814_v50  ;;  %v4904_v50 = vld [vmem:[%s6288_s14 + $0x2f4] ss:$88 sps:$4 sm:$0xff]  }
 0x198   : > { %2745 = vmatprep.subr.bf16.mxu0 %v4822_v52  ;;  %2785 = vmatpush1.bf16.msra.mxu1 %v4875_v2  ;;  %v4948_v52 = vld [vmem:[%s6288_s14 + $0x3c] ss:$88 sps:$4 sm:$0xff]   ;;  %v4963_v2 = vld [vmem:[%s6288_s14 + $0x248] ss:$88 sps:$4 sm:$0xff]  }
 0x199   : > { %2786 = vmatprep.subr.bf16.mxu1 %v4883_v3  ;;  %v4928_v3 = vld [vmem:[%s6288_s14 + $0x5b4] ss:$88 sps:$4 sm:$0xff]  }
 0x19b   : > { %2746 = vmatpush1.bf16.msra.mxu0 %v4820_v55  ;;  %v4910_v55 = vld [vmem:[%s6288_s14 + $0x3a4] ss:$88 sps:$4 sm:$0xff]  }
 0x19c   : > { %2747 = vmatprep.subr.bf16.mxu0 %v4828_v56  ;;  %2787 = vmatpush1.bf16.msra.mxu1 %v4881_v6  ;;  %v4953_v56 = vld [vmem:[%s6288_s14 + $0xec] ss:$88 sps:$4 sm:$0xff]   ;;  %v4969_v6 = vld [vmem:[%s6288_s14 + $0x2f8] ss:$88 sps:$4 sm:$0xff]  }
 0x19d   : > { %2788 = vmatprep.subr.bf16.mxu1 %v4889_v7  ;;  %v4934_v7 = vld [vmem:[%s6288_s14 + $0x664] ss:$88 sps:$4 sm:$0xff]  }
 0x19f   : > { %2748 = vmatpush1.bf16.msra.mxu0 %v4826_v60  ;;  %v4916_v60 = vld [vmem:[%s6288_s14 + $0x454] ss:$88 sps:$4 sm:$0xff]  }
 0x1a0   : > { %2749 = vmatprep.subr.bf16.mxu0 %v4834_v61  ;;  %2789 = vmatpush1.bf16.msra.mxu1 %v4887_v58  ;;  %v4959_v61 = vld [vmem:[%s6288_s14 + $0x19c] ss:$88 sps:$4 sm:$0xff]   ;;  %v4975_v58 = vld [vmem:[%s6288_s14 + $0x3a8] ss:$88 sps:$4 sm:$0xff]  }
 0x1a1   : > { %2790 = vmatprep.subr.bf16.mxu1 %v4895_v10  ;;  %v4940_v10 = vld [vmem:[%s6288_s14 + $0x714] ss:$88 sps:$4 sm:$0xff]  }
 0x1a3   : > { %2750 = vmatpush1.bf16.msra.mxu0 %v4832_v0  ;;  %v4965_v0 = vld [vmem:[%s6288_s14 + $0x24c] ss:$88 sps:$4 sm:$0xff]  }
 0x1a4   : > { %2751 = vmatprep.subr.bf16.mxu0 %v4840_v1  ;;  %2791 = vmatpush1.bf16.msra.mxu1 %v4893_v13  ;;  %v4920_v1 = vld [vmem:[%s6288_s14 + $0x500] ss:$88 sps:$4 sm:$0xff]  }
 0x1a5   : > { %2792 = vmatprep.subr.bf16.mxu1 %v4901_v14  ;;  %v4981_v13 = vld [vmem:[%s6288_s14 + $0x458] ss:$88 sps:$4 sm:$0xff]   ;;  %v4945_v14 = vld [vmem:[%s6288_s14 + $0x7c4] ss:$88 sps:$4 sm:$0xff]  }
 0x1a7   : > { %2752 = vmatpush1.bf16.msra.mxu0 %v4838_v4  ;;  %v4971_v4 = vld [vmem:[%s6288_s14 + $0x2fc] ss:$88 sps:$4 sm:$0xff]  }
 0x1a8   : > { %2753 = vmatprep.subr.bf16.mxu0 %v4846_v5  ;;  %2793 = vmatpush1.bf16.msra.mxu1 %v4899_v17  ;;  %v4926_v5 = vld [vmem:[%s6288_s14 + $0x5b0] ss:$88 sps:$4 sm:$0xff]   ;;  %v4943_v17 = vld [vmem:[%s6288_s14 + $0x7c0] ss:$88 sps:$4 sm:$0xff]  }
 0x1a9   : > { %2794 = vmatprep.subr.bf16.mxu1 %v4907_v18  ;;  %v4987_v18 = vld [vmem:[%s6288_s14 + $0x508] ss:$88 sps:$4 sm:$0xff]  }
 0x1ab   : > { %2754 = vmatpush1.bf16.msra.mxu0 %v4844_v8  ;;  %v4977_v8 = vld [vmem:[%s6288_s14 + $0x3ac] ss:$88 sps:$4 sm:$0xff]  }
 0x1ac   : > { %2755 = vmatprep.subr.bf16.mxu0 %v4852_v9  ;;  %2795 = vmatpush1.bf16.msra.mxu1 %v4905_v21  ;;  %v4932_v9 = vld [vmem:[%s6288_s14 + $0x660] ss:$88 sps:$4 sm:$0xff]   ;;  %v4995_v21 = vld [vmem:[%s6288_s14 + $0x5bc] ss:$88 sps:$4 sm:$0xff]  }
 0x1ad   : > { %2796 = vmatprep.subr.bf16.mxu1 %v4913_v22  ;;  %v4993_v22 = vld [vmem:[%s6288_s14 + $0x5b8] ss:$88 sps:$4 sm:$0xff]  }
 0x1af   : > { %2756 = vmatpush1.bf16.msra.mxu0 %v4850_v11  ;;  %v4983_v11 = vld [vmem:[%s6288_s14 + $0x45c] ss:$88 sps:$4 sm:$0xff]  }
 0x1b0   : > { %2757 = vmatprep.subr.bf16.mxu0 %v4858_v12  ;;  %2797 = vmatpush1.bf16.msra.mxu1 %v4911_v25  ;;  %v4938_v12 = vld [vmem:[%s6288_s14 + $0x710] ss:$88 sps:$4 sm:$0xff]   ;;  %v5001_v25 = vld [vmem:[%s6288_s14 + $0x66c] ss:$88 sps:$4 sm:$0xff]  }
 0x1b1   : > { %2798 = vmatprep.subr.bf16.mxu1 %v4919_v28  ;;  %v4962_v28 = vld [vmem:[%s6288_s14 + $0xf4] ss:$88 sps:$4 sm:$0xff]  }
 0x1b3   : > { %2758 = vmatpush1.bf16.msra.mxu0 %v4856_v15  ;;  %v4989_v15 = vld [vmem:[%s6288_s14 + $0x50c] ss:$88 sps:$4 sm:$0xff]  }
 0x1b4   : > { %2759 = vmatprep.subr.bf16.mxu0 %v4864_v16  ;;  %2799 = vmatpush1.bf16.msra.mxu1 %v4917_v29  ;;  %v1095_v16 = vld [vmem:[%s6288_s14 + $0x870] sm:$0x33] }
 0x1b5   : > { %2800 = vmatprep.subr.bf16.mxu1 %v4925_v32  ;;  %v5007_v29 = vld [vmem:[%s6288_s14 + $0x71c] ss:$88 sps:$4 sm:$0xff]   ;;  %v5005_v32 = vld [vmem:[%s6288_s14 + $0x718] ss:$88 sps:$4 sm:$0xff]  }
 0x1b7   : > { %2760 = vmatpush1.bf16.msra.mxu0 %v4862_v19  ;;  %v4272_v19 = vcombine.high %v1095_v16, %v1095_v16 }
 0x1b8   : > { %2761 = vmatprep.subr.bf16.mxu0 %v4869_v20  ;;  %2801 = vmatpush1.bf16.msra.mxu1 %v4923_v34  ;;  %v4271_v20 = vcombine.low %v1095_v16, %v1095_v16  ;;  %v5013_v34 = vld [vmem:[%s6288_s14 + $0x7cc] ss:$88 sps:$4 sm:$0xff]   ;;  %v5069_v16 = vld [vmem:[%s6288_s14 + $0x5c8] ss:$88 sps:$4 sm:$0xff]  }
 0x1b9   : > { %2802 = vmatprep.subr.bf16.mxu1 %v4931_v36  ;;  %v4966_v36 = vld [vmem:[%s6288_s14 + $0x1a0] ss:$88 sps:$4 sm:$0xff]  }
 0x1ba   : > { %v2538_v23 = vsel %vm2500_vm1, %v4271_v20, 0  ;;  %v5030_v20 = vld [vmem:[%s6288_s14 + $0x50] ss:$88 sps:$4 sm:$0xff]  }
 0x1bb   : > { %2762 = vmatpush1.bf16.msra.mxu0 %v4867_v24  ;;  %v4956_v24 = vld [vmem:[%s6288_s14 + $0x44] ss:$88 sps:$4 sm:$0xff]  }
 0x1bc   : > { %4289 = vmatprep.subr.msk.bf16.mxu0 %vm2500_vm1, %v4268_v26  ;;  %2803 = vmatpush1.bf16.msra.mxu1 %v4929_v38  ;;  %v4954_v26 = vld [vmem:[%s6288_s14 + $0x40] ss:$88 sps:$4 sm:$0xff]   ;;  %v4974_v38 = vld [vmem:[%s6288_s14 + $0x254] ss:$88 sps:$4 sm:$0xff]  }
 0x1bd   : > { %2804 = vmatprep.subr.bf16.mxu1 %v4937_v40 }
 0x1bf   : > { %2764 = vmatpush1.bf16.msra.mxu0 %v2526_v30  ;;  %v6540_v30 = vld [vmem:[%s7120_s0] ss:$8 sps:$4 sm:$0xff]  }
 0x1c0   : > { %2825 = vmatprep.subr.bf16.mxu0 %v4880_v31  ;;  %2805 = vmatpush1.bf16.msra.mxu1 %v4935_v45  ;;  %v4960_v31 = vld [vmem:[%s6288_s14 + $0xf0] ss:$88 sps:$4 sm:$0xff]  }
 0x1c1   : > { %4291 = vmatprep.subr.msk.bf16.mxu1 %vm2500_vm1, %v4270_v47  ;;  %v4978_v47 = vld [vmem:[%s6288_s14 + $0x300] ss:$88 sps:$4 sm:$0xff]  }
 0x1c2   : > { %2772 = vmatmul.mubr.bf16.vlgmr.msra.gmra.mrb[8].mxu0 %v6340_v44 }
 0x1c3   : > { %2826 = vmatpush1.bf16.msra.mxu0 %v4878_v33  ;;  %4294 = vmatprep.mubr.msk.bf16.mxu0 %vm2496_vm0, %v6481_v42  ;;  %v4968_v33 = vld [vmem:[%s6288_s14 + $0x1a4] ss:$88 sps:$4 sm:$0xff]  }
 0x1c4   : > { %2827 = vmatprep.subr.bf16.mxu0 %v4886_v35  ;;  %2807 = vmatpush1.bf16.msra.mxu1 %v2532_v51  ;;  %v1096_v35 = vld [vmem:[%s6288_s14 + $0x878] sm:$0x33]  ;;  %v4984_v51 = vld [vmem:[%s6288_s14 + $0x3b0] ss:$88 sps:$4 sm:$0xff]  }
 0x1c5   : > { %2868 = vmatprep.subr.bf16.mxu1 %v4948_v52  ;;  %v4273_v40 = vcombine.low %v1096_v35, %v1096_v35  ;;  %v5027_v52 = vld [vmem:[%s6288_s14 + $0xf8] ss:$88 sps:$4 sm:$0xff]  }
 0x1c7   : > { %2828 = vmatpush1.bf16.msra.mxu0 %v4884_v37  ;;  %2815 = vmatmul.mubr.bf16.vlgmr.msra.gmra.mrb[8].mxu1 %v6340_v44  ;;  %v4957_v44 = vld [vmem:[%s6288_s14 + $0x198] ss:$88 sps:$4 sm:$0xff]   ;;  %v5011_v37 = vld [vmem:[%s6288_s14 + $0x7c8] ss:$88 sps:$4 sm:$0xff]   ;;  %v2544_v45 = vsel %vm2500_vm1, %v4273_v40, 0 }
 0x1c8   : > { %2829 = vmatprep.subr.bf16.mxu0 %v4892_v39  ;;  %2869 = vmatpush1.bf16.msra.mxu1 %v4946_v54  ;;  %v4274_v39 = vcombine.high %v1096_v35, %v1096_v35  ;;  %v5035_v54 = vld [vmem:[%s6288_s14 + $0x1ac] ss:$88 sps:$4 sm:$0xff]  }
 0x1c9   : > { %2870 = vmatprep.subr.bf16.mxu1 %v4953_v56  ;;  %4296 = vmatprep.mubr.msk.bf16.mxu1 %vm2496_vm0, %v6481_v42  ;;  %v5033_v56 = vld [vmem:[%s6288_s14 + $0x1a8] ss:$88 sps:$4 sm:$0xff]  }
 0x1cb   : > { %2830 = vmatpush1.bf16.msra.mxu0 %v4890_v43  ;;  %v4980_v43 = vld [vmem:[%s6288_s14 + $0x304] ss:$88 sps:$4 sm:$0xff]  }
 0x1cc   : > { %2831 = vmatprep.subr.bf16.mxu0 %v4898_v46  ;;  %2871 = vmatpush1.bf16.msra.mxu1 %v4951_v59  ;;  %v5024_v46 = vld [vmem:[%s6288_s14 + $0x4c] ss:$88 sps:$4 sm:$0xff]   ;;  %v5041_v59 = vld [vmem:[%s6288_s14 + $0x25c] ss:$88 sps:$4 sm:$0xff]  }
 0x1cd   : > { %2872 = vmatprep.subr.bf16.mxu1 %v4959_v61  ;;  %v5039_v61 = vld [vmem:[%s6288_s14 + $0x258] ss:$88 sps:$4 sm:$0xff]  }
 0x1cf   : > { %2832 = vmatpush1.bf16.msra.mxu0 %v4896_v49  ;;  %v4986_v49 = vld [vmem:[%s6288_s14 + $0x3b4] ss:$88 sps:$4 sm:$0xff]  }
 0x1d0   : > { %2833 = vmatprep.subr.bf16.mxu0 %v4904_v50  ;;  %2873 = vmatpush1.bf16.msra.mxu1 %v4957_v44  ;;  %v5029_v50 = vld [vmem:[%s6288_s14 + $0xfc] ss:$88 sps:$4 sm:$0xff]   ;;  %v5047_v44 = vld [vmem:[%s6288_s14 + $0x30c] ss:$88 sps:$4 sm:$0xff]  }
 0x1d1   : > { %2874 = vmatprep.subr.bf16.mxu1 %v4965_v0  ;;  %v5045_v0 = vld [vmem:[%s6288_s14 + $0x308] ss:$88 sps:$4 sm:$0xff]  }
 0x1d3   : > { %2834 = vmatpush1.bf16.msra.mxu0 %v4902_v53  ;;  %v4992_v53 = vld [vmem:[%s6288_s14 + $0x464] ss:$88 sps:$4 sm:$0xff]  }
 0x1d4   : > { %2835 = vmatprep.subr.bf16.mxu0 %v4910_v55  ;;  %2875 = vmatpush1.bf16.msra.mxu1 %v4963_v2  ;;  %v4990_v55 = vld [vmem:[%s6288_s14 + $0x460] ss:$88 sps:$4 sm:$0xff]   ;;  %v5053_v2 = vld [vmem:[%s6288_s14 + $0x3bc] ss:$88 sps:$4 sm:$0xff]  }
 0x1d5   : > { %2876 = vmatprep.subr.bf16.mxu1 %v4971_v4  ;;  %v5051_v4 = vld [vmem:[%s6288_s14 + $0x3b8] ss:$88 sps:$4 sm:$0xff]  }
 0x1d7   : > { %2836 = vmatpush1.bf16.msra.mxu0 %v4908_v57  ;;  %v4998_v57 = vld [vmem:[%s6288_s14 + $0x514] ss:$88 sps:$4 sm:$0xff]  }
 0x1d8   : > { %2837 = vmatprep.subr.bf16.mxu0 %v4916_v60  ;;  %2877 = vmatpush1.bf16.msra.mxu1 %v4969_v6  ;;  %v4996_v60 = vld [vmem:[%s6288_s14 + $0x510] ss:$88 sps:$4 sm:$0xff]   ;;  %v5059_v6 = vld [vmem:[%s6288_s14 + $0x46c] ss:$88 sps:$4 sm:$0xff]  }
 0x1d9   : > { %2878 = vmatprep.subr.bf16.mxu1 %v4977_v8  ;;  %v5057_v8 = vld [vmem:[%s6288_s14 + $0x468] ss:$88 sps:$4 sm:$0xff]  }
 0x1db   : > { %2838 = vmatpush1.bf16.msra.mxu0 %v4914_v62  ;;  %v5004_v62 = vld [vmem:[%s6288_s14 + $0x5c4] ss:$88 sps:$4 sm:$0xff]  }
 0x1dc   : > { %2839 = vmatprep.subr.bf16.mxu0 %v4922_v63  ;;  %2879 = vmatpush1.bf16.msra.mxu1 %v4975_v58  ;;  %v5002_v63 = vld [vmem:[%s6288_s14 + $0x5c0] ss:$88 sps:$4 sm:$0xff]   ;;  %v5065_v58 = vld [vmem:[%s6288_s14 + $0x51c] ss:$88 sps:$4 sm:$0xff]  }
 0x1dd   : > { %2880 = vmatprep.subr.bf16.mxu1 %v4983_v11  ;;  %v5019_v11 = vld [vmem:[%s6288_s14 + $0x7d0] ss:$88 sps:$4 sm:$0xff]  }
 0x1df   : > { %2840 = vmatpush1.bf16.msra.mxu0 %v4920_v1  ;;  %v5010_v1 = vld [vmem:[%s6288_s14 + $0x674] ss:$88 sps:$4 sm:$0xff]  }
 0x1e0   : > { %2841 = vmatprep.subr.bf16.mxu0 %v4928_v3  ;;  %2881 = vmatpush1.bf16.msra.mxu1 %v4981_v13  ;;  %v5008_v3 = vld [vmem:[%s6288_s14 + $0x670] ss:$88 sps:$4 sm:$0xff]  }
 0x1e1   : > { %2882 = vmatprep.subr.bf16.mxu1 %v4989_v15  ;;  %v5071_v15 = vld [vmem:[%s6288_s14 + $0x5cc] ss:$88 sps:$4 sm:$0xff]  }
 0x1e3   : > { %2842 = vmatpush1.bf16.msra.mxu0 %v4926_v5  ;;  %v5016_v5 = vld [vmem:[%s6288_s14 + $0x724] ss:$88 sps:$4 sm:$0xff]  }
 0x1e4   : > { %2843 = vmatprep.subr.bf16.mxu0 %v4934_v7  ;;  %2883 = vmatpush1.bf16.msra.mxu1 %v4987_v18  ;;  %v5014_v7 = vld [vmem:[%s6288_s14 + $0x720] ss:$88 sps:$4 sm:$0xff]   ;;  %v5032_v18 = vld [vmem:[%s6288_s14 + $0x54] ss:$88 sps:$4 sm:$0xff]  }
 0x1e5   : > { %2884 = vmatprep.subr.bf16.mxu1 %v4995_v21  ;;  %v6599_v21 = vpop.permute.xlu0 %1104 }
 0x1e7   : > { %2844 = vmatpush1.bf16.msra.mxu0 %v4932_v9  ;;  %v5021_v9 = vld [vmem:[%s6288_s14 + $0x7d4] ss:$88 sps:$4 sm:$0xff]  }
 0x1e8   : > { %2845 = vmatprep.subr.bf16.mxu0 %v4940_v10  ;;  %2885 = vmatpush1.bf16.msra.mxu1 %v4993_v22  ;;  %v1097_v10 = vld [vmem:[%s6288_s14 + $0x880] sm:$0x33]  ;;  %v5075_v22 = vld [vmem:[%s6288_s14 + $0x678] ss:$88 sps:$4 sm:$0xff]  }
 0x1e9   : > { %2886 = vmatprep.subr.bf16.mxu1 %v5001_v25  ;;  %v4276_v13 = vcombine.high %v1097_v10, %v1097_v10  ;;  %v5036_v25 = vld [vmem:[%s6288_s14 + $0x100] ss:$88 sps:$4 sm:$0xff]  }
 0x1eb   : > { %2846 = vmatpush1.bf16.msra.mxu0 %v4938_v12  ;;  %v5063_v12 = vld [vmem:[%s6288_s14 + $0x518] ss:$88 sps:$4 sm:$0xff]  }
 0x1ec   : > { %2847 = vmatprep.subr.bf16.mxu0 %v4945_v14  ;;  %2887 = vmatpush1.bf16.msra.mxu1 %v4999_v27  ;;  %v4275_v14 = vcombine.low %v1097_v10, %v1097_v10  ;;  %v5044_v27 = vld [vmem:[%s6288_s14 + $0x1b4] ss:$88 sps:$4 sm:$0xff]  }
 0x1ed   : > { %2888 = vmatprep.subr.bf16.mxu1 %v5007_v29  ;;  %v1098_v29 = vld [vmem:[%s6288_s14 + $0x888] sm:$0x33] }
 0x1ef   : > { %2848 = vmatpush1.bf16.msra.mxu0 %v4943_v17  ;;  %v2550_v17 = vsel %vm2500_vm1, %v4275_v14, 0 }
 0x1f0   : > { %4293 = vmatprep.subr.msk.bf16.mxu0 %vm2500_vm1, %v4272_v19  ;;  %2889 = vmatpush1.bf16.msra.mxu1 %v5005_v32  ;;  %v5077_v19 = vld [vmem:[%s6288_s14 + $0x67c] ss:$88 sps:$4 sm:$0xff]   ;;  %v6610_v32 = vpop.permute.xlu0 %1109 }
 0x1f1   : > { %2890 = vmatprep.subr.bf16.mxu1 %v5013_v34 }
 0x1f3   : > { %2850 = vmatpush1.bf16.msra.mxu0 %v2538_v23  ;;  %v5038_v23 = vld [vmem:[%s6288_s14 + $0x104] ss:$88 sps:$4 sm:$0xff]  }
 0x1f4   : > { %2911 = vmatprep.subr.bf16.mxu0 %v4956_v24  ;;  %2891 = vmatpush1.bf16.msra.mxu1 %v5011_v37  ;;  %v5083_v24 = vld [vmem:[%s6288_s14 + $0x72c] ss:$88 sps:$4 sm:$0xff]   ;;  %v5042_v37 = vld [vmem:[%s6288_s14 + $0x1b0] ss:$88 sps:$4 sm:$0xff]  }
 0x1f5   : > { %4295 = vmatprep.subr.msk.bf16.mxu1 %vm2500_vm1, %v4274_v39  ;;  %v4278_v39 = vcombine.high %v1098_v29, %v1098_v29 }
 0x1f6   : > { %2858 = vmatmul.mubr.bf16.vlgmr.msra.gmra.mrb[12].mxu0 %v6540_v30 }
 0x1f7   : > { %2912 = vmatpush1.bf16.msra.mxu0 %v4954_v26  ;;  %4298 = vmatprep.mubr.msk.bf16.mxu0 %vm2496_vm0, %v6481_v42  ;;  %v5081_v26 = vld [vmem:[%s6288_s14 + $0x728] ss:$88 sps:$4 sm:$0xff]  }
 0x1f8   : > { %2913 = vmatprep.subr.bf16.mxu0 %v4962_v28  ;;  %2893 = vmatpush1.bf16.msra.mxu1 %v2544_v45  ;;  %v5089_v28 = vld [vmem:[%s6288_s14 + $0x7dc] ss:$88 sps:$4 sm:$0xff]   ;;  %v4277_v45 = vcombine.low %v1098_v29, %v1098_v29 }
 0x1f9   : > { %2954 = vmatprep.subr.bf16.mxu1 %v5024_v46 }
 0x1fb   : > { %2914 = vmatpush1.bf16.msra.mxu0 %v4960_v31  ;;  %2901 = vmatmul.mubr.bf16.vlgmr.msra.gmra.mrb[12].mxu1 %v6540_v30 }
 0x1fc   : > { %2915 = vmatprep.subr.bf16.mxu0 %v4968_v33  ;;  %2955 = vmatpush1.bf16.msra.mxu1 %v5022_v48 }
 0x1fd   : > { %2956 = vmatprep.subr.bf16.mxu1 %v5029_v50  ;;  %4300 = vmatprep.mubr.msk.bf16.mxu1 %vm2496_vm0, %v6481_v42 }
 0x1ff   : > { %2916 = vmatpush1.bf16.msra.mxu0 %v4966_v36 }
 0x200   : > { %2917 = vmatprep.subr.bf16.mxu0 %v4974_v38  ;;  %2957 = vmatpush1.bf16.msra.mxu1 %v5027_v52  ;;  %v5087_v38 = vld [vmem:[%s6288_s14 + $0x7d8] ss:$88 sps:$4 sm:$0xff]  }
 0x201   : > { %2958 = vmatprep.subr.bf16.mxu1 %v5035_v54  ;;  %v5048_v52 = vld [vmem:[%s6288_s14 + $0x260] ss:$88 sps:$4 sm:$0xff]  }
 0x203   : > { %2918 = vmatpush1.bf16.msra.mxu0 %v4972_v41 }
 0x204   : > { %2919 = vmatprep.subr.bf16.mxu0 %v4980_v43  ;;  %2959 = vmatpush1.bf16.msra.mxu1 %v5033_v56  ;;  %v5050_v43 = vld [vmem:[%s6288_s14 + $0x264] ss:$88 sps:$4 sm:$0xff]   ;;  %v2556_v56 = vsel %vm2500_vm1, %v4277_v45, 0 }
 0x205   : > { %2960 = vmatprep.subr.bf16.mxu1 %v5041_v59 }
 0x207   : > { %2920 = vmatpush1.bf16.msra.mxu0 %v4978_v47 }
 0x208   : > { %2921 = vmatprep.subr.bf16.mxu0 %v4986_v49  ;;  %2961 = vmatpush1.bf16.msra.mxu1 %v5039_v61  ;;  %v5062_v61 = vld [vmem:[%s6288_s14 + $0x3c4] ss:$88 sps:$4 sm:$0xff]  }
 0x209   : > { %2962 = vmatprep.subr.bf16.mxu1 %v5047_v44  ;;  %v5068_v44 = vld [vmem:[%s6288_s14 + $0x474] ss:$88 sps:$4 sm:$0xff]  }
 0x20b   : > { %2922 = vmatpush1.bf16.msra.mxu0 %v4984_v51 }
 0x20c   : > { %2923 = vmatprep.subr.bf16.mxu0 %v4992_v53  ;;  %2963 = vmatpush1.bf16.msra.mxu1 %v5045_v0 }
 0x20d   : > { %2964 = vmatprep.subr.bf16.mxu1 %v5053_v2  ;;  %v5066_v2 = vld [vmem:[%s6288_s14 + $0x470] ss:$88 sps:$4 sm:$0xff]  }
 0x20f   : > { %2924 = vmatpush1.bf16.msra.mxu0 %v4990_v55  ;;  %v5056_v55 = vld [vmem:[%s6288_s14 + $0x314] ss:$88 sps:$4 sm:$0xff]  }
 0x210   : > { %2925 = vmatprep.subr.bf16.mxu0 %v4998_v57  ;;  %2965 = vmatpush1.bf16.msra.mxu1 %v5051_v4 }
 0x211   : > { %2966 = vmatprep.subr.bf16.mxu1 %v5059_v6 }
 0x213   : > { %2926 = vmatpush1.bf16.msra.mxu0 %v4996_v60  ;;  %v5054_v60 = vld [vmem:[%s6288_s14 + $0x310] ss:$88 sps:$4 sm:$0xff]  }
 0x214   : > { %2927 = vmatprep.subr.bf16.mxu0 %v5004_v62  ;;  %2967 = vmatpush1.bf16.msra.mxu1 %v5057_v8  ;;  %v5060_v62 = vld [vmem:[%s6288_s14 + $0x3c0] ss:$88 sps:$4 sm:$0xff]  }
 0x215   : > { %2968 = vmatprep.subr.bf16.mxu1 %v5065_v58 }
 0x217   : > { %2928 = vmatpush1.bf16.msra.mxu0 %v5002_v63 }
 0x218   : > { %2929 = vmatprep.subr.bf16.mxu0 %v5010_v1  ;;  %2969 = vmatpush1.bf16.msra.mxu1 %v5063_v12  ;;  %v5072_v12 = vld [vmem:[%s6288_s14 + $0x520] ss:$88 sps:$4 sm:$0xff]  }
 0x219   : > { %2970 = vmatprep.subr.bf16.mxu1 %v5071_v15  ;;  %v5080_v15 = vld [vmem:[%s6288_s14 + $0x5d4] ss:$88 sps:$4 sm:$0xff]  }
 0x21b   : > { %2930 = vmatpush1.bf16.msra.mxu0 %v5008_v3 }
 0x21c   : > { %2931 = vmatprep.subr.bf16.mxu0 %v5016_v5  ;;  %2971 = vmatpush1.bf16.msra.mxu1 %v5069_v16  ;;  %v5074_v5 = vld [vmem:[%s6288_s14 + $0x524] ss:$88 sps:$4 sm:$0xff]  }
 0x21d   : > { %2972 = vmatprep.subr.bf16.mxu1 %v5077_v19 }
 0x21f   : > { %2932 = vmatpush1.bf16.msra.mxu0 %v5014_v7 }
 0x220   : > { %2933 = vmatprep.subr.bf16.mxu0 %v5021_v9  ;;  %2973 = vmatpush1.bf16.msra.mxu1 %v5075_v22  ;;  %v5086_v22 = vld [vmem:[%s6288_s14 + $0x684] ss:$88 sps:$4 sm:$0xff]  }
 0x221   : > { %2974 = vmatprep.subr.bf16.mxu1 %v5083_v24  ;;  %v5092_v24 = vld [vmem:[%s6288_s14 + $0x734] ss:$88 sps:$4 sm:$0xff]  }
 0x223   : > { %2934 = vmatpush1.bf16.msra.mxu0 %v5019_v11 }
 0x224   : > { %4297 = vmatprep.subr.msk.bf16.mxu0 %vm2500_vm1, %v4276_v13  ;;  %2975 = vmatpush1.bf16.msra.mxu1 %v5081_v26  ;;  %v5097_v26 = vld [vmem:[%s6288_s14 + $0x7e4] ss:$88 sps:$4 sm:$0xff]  }
 0x225   : > { %2976 = vmatprep.subr.bf16.mxu1 %v5089_v28  ;;  %v5095_v28 = vld [vmem:[%s6288_s14 + $0x7e0] ss:$88 sps:$4 sm:$0xff]  }
 0x227   : > { %2936 = vmatpush1.bf16.msra.mxu0 %v2550_v17 }
 0x228   : > { %2997 = vmatprep.subr.bf16.mxu0 %v5032_v18  ;;  %2977 = vmatpush1.bf16.msra.mxu1 %v5087_v38 }
 0x229   : > { %4299 = vmatprep.subr.msk.bf16.mxu1 %vm2500_vm1, %v4278_v39 }
 0x22a   : > { %2944 = vmatmul.mubr.bf16.vlgmr.msra.gmra.mrb[16].mxu0 %v6540_v30 }
 0x22b   : > { %2998 = vmatpush1.bf16.msra.mxu0 %v5030_v20  ;;  %4302 = vmatprep.mubr.msk.bf16.mxu0 %vm2496_vm0, %v6481_v42  ;;  %v5078_v20 = vld [vmem:[%s6288_s14 + $0x5d0] ss:$88 sps:$4 sm:$0xff]  }
 0x22c   : > { %2999 = vmatprep.subr.bf16.mxu0 %v5038_v23  ;;  %2979 = vmatpush1.bf16.msra.mxu1 %v2556_v56  ;;  %v5084_v23 = vld [vmem:[%s6288_s14 + $0x680] ss:$88 sps:$4 sm:$0xff]  }
 0x22d   : > { %v2601_v31 = vpop.f32.mrb[0].mxu0 }
 0x22e   : > { %v2602_v33 = vadd.f32 %v2601_v31, %v6599_v21  ;;  %v2603_v34 = vpop.f32.mrb[1].mxu0 }
 0x22f   : > { %v2604_v35 = vadd.f32 %v2603_v34, %v6599_v21  ;;  %v2605_v36 = vpop.f32.mrb[2].mxu0  ;;  %3000 = vmatpush1.bf16.msra.mxu0 %v5036_v25  ;;  %2987 = vmatmul.mubr.bf16.vlgmr.msra.gmra.mrb[16].mxu1 %v6540_v30  ;;  %v5090_v25 = vld [vmem:[%s6288_s14 + $0x730] ss:$88 sps:$4 sm:$0xff]  }
 0x230   : > { %vm3040_vm2 = vcmp.ge.f32.partialorder %v2602_v33, 0.0  ;;  %v3084_v40 = vmul.f32 0.01, %v2602_v33  ;;  %v2606_v41 = vadd.f32 %v2605_v36, %v6610_v32  ;;  %v2607_v42 = vpop.f32.mrb[3].mxu0  ;;  %3001 = vmatprep.subr.bf16.mxu0 %v5044_v27  ;;  %v1099_v27 = vld [vmem:[%s6288_s14 + $0x890] sm:$0x33] }
 0x231   : > { %vm3041_vm3 = vcmp.ge.f32.partialorder %v2604_v35, 0.0  ;;  %v3085_v46 = vmul.f32 0.01, %v2604_v35  ;;  %v2608_v47 = vadd.f32 %v2607_v42, %v6610_v32  ;;  %v4280_v29 = vcombine.high %v1099_v27, %v1099_v27 }
 0x232   : > { %v3128_v48 = vsel %vm3040_vm2, %v2602_v33, %v3084_v40  ;;  %vm3062_vm4 = vcmp.ge.f32.partialorder %v2606_v41, 0.0  ;;  %v3106_v49 = vmul.f32 0.01, %v2606_v41  ;;  %v2644_v63 = vpop.f32.mrb[0].mxu1  ;;  %v4279_v31 = vcombine.low %v1099_v27, %v1099_v27 }
 0x233   : > { %v3129_v50 = vsel %vm3041_vm3, %v2604_v35, %v3085_v46  ;;  %vm3063_vm5 = vcmp.ge.f32.partialorder %v2608_v47, 0.0  ;;  %v3107_v51 = vmul.f32 0.01, %v2608_v47  ;;  %3002 = vmatpush1.bf16.msra.mxu0 %v5042_v37  ;;  %v2645_v0 = vadd.f32 %v2644_v63, %v6599_v21  ;;  %v2646_v1 = vpop.f32.mrb[1].mxu1 }
 0x234   : > { %v4353_v53 = vpack.c.bf16 %v3129_v50, %v3128_v48  ;;  %v3150_v54 = vsel %vm3062_vm4, %v2606_v41, %v3106_v49  ;;  %3003 = vmatprep.subr.bf16.mxu0 %v5050_v43  ;;  %v2647_v3 = vadd.f32 %v2646_v1, %v6599_v21  ;;  %v2648_v4 = vpop.f32.mrb[2].mxu1  ;;  %v2562_v33 = vsel %vm2500_vm1, %v4279_v31, 0 }
 0x235   : > { %v3151_v57 = vsel %vm3063_vm5, %v2608_v47, %v3107_v51  ;;  %vm3042_vm6 = vcmp.ge.f32.partialorder %v2645_v0, 0.0  ;;  %v3086_v6 = vmul.f32 0.01, %v2645_v0  ;;  %v2649_v7 = vadd.f32 %v2648_v4, %v6610_v32  ;;  %v2650_v8 = vpop.f32.mrb[3].mxu1 }
 0x236   : > { %3304 = vst [vmem:[%s6630_s12] sm:$0xff] %v4353_v53  ;;  %v4364_v59 = vpack.c.bf16 %v3151_v57, %v3150_v54  ;;  %vm3043_vm7 = vcmp.ge.f32.partialorder %v2647_v3, 0.0  ;;  %v3087_v9 = vmul.f32 0.01, %v2647_v3  ;;  %v2651_v58 = vadd.f32 %v2650_v8, %v6610_v32 }
 0x237   : > { %3004 = vmatpush1.bf16.msra.mxu0 %v5048_v52  ;;  %v3130_v10 = vsel %vm3042_vm6, %v2645_v0, %v3086_v6  ;;  %vm3064_vm8 = vcmp.ge.f32.partialorder %v2649_v7, 0.0  ;;  %v3108_v11 = vmul.f32 0.01, %v2649_v7 }
 0x238   : > { %3315 = vst [vmem:[%s6630_s12 + $0x58] sm:$0xff] %v4364_v59  ;;  %3005 = vmatprep.subr.bf16.mxu0 %v5056_v55  ;;  %v3131_v13 = vsel %vm3043_vm7, %v2647_v3, %v3087_v9  ;;  %vm3065_vm9 = vcmp.ge.f32.partialorder %v2651_v58, 0.0  ;;  %v3109_v14 = vmul.f32 0.01, %v2651_v58 }
 0x239   : > { %v4354_v16 = vpack.c.bf16 %v3131_v13, %v3130_v10  ;;  %v3152_v17 = vsel %vm3064_vm8, %v2649_v7, %v3108_v11 }
 0x23a   : > { %v3153_v18 = vsel %vm3065_vm9, %v2651_v58, %v3109_v14 }
 0x23b   : > { %3006 = vmatpush1.bf16.msra.mxu0 %v5054_v60  ;;  %3305 = vst [vmem:[%s6630_s12 + $0x8] sm:$0xff] %v4354_v16  ;;  %v4365_v19 = vpack.c.bf16 %v3153_v18, %v3152_v17 }
 0x23c   : > { %3007 = vmatprep.subr.bf16.mxu0 %v5062_v61 }
 0x23d   : > { %3316 = vst [vmem:[%s6630_s12 + $0x60] sm:$0xff] %v4365_v19 }
 0x23f   : > { %3008 = vmatpush1.bf16.msra.mxu0 %v5060_v62 }
 0x240   : > { %3009 = vmatprep.subr.bf16.mxu0 %v5068_v44 }
 0x243   : > { %3010 = vmatpush1.bf16.msra.mxu0 %v5066_v2 }
 0x244   : > { %3011 = vmatprep.subr.bf16.mxu0 %v5074_v5 }
 0x247   : > { %3012 = vmatpush1.bf16.msra.mxu0 %v5072_v12 }
 0x248   : > { %3013 = vmatprep.subr.bf16.mxu0 %v5080_v15 }
 0x24b   : > { %3014 = vmatpush1.bf16.msra.mxu0 %v5078_v20 }
 0x24c   : > { %3015 = vmatprep.subr.bf16.mxu0 %v5086_v22 }
 0x24f   : > { %3016 = vmatpush1.bf16.msra.mxu0 %v5084_v23 }
 0x250   : > { %3017 = vmatprep.subr.bf16.mxu0 %v5092_v24 }
 0x253   : > { %3018 = vmatpush1.bf16.msra.mxu0 %v5090_v25 }
 0x254   : > { %3019 = vmatprep.subr.bf16.mxu0 %v5097_v26 }
 0x257   : > { %3020 = vmatpush1.bf16.msra.mxu0 %v5095_v28 }
 0x258   : > { %4301 = vmatprep.subr.msk.bf16.mxu0 %vm2500_vm1, %v4280_v29 }
 0x25b   : > { %3022 = vmatpush1.bf16.msra.mxu0 %v2562_v33 }
 0x25e   : > { %3030 = vmatmul.mubr.bf16.vlgmr.msra.gmra.mrb[20].mxu0 %v6540_v30 }
 0x261   : > { %v2687_v34 = vpop.f32.mrb[4].mxu0 }
 0x262   : > { %v2688_v35 = vadd.f32 %v2687_v34, %v6599_v21  ;;  %v2689_v36 = vpop.f32.mrb[5].mxu0 }
 0x263   : > { %v2690_v37 = vadd.f32 %v2689_v36, %v6599_v21  ;;  %v2691_v38 = vpop.f32.mrb[6].mxu0 }
 0x264   : > { %vm3044_vm10 = vcmp.ge.f32.partialorder %v2688_v35, 0.0  ;;  %v3088_v39 = vmul.f32 0.01, %v2688_v35  ;;  %v2692_v40 = vadd.f32 %v2691_v38, %v6610_v32  ;;  %v2693_v41 = vpop.f32.mrb[7].mxu0 }
 0x265   : > { %vm3045_vm11 = vcmp.ge.f32.partialorder %v2690_v37, 0.0  ;;  %v3089_v42 = vmul.f32 0.01, %v2690_v37  ;;  %v2694_v43 = vadd.f32 %v2693_v41, %v6610_v32 }
 0x266   : > { %v3132_v45 = vsel %vm3044_vm10, %v2688_v35, %v3088_v39  ;;  %vm3066_vm12 = vcmp.ge.f32.partialorder %v2692_v40, 0.0  ;;  %v3110_v30 = vmul.f32 0.01, %v2692_v40  ;;  %v2730_v52 = vpop.f32.mrb[4].mxu1 }
 0x267   : > { %v3133_v46 = vsel %vm3045_vm11, %v2690_v37, %v3089_v42  ;;  %vm3067_vm13 = vcmp.ge.f32.partialorder %v2694_v43, 0.0  ;;  %v3111_v47 = vmul.f32 0.01, %v2694_v43  ;;  %v2731_v53 = vadd.f32 %v2730_v52, %v6599_v21  ;;  %v2732_v54 = vpop.f32.mrb[5].mxu1 }
 0x268   : > { %v4355_v48 = vpack.c.bf16 %v3133_v46, %v3132_v45  ;;  %v3154_v49 = vsel %vm3066_vm12, %v2692_v40, %v3110_v30  ;;  %v2733_v55 = vadd.f32 %v2732_v54, %v6599_v21  ;;  %v2734_v56 = vpop.f32.mrb[6].mxu1 }
 0x269   : > { %v3155_v50 = vsel %vm3067_vm13, %v2694_v43, %v3111_v47  ;;  %vm3046_vm14 = vcmp.ge.f32.partialorder %v2731_v53, 0.0  ;;  %v3090_v57 = vmul.f32 0.01, %v2731_v53  ;;  %v2735_v59 = vadd.f32 %v2734_v56, %v6610_v32  ;;  %v2736_v60 = vpop.f32.mrb[7].mxu1 }
 0x26a   : > { %3306 = vst [vmem:[%s6630_s12 + $0x10] sm:$0xff] %v4355_v48  ;;  %v4366_v51 = vpack.c.bf16 %v3155_v50, %v3154_v49  ;;  %vm3047_vm15 = vcmp.ge.f32.partialorder %v2733_v55, 0.0  ;;  %v3091_v61 = vmul.f32 0.01, %v2733_v55  ;;  %v2737_v62 = vadd.f32 %v2736_v60, %v6610_v32 }
 0x26b   : > { %v3134_v44 = vsel %vm3046_vm14, %v2731_v53, %v3090_v57  ;;  %vm3068_vm0 = vcmp.ge.f32.partialorder %v2735_v59, 0.0  ;;  %v3112_v63 = vmul.f32 0.01, %v2735_v59 }
 0x26c   : > { %3317 = vst [vmem:[%s6630_s12 + $0x68] sm:$0xff] %v4366_v51  ;;  %v3135_v0 = vsel %vm3047_vm15, %v2733_v55, %v3091_v61  ;;  %vm3069_vm1 = vcmp.ge.f32.partialorder %v2737_v62, 0.0  ;;  %v3113_v1 = vmul.f32 0.01, %v2737_v62 }
 0x26d   : > { %v4356_v2 = vpack.c.bf16 %v3135_v0, %v3134_v44  ;;  %v3156_v3 = vsel %vm3068_vm0, %v2735_v59, %v3112_v63 }
 0x26e   : > { %v3157_v4 = vsel %vm3069_vm1, %v2737_v62, %v3113_v1 }
 0x26f   : > { %3307 = vst [vmem:[%s6630_s12 + $0x18] sm:$0xff] %v4356_v2  ;;  %v4367_v5 = vpack.c.bf16 %v3157_v4, %v3156_v3 }
 0x271   : > { %3318 = vst [vmem:[%s6630_s12 + $0x70] sm:$0xff] %v4367_v5 }
 0x295   : > { %v2773_v6 = vpop.f32.mrb[8].mxu0 }
 0x296   : > { %v2774_v7 = vadd.f32 %v2773_v6, %v6599_v21  ;;  %v2775_v8 = vpop.f32.mrb[9].mxu0 }
 0x297   : > { %v2776_v9 = vadd.f32 %v2775_v8, %v6599_v21  ;;  %v2777_v58 = vpop.f32.mrb[10].mxu0 }
 0x298   : > { %vm3048_vm2 = vcmp.ge.f32.partialorder %v2774_v7, 0.0  ;;  %v3092_v10 = vmul.f32 0.01, %v2774_v7  ;;  %v2778_v11 = vadd.f32 %v2777_v58, %v6610_v32  ;;  %v2779_v12 = vpop.f32.mrb[11].mxu0 }
 0x299   : > { %vm3049_vm3 = vcmp.ge.f32.partialorder %v2776_v9, 0.0  ;;  %v3093_v13 = vmul.f32 0.01, %v2776_v9  ;;  %v2780_v14 = vadd.f32 %v2779_v12, %v6610_v32 }
 0x29a   : > { %v3136_v15 = vsel %vm3048_vm2, %v2774_v7, %v3092_v10  ;;  %vm3070_vm4 = vcmp.ge.f32.partialorder %v2778_v11, 0.0  ;;  %v3114_v16 = vmul.f32 0.01, %v2778_v11  ;;  %v2816_v24 = vpop.f32.mrb[8].mxu1 }
 0x29b   : > { %v3137_v17 = vsel %vm3049_vm3, %v2776_v9, %v3093_v13  ;;  %vm3071_vm5 = vcmp.ge.f32.partialorder %v2780_v14, 0.0  ;;  %v3115_v18 = vmul.f32 0.01, %v2780_v14  ;;  %v2817_v25 = vadd.f32 %v2816_v24, %v6599_v21  ;;  %v2818_v26 = vpop.f32.mrb[9].mxu1 }
 0x29c   : > { %v4357_v19 = vpack.c.bf16 %v3137_v17, %v3136_v15  ;;  %v3158_v20 = vsel %vm3070_vm4, %v2778_v11, %v3114_v16  ;;  %v2819_v27 = vadd.f32 %v2818_v26, %v6599_v21  ;;  %v2820_v28 = vpop.f32.mrb[10].mxu1 }
 0x29d   : > { %v3159_v22 = vsel %vm3071_vm5, %v2780_v14, %v3115_v18  ;;  %vm3050_vm6 = vcmp.ge.f32.partialorder %v2817_v25, 0.0  ;;  %v3094_v29 = vmul.f32 0.01, %v2817_v25  ;;  %v2821_v31 = vadd.f32 %v2820_v28, %v6610_v32  ;;  %v2822_v33 = vpop.f32.mrb[11].mxu1 }
 0x29e   : > { %3308 = vst [vmem:[%s6630_s12 + $0x20] sm:$0xff] %v4357_v19  ;;  %v4368_v23 = vpack.c.bf16 %v3159_v22, %v3158_v20  ;;  %vm3051_vm7 = vcmp.ge.f32.partialorder %v2819_v27, 0.0  ;;  %v3095_v34 = vmul.f32 0.01, %v2819_v27  ;;  %v2823_v35 = vadd.f32 %v2822_v33, %v6610_v32 }
 0x29f   : > { %v3138_v36 = vsel %vm3050_vm6, %v2817_v25, %v3094_v29  ;;  %vm3072_vm8 = vcmp.ge.f32.partialorder %v2821_v31, 0.0  ;;  %v3116_v37 = vmul.f32 0.01, %v2821_v31 }
 0x2a0   : > { %3319 = vst [vmem:[%s6630_s12 + $0x78] sm:$0xff] %v4368_v23  ;;  %v3139_v38 = vsel %vm3051_vm7, %v2819_v27, %v3095_v34  ;;  %vm3073_vm9 = vcmp.ge.f32.partialorder %v2823_v35, 0.0  ;;  %v3117_v39 = vmul.f32 0.01, %v2823_v35 }
 0x2a1   : > { %v4358_v40 = vpack.c.bf16 %v3139_v38, %v3138_v36  ;;  %v3160_v41 = vsel %vm3072_vm8, %v2821_v31, %v3116_v37 }
 0x2a2   : > { %v3161_v42 = vsel %vm3073_vm9, %v2823_v35, %v3117_v39 }
 0x2a3   : > { %3309 = vst [vmem:[%s6630_s12 + $0x28] sm:$0xff] %v4358_v40  ;;  %v4369_v43 = vpack.c.bf16 %v3161_v42, %v3160_v41 }
 0x2a5   : > { %3320 = vst [vmem:[%s6630_s12 + $0x80] sm:$0xff] %v4369_v43 }
 0x2c9   : > { %v2859_v45 = vpop.f32.mrb[12].mxu0 }
 0x2ca   : > { %v2860_v30 = vadd.f32 %v2859_v45, %v6599_v21  ;;  %v2861_v46 = vpop.f32.mrb[13].mxu0 }
 0x2cb   : > { %v2862_v47 = vadd.f32 %v2861_v46, %v6599_v21  ;;  %v2863_v48 = vpop.f32.mrb[14].mxu0 }
 0x2cc   : > { %vm3052_vm10 = vcmp.ge.f32.partialorder %v2860_v30, 0.0  ;;  %v3096_v49 = vmul.f32 0.01, %v2860_v30  ;;  %v2864_v50 = vadd.f32 %v2863_v48, %v6610_v32  ;;  %v2865_v51 = vpop.f32.mrb[15].mxu0 }
 0x2cd   : > { %vm3053_vm11 = vcmp.ge.f32.partialorder %v2862_v47, 0.0  ;;  %v3097_v52 = vmul.f32 0.01, %v2862_v47  ;;  %v2866_v53 = vadd.f32 %v2865_v51, %v6610_v32 }
 0x2ce   : > { %v3140_v54 = vsel %vm3052_vm10, %v2860_v30, %v3096_v49  ;;  %vm3074_vm12 = vcmp.ge.f32.partialorder %v2864_v50, 0.0  ;;  %v3118_v55 = vmul.f32 0.01, %v2864_v50  ;;  %v2902_v44 = vpop.f32.mrb[12].mxu1 }
 0x2cf   : > { %v3141_v56 = vsel %vm3053_vm11, %v2862_v47, %v3097_v52  ;;  %vm3075_vm13 = vcmp.ge.f32.partialorder %v2866_v53, 0.0  ;;  %v3119_v57 = vmul.f32 0.01, %v2866_v53  ;;  %v2903_v63 = vadd.f32 %v2902_v44, %v6599_v21  ;;  %v2904_v0 = vpop.f32.mrb[13].mxu1 }
 0x2d0   : > { %v4359_v59 = vpack.c.bf16 %v3141_v56, %v3140_v54  ;;  %v3162_v60 = vsel %vm3074_vm12, %v2864_v50, %v3118_v55  ;;  %v2905_v1 = vadd.f32 %v2904_v0, %v6599_v21  ;;  %v2906_v2 = vpop.f32.mrb[14].mxu1 }
 0x2d1   : > { %v3163_v61 = vsel %vm3075_vm13, %v2866_v53, %v3119_v57  ;;  %vm3054_vm14 = vcmp.ge.f32.partialorder %v2903_v63, 0.0  ;;  %v3098_v3 = vmul.f32 0.01, %v2903_v63  ;;  %v2907_v4 = vadd.f32 %v2906_v2, %v6610_v32  ;;  %v2908_v5 = vpop.f32.mrb[15].mxu1 }
 0x2d2   : > { %3310 = vst [vmem:[%s6630_s12 + $0x30] sm:$0xff] %v4359_v59  ;;  %v4370_v62 = vpack.c.bf16 %v3163_v61, %v3162_v60  ;;  %vm3055_vm15 = vcmp.ge.f32.partialorder %v2905_v1, 0.0  ;;  %v3099_v6 = vmul.f32 0.01, %v2905_v1  ;;  %v2909_v7 = vadd.f32 %v2908_v5, %v6610_v32 }
 0x2d3   : > { %v3142_v8 = vsel %vm3054_vm14, %v2903_v63, %v3098_v3  ;;  %vm3076_vm0 = vcmp.ge.f32.partialorder %v2907_v4, 0.0  ;;  %v3120_v9 = vmul.f32 0.01, %v2907_v4 }
 0x2d4   : > { %3321 = vst [vmem:[%s6630_s12 + $0x88] sm:$0xff] %v4370_v62  ;;  %v3143_v58 = vsel %vm3055_vm15, %v2905_v1, %v3099_v6  ;;  %vm3077_vm1 = vcmp.ge.f32.partialorder %v2909_v7, 0.0  ;;  %v3121_v10 = vmul.f32 0.01, %v2909_v7 }
 0x2d5   : > { %v4360_v11 = vpack.c.bf16 %v3143_v58, %v3142_v8  ;;  %v3164_v12 = vsel %vm3076_vm0, %v2907_v4, %v3120_v9 }
 0x2d6   : > { %v3165_v13 = vsel %vm3077_vm1, %v2909_v7, %v3121_v10 }
 0x2d7   : > { %3311 = vst [vmem:[%s6630_s12 + $0x38] sm:$0xff] %v4360_v11  ;;  %v4371_v14 = vpack.c.bf16 %v3165_v13, %v3164_v12 }
 0x2d9   : > { %3322 = vst [vmem:[%s6630_s12 + $0x90] sm:$0xff] %v4371_v14 }
 0x2fd   : > { %v2945_v15 = vpop.f32.mrb[16].mxu0 }
 0x2fe   : > { %v2946_v16 = vadd.f32 %v2945_v15, %v6599_v21  ;;  %v2947_v17 = vpop.f32.mrb[17].mxu0 }
 0x2ff   : > { %v2948_v18 = vadd.f32 %v2947_v17, %v6599_v21  ;;  %v2949_v19 = vpop.f32.mrb[18].mxu0 }
 0x300   : > { %vm3056_vm2 = vcmp.ge.f32.partialorder %v2946_v16, 0.0  ;;  %v3100_v20 = vmul.f32 0.01, %v2946_v16  ;;  %v2950_v22 = vadd.f32 %v2949_v19, %v6610_v32  ;;  %v2951_v23 = vpop.f32.mrb[19].mxu0 }
 0x301   : > { %vm3057_vm3 = vcmp.ge.f32.partialorder %v2948_v18, 0.0  ;;  %v3101_v24 = vmul.f32 0.01, %v2948_v18  ;;  %v2952_v25 = vadd.f32 %v2951_v23, %v6610_v32 }
 0x302   : > { %v3144_v26 = vsel %vm3056_vm2, %v2946_v16, %v3100_v20  ;;  %vm3078_vm4 = vcmp.ge.f32.partialorder %v2950_v22, 0.0  ;;  %v3122_v27 = vmul.f32 0.01, %v2950_v22  ;;  %v2988_v36 = vpop.f32.mrb[16].mxu1 }
 0x303   : > { %v3145_v28 = vsel %vm3057_vm3, %v2948_v18, %v3101_v24  ;;  %vm3079_vm5 = vcmp.ge.f32.partialorder %v2952_v25, 0.0  ;;  %v3123_v29 = vmul.f32 0.01, %v2952_v25  ;;  %v2989_v37 = vadd.f32 %v2988_v36, %v6599_v21  ;;  %v2990_v38 = vpop.f32.mrb[17].mxu1 }
 0x304   : > { %v4361_v31 = vpack.c.bf16 %v3145_v28, %v3144_v26  ;;  %v3166_v33 = vsel %vm3078_vm4, %v2950_v22, %v3122_v27  ;;  %v2991_v39 = vadd.f32 %v2990_v38, %v6599_v21  ;;  %v2992_v40 = vpop.f32.mrb[18].mxu1 }
 0x305   : > { %v3167_v34 = vsel %vm3079_vm5, %v2952_v25, %v3123_v29  ;;  %vm3058_vm6 = vcmp.ge.f32.partialorder %v2989_v37, 0.0  ;;  %v3102_v41 = vmul.f32 0.01, %v2989_v37  ;;  %v2993_v42 = vadd.f32 %v2992_v40, %v6610_v32  ;;  %v2994_v43 = vpop.f32.mrb[19].mxu1 }
 0x306   : > { %3312 = vst [vmem:[%s6630_s12 + $0x40] sm:$0xff] %v4361_v31  ;;  %v4372_v35 = vpack.c.bf16 %v3167_v34, %v3166_v33  ;;  %vm3059_vm7 = vcmp.ge.f32.partialorder %v2991_v39, 0.0  ;;  %v3103_v45 = vmul.f32 0.01, %v2991_v39  ;;  %v2995_v30 = vadd.f32 %v2994_v43, %v6610_v32 }
 0x307   : > { %v3146_v46 = vsel %vm3058_vm6, %v2989_v37, %v3102_v41  ;;  %vm3080_vm8 = vcmp.ge.f32.partialorder %v2993_v42, 0.0  ;;  %v3124_v47 = vmul.f32 0.01, %v2993_v42 }
 0x308   : > { %3323 = vst [vmem:[%s6630_s12 + $0x98] sm:$0xff] %v4372_v35  ;;  %v3147_v48 = vsel %vm3059_vm7, %v2991_v39, %v3103_v45  ;;  %vm3081_vm9 = vcmp.ge.f32.partialorder %v2995_v30, 0.0  ;;  %v3125_v49 = vmul.f32 0.01, %v2995_v30 }
 0x309   : > { %v4362_v50 = vpack.c.bf16 %v3147_v48, %v3146_v46  ;;  %v3168_v51 = vsel %vm3080_vm8, %v2993_v42, %v3124_v47 }
 0x30a   : > { %v3169_v52 = vsel %vm3081_vm9, %v2995_v30, %v3125_v49 }
 0x30b   : > { %3313 = vst [vmem:[%s6630_s12 + $0x48] sm:$0xff] %v4362_v50  ;;  %v4373_v53 = vpack.c.bf16 %v3169_v52, %v3168_v51 }
 0x30d   : > { %3324 = vst [vmem:[%s6630_s12 + $0xa0] sm:$0xff] %v4373_v53 }
 0x331   : > { %v3031_v54 = vpop.f32.mrb[20].mxu0 }
 0x332   : > { %v3032_v55 = vadd.f32 %v3031_v54, %v6599_v21  ;;  %v3033_v56 = vpop.f32.mrb[21].mxu0 }
 0x333   : > { %v3034_v57 = vadd.f32 %v3033_v56, %v6599_v21  ;;  %v3035_v59 = vpop.f32.mrb[22].mxu0 }
 0x334   : > { %vm3060_vm10 = vcmp.ge.f32.partialorder %v3032_v55, 0.0  ;;  %v3104_v60 = vmul.f32 0.01, %v3032_v55  ;;  %v3036_v61 = vadd.f32 %v3035_v59, %v6610_v32  ;;  %v3037_v62 = vpop.f32.mrb[23].mxu0 }
 0x335   : > { %vm3061_vm11 = vcmp.ge.f32.partialorder %v3034_v57, 0.0  ;;  %v3105_v44 = vmul.f32 0.01, %v3034_v57  ;;  %v3038_v63 = vadd.f32 %v3037_v62, %v6610_v32 }
 0x336   : > { %v3148_v0 = vsel %vm3060_vm10, %v3032_v55, %v3104_v60  ;;  %vm3082_vm12 = vcmp.ge.f32.partialorder %v3036_v61, 0.0  ;;  %v3126_v1 = vmul.f32 0.01, %v3036_v61  ;;  %3332 = sbr.rel (!%p5438_p5) target bundleno = 994 (0x3e2), region = 102 }
 0x337   : > { %v3149_v2 = vsel %vm3061_vm11, %v3034_v57, %v3105_v44  ;;  %vm3083_vm13 = vcmp.ge.f32.partialorder %v3038_v63, 0.0  ;;  %v3127_v3 = vmul.f32 0.01, %v3038_v63 }
 0x338   : > { %v4363_v4 = vpack.c.bf16 %v3149_v2, %v3148_v0  ;;  %v3170_v21 = vsel %vm3082_vm12, %v3036_v61, %v3126_v1 }
 0x339   : > { %v3171_v5 = vsel %vm3083_vm13, %v3038_v63, %v3127_v3 }
 0x33a   : > { %3314 = vst [vmem:[%s6630_s12 + $0x50] sm:$0xff] %v4363_v4  ;;  %v4374_v6 = vpack.c.bf16 %v3171_v5, %v3170_v21 }
 0x33c   : > { %3325 = vst [vmem:[%s6630_s12 + $0xa8] sm:$0xff] %v4374_v6 }
 0x33d   : > { %s7171_s10 = smov (!%p3335_p1, %s3334_s10), 22 }
 0x33e   : > { %s4325_s23 = sshll.u32 %s7171_s10, 7  ;;  %s6723_s11 = sshll.u32 %s7171_s10, 2 }
 0x33f   : > { %p4329_p2 = scmp.eq.s32.totalorder %s4325_s23, 0 }
 0x340   : > { %p3345_p3 = scmp.lt.u32.totalorder (!%p4329_p2), %s6723_s11, 8 }
 0x341   : > { %3344 = sbr.rel (%p4329_p2) target bundleno = 994 (0x3e2), region = 106 }
 0x348   : > { %3348 = sbr.rel (%p3345_p3) target bundleno = 985 (0x3d9), region = 110  ;;  %s6727_s20 = sand.u32 (!%p3345_p3), 7, %s6723_s11  }
 0x349   : > { %p3366_p5 = scmp.eq.s32.totalorder (!%p3345_p3), %s6727_s20, 0  ;;  %p4330_p4 = scmp.ne.s32.totalorder (!%p3345_p3), %s6727_s20, 0 }
 0x34f   : > { %3369 = sbr.rel (%p4330_p4) target bundleno = 914 (0x392), region = 125  ;;  %s3370_s15 = sshrl.u32 (!%p4330_p4), %s6723_s11, 3 }
 0x350   : > { %s6734_s28 = sshrl.u32 (!%p4330_p4), %s3370_s15, 5 }
 0x351   : > { %p4331_p6 = scmp.le.s32.totalorder (!%p4330_p4), %s6734_s28, 0 }
 0x356   : > { %3899 = sbr.rel (%p4331_p6) target bundleno = 894 (0x37e), region = 273  ;;  %s7145_s14 = smov (!%p4331_p6), %s6721_s30 }
 0x357   : > { %s7146_s4 = smov (!%p4331_p6), %s6630_s12  ;;  %s6743_s17 = smov (!%p4331_p6), 0  }
 0x358   : > { %s6745_s18 = smov (!%p4331_p6), 0  }
 0x35d LB: >> { %v3425_v32 = vld [vmem:[%s5324_s4 + $0xa8] sm:$0xff]  ;;  %v3427_v7 = vld [vmem:[%s5324_s4 + $0xb0] sm:$0xff]  ;;  %v3429_v8 = vld [vmem:[%s5324_s4 + $0xb8] sm:$0xff]  ;;  %s3511_s9 = sadd.s32 1, %s5328_s17  ;;  %s3377_s18 = sadd.s32 1, %s5332_s18   ;;  %s5332_s18 = sphi %s6745_s18, %s3377_s18   ;;  %s5328_s17 = sphi %s6743_s17, %s7150_s17   ;;  %s5324_s4 = sphi %s7146_s4, %s7149_s4   ;;  %s5320_s14 = sphi %s7145_s14, %s7148_s14  }
 0x35e   : >> { %3426 = vst [vmem:[%s5320_s14 + $0xa8] sm:$0xff] %v3425_v32  ;;  %3428 = vst [vmem:[%s5320_s14 + $0xb0] sm:$0xff] %v3427_v7  ;;  %v3431_v9 = vld [vmem:[%s5324_s4 + $0xc0] sm:$0xff]  ;;  %v3433_v58 = vld [vmem:[%s5324_s4 + $0xc8] sm:$0xff]  ;;  %p6790_p7 = scmp.ge.s32.totalorder %s3511_s9, %s6734_s28  ;;  %p3376_p8 = scmp.ge.s32.totalorder %s3377_s18, %s6734_s28 }
 0x35f   : >> { %3430 = vst [vmem:[%s5320_s14 + $0xb8] sm:$0xff] %v3429_v8  ;;  %v3435_v10 = vld [vmem:[%s5324_s4 + $0xd0] sm:$0xff]  ;;  %3470 = vst [vmem:[%s5320_s14 + $0x104] sm:$0xff] %v3427_v7  ;;  %v3437_v11 = vld [vmem:[%s5324_s4 + $0xd8] sm:$0xff] }
 0x360   : >> { %3472 = vst [vmem:[%s5320_s14 + $0x10c] sm:$0xff] %v3429_v8  ;;  %3432 = vst [vmem:[%s5320_s14 + $0xc0] sm:$0xff] %v3431_v9  ;;  %v3439_v12 = vld [vmem:[%s5324_s4 + $0xe0] sm:$0xff]  ;;  %v3441_v13 = vld [vmem:[%s5324_s4 + $0xe8] sm:$0xff]  ;;  %s7173_s9 = smov (%p6790_p7, %s3511_s9), 0 }
 0x361   : >> { %3434 = vst [vmem:[%s5320_s14 + $0xc8] sm:$0xff] %v3433_v58  ;;  %3436 = vst [vmem:[%s5320_s14 + $0xd0] sm:$0xff] %v3435_v10  ;;  %v3443_v14 = vld [vmem:[%s5324_s4 + $0xf0] sm:$0xff]  ;;  %v3445_v15 = vld [vmem:[%s5324_s4 + $0xf8] sm:$0xff]  ;;  %s4332_s26 = sshll.u32 %s7173_s9, 8  ;;  %s7150_s17 = smov %s7173_s9 }
 0x362   : >> { %3474 = vst [vmem:[%s5320_s14 + $0x114] sm:$0xff] %v3431_v9  ;;  %3476 = vst [vmem:[%s5320_s14 + $0x11c] sm:$0xff] %v3433_v58  ;;  %v3383_v16 = vld [vmem:[%s5324_s4] sm:$0xff]  ;;  %v3385_v17 = vld [vmem:[%s5324_s4 + $0x8] sm:$0xff]  ;;  %s6835_s27 = scalar_lea.vmem %s6630_s12, %s4332_s26 [#allocation3]   ;;  %s6838_s21 = scalar_lea.vmem %s6721_s30, %s4332_s26  }
 0x363   : >> { %3478 = vst [vmem:[%s5320_s14 + $0x124] sm:$0xff] %v3435_v10  ;;  %3438 = vst [vmem:[%s5320_s14 + $0xd8] sm:$0xff] %v3437_v11  ;;  %v3387_v18 = vld [vmem:[%s5324_s4 + $0x10] sm:$0xff]  ;;  %v3389_v19 = vld [vmem:[%s5324_s4 + $0x18] sm:$0xff] }
 0x364   : >> { %3440 = vst [vmem:[%s5320_s14 + $0xe0] sm:$0xff] %v3439_v12  ;;  %3442 = vst [vmem:[%s5320_s14 + $0xe8] sm:$0xff] %v3441_v13  ;;  %v3391_v20 = vld [vmem:[%s5324_s4 + $0x20] sm:$0xff]  ;;  %v3393_v22 = vld [vmem:[%s5324_s4 + $0x28] sm:$0xff] }
 0x365   : >> { %3480 = vst [vmem:[%s5320_s14 + $0x12c] sm:$0xff] %v3437_v11  ;;  %3482 = vst [vmem:[%s5320_s14 + $0x134] sm:$0xff] %v3439_v12  ;;  %v3395_v23 = vld [vmem:[%s5324_s4 + $0x30] sm:$0xff]  ;;  %v3397_v24 = vld [vmem:[%s5324_s4 + $0x38] sm:$0xff] }
 0x366   : >> { %3484 = vst [vmem:[%s5320_s14 + $0x13c] sm:$0xff] %v3441_v13  ;;  %3444 = vst [vmem:[%s5320_s14 + $0xf0] sm:$0xff] %v3443_v14  ;;  %v3399_v25 = vld [vmem:[%s5324_s4 + $0x40] sm:$0xff]  ;;  %v3401_v26 = vld [vmem:[%s5324_s4 + $0x48] sm:$0xff] }
 0x367   : >> { %3446 = vst [vmem:[%s5320_s14 + $0xf8] sm:$0xff] %v3445_v15  ;;  %3384 = vst [vmem:[%s5320_s14] sm:$0xff] %v3383_v16  ;;  %v3403_v27 = vld [vmem:[%s5324_s4 + $0x50] sm:$0xff]  ;;  %v3405_v28 = vld [vmem:[%s5324_s4 + $0x58] sm:$0xff] }
 0x368   : >> { %3486 = vst [vmem:[%s5320_s14 + $0x144] sm:$0xff] %v3443_v14  ;;  %3488 = vst [vmem:[%s5320_s14 + $0x14c] sm:$0xff] %v3445_v15  ;;  %v3407_v29 = vld [vmem:[%s5324_s4 + $0x60] sm:$0xff]  ;;  %v3409_v31 = vld [vmem:[%s5324_s4 + $0x68] sm:$0xff] }
 0x369   : >> { %3386 = vst [vmem:[%s5320_s14 + $0x8] sm:$0xff] %v3385_v17  ;;  %3388 = vst [vmem:[%s5320_s14 + $0x10] sm:$0xff] %v3387_v18  ;;  %v3411_v33 = vld [vmem:[%s5324_s4 + $0x70] sm:$0xff]  ;;  %v3413_v34 = vld [vmem:[%s5324_s4 + $0x78] sm:$0xff] }
 0x36a   : >> { %3390 = vst [vmem:[%s5320_s14 + $0x18] sm:$0xff] %v3389_v19  ;;  %3468 = vst [vmem:[%s5320_s14 + $0xfc] sm:$0xff] %v3425_v32  ;;  %v3415_v35 = vld [vmem:[%s5324_s4 + $0x80] sm:$0xff]  ;;  %v3417_v36 = vld [vmem:[%s5324_s4 + $0x88] sm:$0xff] }
 0x36b   : >> { %3392 = vst [vmem:[%s5320_s14 + $0x20] sm:$0xff] %v3391_v20  ;;  %3394 = vst [vmem:[%s5320_s14 + $0x28] sm:$0xff] %v3393_v22  ;;  %v3419_v37 = vld [vmem:[%s5324_s4 + $0x90] sm:$0xff]  ;;  %v3421_v38 = vld [vmem:[%s5324_s4 + $0x98] sm:$0xff] }
 0x36c   : >> { %3396 = vst [vmem:[%s5320_s14 + $0x30] sm:$0xff] %v3395_v23  ;;  %3398 = vst [vmem:[%s5320_s14 + $0x38] sm:$0xff] %v3397_v24  ;;  %v3423_v39 = vld [vmem:[%s5324_s4 + $0xa0] sm:$0xff]  ;;  %v3491_v41 = vld [vmem:[%s5324_s4 + $0x108] sm:$0xff] }
 0x36d   : >> { %3400 = vst [vmem:[%s5320_s14 + $0x40] sm:$0xff] %v3399_v25  ;;  %3402 = vst [vmem:[%s5320_s14 + $0x48] sm:$0xff] %v3401_v26  ;;  %v3489_v40 = vld [vmem:[%s5324_s4 + $0x100] sm:$0xff]  ;;  %v3493_v42 = vld [vmem:[%s5324_s4 + $0x110] sm:$0xff] }
 0x36e   : >> { %3404 = vst [vmem:[%s5320_s14 + $0x50] sm:$0xff] %v3403_v27  ;;  %3406 = vst [vmem:[%s5320_s14 + $0x58] sm:$0xff] %v3405_v28  ;;  %v3495_v43 = vld [vmem:[%s5324_s4 + $0x118] sm:$0xff]  ;;  %v3497_v45 = vld [vmem:[%s5324_s4 + $0x120] sm:$0xff] }
 0x36f   : >> { %3408 = vst [vmem:[%s5320_s14 + $0x60] sm:$0xff] %v3407_v29  ;;  %3448 = vst [vmem:[%s5320_s14 + $0xac] sm:$0xff] %v3405_v28  ;;  %v3499_v30 = vld [vmem:[%s5324_s4 + $0x128] sm:$0xff]  ;;  %v3501_v46 = vld [vmem:[%s5324_s4 + $0x130] sm:$0xff] }
 0x370   : >> { %3450 = vst [vmem:[%s5320_s14 + $0xb4] sm:$0xff] %v3407_v29  ;;  %3410 = vst [vmem:[%s5320_s14 + $0x68] sm:$0xff] %v3409_v31  ;;  %v3503_v47 = vld [vmem:[%s5324_s4 + $0x138] sm:$0xff]  ;;  %v3505_v48 = vld [vmem:[%s5324_s4 + $0x140] sm:$0xff] }
 0x371   : >> { %3412 = vst [vmem:[%s5320_s14 + $0x70] sm:$0xff] %v3411_v33  ;;  %3414 = vst [vmem:[%s5320_s14 + $0x78] sm:$0xff] %v3413_v34  ;;  %v3507_v49 = vld [vmem:[%s5324_s4 + $0x148] sm:$0xff]  ;;  %v3509_v50 = vld [vmem:[%s5324_s4 + $0x150] sm:$0xff]  ;;  %s7149_s4 = smov %s6835_s27 }
 0x372   : >> { %3452 = vst [vmem:[%s5320_s14 + $0xbc] sm:$0xff] %v3409_v31  ;;  %3454 = vst [vmem:[%s5320_s14 + $0xc4] sm:$0xff] %v3411_v33 }
 0x373   : >> { %3456 = vst [vmem:[%s5320_s14 + $0xcc] sm:$0xff] %v3413_v34  ;;  %3416 = vst [vmem:[%s5320_s14 + $0x80] sm:$0xff] %v3415_v35 }
 0x374   : >> { %3418 = vst [vmem:[%s5320_s14 + $0x88] sm:$0xff] %v3417_v36  ;;  %3420 = vst [vmem:[%s5320_s14 + $0x90] sm:$0xff] %v3419_v37 }
 0x375   : >> { %3458 = vst [vmem:[%s5320_s14 + $0xd4] sm:$0xff] %v3415_v35  ;;  %3460 = vst [vmem:[%s5320_s14 + $0xdc] sm:$0xff] %v3417_v36 }
 0x376   : >> { %3462 = vst [vmem:[%s5320_s14 + $0xe4] sm:$0xff] %v3419_v37  ;;  %3422 = vst [vmem:[%s5320_s14 + $0x98] sm:$0xff] %v3421_v38 }
 0x377   : >> { %3424 = vst [vmem:[%s5320_s14 + $0xa0] sm:$0xff] %v3423_v39  ;;  %3464 = vst [vmem:[%s5320_s14 + $0xec] sm:$0xff] %v3421_v38  ;;  %3379 = sbr.rel (!%p3376_p8) target bundleno = 861 (0x35d), region = 279 }
 0x378   : >> { %3466 = vst [vmem:[%s5320_s14 + $0xf4] sm:$0xff] %v3423_v39  ;;  %3490 = vst [vmem:[%s5320_s14 + $0x154] sm:$0xff] %v3489_v40 }
 0x379   : >> { %3492 = vst [vmem:[%s5320_s14 + $0x15c] sm:$0xff] %v3491_v41  ;;  %3494 = vst [vmem:[%s5320_s14 + $0x164] sm:$0xff] %v3493_v42 }
 0x37a   : >> { %3496 = vst [vmem:[%s5320_s14 + $0x16c] sm:$0xff] %v3495_v43  ;;  %3498 = vst [vmem:[%s5320_s14 + $0x174] sm:$0xff] %v3497_v45 }
 0x37b   : >> { %3500 = vst [vmem:[%s5320_s14 + $0x17c] sm:$0xff] %v3499_v30  ;;  %3502 = vst [vmem:[%s5320_s14 + $0x184] sm:$0xff] %v3501_v46 }
 0x37c   : >> { %3504 = vst [vmem:[%s5320_s14 + $0x18c] sm:$0xff] %v3503_v47  ;;  %3506 = vst [vmem:[%s5320_s14 + $0x194] sm:$0xff] %v3505_v48 }
 0x37d   : >> { %3508 = vst [vmem:[%s5320_s14 + $0x19c] sm:$0xff] %v3507_v49  ;;  %3510 = vst [vmem:[%s5320_s14 + $0x1a4] sm:$0xff] %v3509_v50  ;;  %s7148_s14 = smov %s6838_s21 }
 0x37e PF: > { %s6898_s24 = sand.u32 31, %s3370_s15   ;;  %s4376_s29 = sshll.u32 %s6734_s28, 12 }
 0x37f   : > { %s3522_s8 = sshra.s32 %s4376_s29, 4  ;;  %p4337_p9 = scmp.le.s32.totalorder %s6898_s24, 0 }
 0x380   : > { %s6902_s6 = scalar_lea.vmem %s6630_s12, %s3522_s8 [#allocation3]   ;;  %s3526_s7 = scalar_lea.vmem %s6721_s30, %s3522_s8  }
 0x381   : > { %3913 = sbr.rel (%p4337_p9) target bundleno = 914 (0x392), region = 284  ;;  %s5334_s10 = smov (!%p4337_p9), %s3526_s7  }
 0x382   : > { %s5338_s5 = smov (!%p4337_p9), %s6902_s6   ;;  %s5342_s22 = smov (!%p4337_p9), 0  }
 0x383   : > { %s5346_s23 = smov (!%p4337_p9), 0  }
 0x388 LB: >> { %v3538_v51 = vld [vmem:[%s5340_s5] sm:$0xff]  ;;  %v3540_v52 = vld [vmem:[%s5340_s5 + $0x58] sm:$0xff]  ;;  %s3542_s15 = sadd.s32 1, %s5344_s22  ;;  %s3532_s23 = sadd.s32 1, %s5348_s23   ;;  %s5348_s23 = sphi %s5346_s23, %s3532_s23   ;;  %s5344_s22 = sphi %s5342_s22, %s5343_s22   ;;  %s5340_s5 = sphi %s5338_s5, %s3547_s5   ;;  %s5336_s10 = sphi %s5334_s10, %s3548_s10  }
 0x389   : >> { %3539 = vst [vmem:[%s5336_s10] sm:$0xff] %v3538_v51  ;;  %3541 = vst [vmem:[%s5336_s10 + $0xac] sm:$0xff] %v3540_v52  ;;  %p3543_p10 = scmp.ge.s32.totalorder %s3542_s15, %s6898_s24  ;;  %p3531_p11 = scmp.ge.s32.totalorder %s3532_s23, %s6898_s24 }
 0x38b   : >> { %s7175_s15 = smov (%p3543_p10, %s3542_s15), 0  ;;  %3534 = sbr.rel (!%p3531_p11) target bundleno = 904 (0x388), region = 290 }
 0x38c   : >> { %s4338_s28 = sshll.u32 %s7175_s15, 3  ;;  %s5343_s22 = smov %s7175_s15  }
 0x38d   : >> { %s3547_s5 = scalar_lea.vmem %s6902_s6, %s4338_s28 [#allocation3]   ;;  %s3548_s10 = scalar_lea.vmem %s3526_s7, %s4338_s28  }
 0x392 PF: > { %3551 = sbr.rel (%p3366_p5) target bundleno = 985 (0x3d9), region = 143  ;;  %s3553_s14 = ssub.s32 (!%p3366_p5), %s6723_s11, %s6727_s20 }
 0x393   : > { %s3557_s4 = sshrl.u32 (!%p3366_p5), %s6723_s11, 3  ;;  %s6916_s17 = scalar_lea.vmem (!%p3366_p5), %s6630_s12, %s3553_s14 [#allocation3] }
 0x394   : > { %s6919_s18 = scalar_lea.vmem (!%p3366_p5), %s6721_s30, %s3553_s14  ;;  %s6923_s9 = sshrl.u32 (!%p3366_p5), %s3557_s4, 5 }
 0x395   : > { %p4340_p12 = scmp.le.s32.totalorder (!%p3366_p5), %s6923_s9, 0 }
 0x399   : > { %3927 = sbr.rel (%p4340_p12) target bundleno = 961 (0x3c1), region = 295  ;;  %s7151_s25 = smov (!%p4340_p12), %s6721_s30 }
 0x39a   : > { %s7152_s26 = smov (!%p4340_p12), %s6630_s12  ;;  %s6932_s27 = smov (!%p4340_p12), 0  }
 0x39b   : > { %s6934_s21 = smov (!%p4340_p12), 0  }
 0x3a0 LB: >> { %v3612_v53 = vld [vmem:[%s5356_s26 + $0xa8] sm:$0xff]  ;;  %v3614_v54 = vld [vmem:[%s5356_s26 + $0xb0] sm:$0xff]  ;;  %v3616_v55 = vld [vmem:[%s5356_s26 + $0xb8] sm:$0xff]  ;;  %s3698_s24 = sadd.s32 1, %s5360_s27  ;;  %s3564_s21 = sadd.s32 1, %s5364_s21   ;;  %s5364_s21 = sphi %s6934_s21, %s3564_s21   ;;  %s5360_s27 = sphi %s6932_s27, %s7156_s27   ;;  %s5356_s26 = sphi %s7152_s26, %s7155_s26   ;;  %s5352_s25 = sphi %s7151_s25, %s7154_s25  }
 0x3a1   : >> { %3613 = vst [vmem:[%s5352_s25 + $0xa8] sm:$0xff] %v3612_v53  ;;  %3615 = vst [vmem:[%s5352_s25 + $0xb0] sm:$0xff] %v3614_v54  ;;  %v3618_v56 = vld [vmem:[%s5356_s26 + $0xc0] sm:$0xff]  ;;  %v3620_v57 = vld [vmem:[%s5356_s26 + $0xc8] sm:$0xff]  ;;  %p6979_p13 = scmp.ge.s32.totalorder %s3698_s24, %s6923_s9  ;;  %p3563_p0 = scmp.ge.s32.totalorder %s3564_s21, %s6923_s9 }
 0x3a2   : >> { %3617 = vst [vmem:[%s5352_s25 + $0xb8] sm:$0xff] %v3616_v55  ;;  %v3622_v59 = vld [vmem:[%s5356_s26 + $0xd0] sm:$0xff]  ;;  %3657 = vst [vmem:[%s5352_s25 + $0x104] sm:$0xff] %v3614_v54  ;;  %v3624_v60 = vld [vmem:[%s5356_s26 + $0xd8] sm:$0xff] }
 0x3a3   : >> { %3659 = vst [vmem:[%s5352_s25 + $0x10c] sm:$0xff] %v3616_v55  ;;  %3619 = vst [vmem:[%s5352_s25 + $0xc0] sm:$0xff] %v3618_v56  ;;  %v3626_v61 = vld [vmem:[%s5356_s26 + $0xe0] sm:$0xff]  ;;  %v3628_v62 = vld [vmem:[%s5356_s26 + $0xe8] sm:$0xff]  ;;  %s7177_s24 = smov (%p6979_p13, %s3698_s24), 0 }
 0x3a4   : >> { %3621 = vst [vmem:[%s5352_s25 + $0xc8] sm:$0xff] %v3620_v57  ;;  %3623 = vst [vmem:[%s5352_s25 + $0xd0] sm:$0xff] %v3622_v59  ;;  %v3630_v44 = vld [vmem:[%s5356_s26 + $0xf0] sm:$0xff]  ;;  %v3632_v63 = vld [vmem:[%s5356_s26 + $0xf8] sm:$0xff]  ;;  %s4341_s8 = sshll.u32 %s7177_s24, 8  ;;  %s7156_s27 = smov %s7177_s24 }
 0x3a5   : >> { %3661 = vst [vmem:[%s5352_s25 + $0x114] sm:$0xff] %v3618_v56  ;;  %3663 = vst [vmem:[%s5352_s25 + $0x11c] sm:$0xff] %v3620_v57  ;;  %v3570_v0 = vld [vmem:[%s5356_s26] sm:$0xff]  ;;  %v3572_v1 = vld [vmem:[%s5356_s26 + $0x8] sm:$0xff]  ;;  %s7024_s6 = scalar_lea.vmem %s6630_s12, %s4341_s8 [#allocation3]   ;;  %s7027_s7 = scalar_lea.vmem %s6721_s30, %s4341_s8  }
 0x3a6   : >> { %3665 = vst [vmem:[%s5352_s25 + $0x124] sm:$0xff] %v3622_v59  ;;  %3625 = vst [vmem:[%s5352_s25 + $0xd8] sm:$0xff] %v3624_v60  ;;  %v3574_v2 = vld [vmem:[%s5356_s26 + $0x10] sm:$0xff]  ;;  %v3576_v3 = vld [vmem:[%s5356_s26 + $0x18] sm:$0xff] }
 0x3a7   : >> { %3627 = vst [vmem:[%s5352_s25 + $0xe0] sm:$0xff] %v3626_v61  ;;  %3629 = vst [vmem:[%s5352_s25 + $0xe8] sm:$0xff] %v3628_v62  ;;  %v3578_v4 = vld [vmem:[%s5356_s26 + $0x20] sm:$0xff]  ;;  %v3580_v21 = vld [vmem:[%s5356_s26 + $0x28] sm:$0xff] }
 0x3a8   : >> { %3667 = vst [vmem:[%s5352_s25 + $0x12c] sm:$0xff] %v3624_v60  ;;  %3669 = vst [vmem:[%s5352_s25 + $0x134] sm:$0xff] %v3626_v61  ;;  %v3582_v5 = vld [vmem:[%s5356_s26 + $0x30] sm:$0xff]  ;;  %v3584_v6 = vld [vmem:[%s5356_s26 + $0x38] sm:$0xff] }
 0x3a9   : >> { %3671 = vst [vmem:[%s5352_s25 + $0x13c] sm:$0xff] %v3628_v62  ;;  %3631 = vst [vmem:[%s5352_s25 + $0xf0] sm:$0xff] %v3630_v44  ;;  %v3586_v32 = vld [vmem:[%s5356_s26 + $0x40] sm:$0xff]  ;;  %v3588_v7 = vld [vmem:[%s5356_s26 + $0x48] sm:$0xff] }
 0x3aa   : >> { %3633 = vst [vmem:[%s5352_s25 + $0xf8] sm:$0xff] %v3632_v63  ;;  %3571 = vst [vmem:[%s5352_s25] sm:$0xff] %v3570_v0  ;;  %v3590_v8 = vld [vmem:[%s5356_s26 + $0x50] sm:$0xff]  ;;  %v3592_v9 = vld [vmem:[%s5356_s26 + $0x58] sm:$0xff] }
 0x3ab   : >> { %3673 = vst [vmem:[%s5352_s25 + $0x144] sm:$0xff] %v3630_v44  ;;  %3675 = vst [vmem:[%s5352_s25 + $0x14c] sm:$0xff] %v3632_v63  ;;  %v3594_v58 = vld [vmem:[%s5356_s26 + $0x60] sm:$0xff]  ;;  %v3596_v10 = vld [vmem:[%s5356_s26 + $0x68] sm:$0xff] }
 0x3ac   : >> { %3573 = vst [vmem:[%s5352_s25 + $0x8] sm:$0xff] %v3572_v1  ;;  %3575 = vst [vmem:[%s5352_s25 + $0x10] sm:$0xff] %v3574_v2  ;;  %v3598_v11 = vld [vmem:[%s5356_s26 + $0x70] sm:$0xff]  ;;  %v3600_v12 = vld [vmem:[%s5356_s26 + $0x78] sm:$0xff] }
 0x3ad   : >> { %3577 = vst [vmem:[%s5352_s25 + $0x18] sm:$0xff] %v3576_v3  ;;  %3655 = vst [vmem:[%s5352_s25 + $0xfc] sm:$0xff] %v3612_v53  ;;  %v3602_v13 = vld [vmem:[%s5356_s26 + $0x80] sm:$0xff]  ;;  %v3604_v14 = vld [vmem:[%s5356_s26 + $0x88] sm:$0xff] }
 0x3ae   : >> { %3579 = vst [vmem:[%s5352_s25 + $0x20] sm:$0xff] %v3578_v4  ;;  %3581 = vst [vmem:[%s5352_s25 + $0x28] sm:$0xff] %v3580_v21  ;;  %v3606_v15 = vld [vmem:[%s5356_s26 + $0x90] sm:$0xff]  ;;  %v3608_v16 = vld [vmem:[%s5356_s26 + $0x98] sm:$0xff] }
 0x3af   : >> { %3583 = vst [vmem:[%s5352_s25 + $0x30] sm:$0xff] %v3582_v5  ;;  %3585 = vst [vmem:[%s5352_s25 + $0x38] sm:$0xff] %v3584_v6  ;;  %v3610_v17 = vld [vmem:[%s5356_s26 + $0xa0] sm:$0xff]  ;;  %v3678_v19 = vld [vmem:[%s5356_s26 + $0x108] sm:$0xff] }
 0x3b0   : >> { %3587 = vst [vmem:[%s5352_s25 + $0x40] sm:$0xff] %v3586_v32  ;;  %3589 = vst [vmem:[%s5352_s25 + $0x48] sm:$0xff] %v3588_v7  ;;  %v3676_v18 = vld [vmem:[%s5356_s26 + $0x100] sm:$0xff]  ;;  %v3680_v20 = vld [vmem:[%s5356_s26 + $0x110] sm:$0xff] }
 0x3b1   : >> { %3591 = vst [vmem:[%s5352_s25 + $0x50] sm:$0xff] %v3590_v8  ;;  %3593 = vst [vmem:[%s5352_s25 + $0x58] sm:$0xff] %v3592_v9  ;;  %v3682_v22 = vld [vmem:[%s5356_s26 + $0x118] sm:$0xff]  ;;  %v3684_v23 = vld [vmem:[%s5356_s26 + $0x120] sm:$0xff] }
 0x3b2   : >> { %3595 = vst [vmem:[%s5352_s25 + $0x60] sm:$0xff] %v3594_v58  ;;  %3635 = vst [vmem:[%s5352_s25 + $0xac] sm:$0xff] %v3592_v9  ;;  %v3686_v24 = vld [vmem:[%s5356_s26 + $0x128] sm:$0xff]  ;;  %v3688_v25 = vld [vmem:[%s5356_s26 + $0x130] sm:$0xff] }
 0x3b3   : >> { %3637 = vst [vmem:[%s5352_s25 + $0xb4] sm:$0xff] %v3594_v58  ;;  %3597 = vst [vmem:[%s5352_s25 + $0x68] sm:$0xff] %v3596_v10  ;;  %v3690_v26 = vld [vmem:[%s5356_s26 + $0x138] sm:$0xff]  ;;  %v3692_v27 = vld [vmem:[%s5356_s26 + $0x140] sm:$0xff] }
 0x3b4   : >> { %3599 = vst [vmem:[%s5352_s25 + $0x70] sm:$0xff] %v3598_v11  ;;  %3601 = vst [vmem:[%s5352_s25 + $0x78] sm:$0xff] %v3600_v12  ;;  %v3694_v28 = vld [vmem:[%s5356_s26 + $0x148] sm:$0xff]  ;;  %v3696_v29 = vld [vmem:[%s5356_s26 + $0x150] sm:$0xff]  ;;  %s7155_s26 = smov %s7024_s6 }
 0x3b5   : >> { %3639 = vst [vmem:[%s5352_s25 + $0xbc] sm:$0xff] %v3596_v10  ;;  %3641 = vst [vmem:[%s5352_s25 + $0xc4] sm:$0xff] %v3598_v11 }
 0x3b6   : >> { %3643 = vst [vmem:[%s5352_s25 + $0xcc] sm:$0xff] %v3600_v12  ;;  %3603 = vst [vmem:[%s5352_s25 + $0x80] sm:$0xff] %v3602_v13 }
 0x3b7   : >> { %3605 = vst [vmem:[%s5352_s25 + $0x88] sm:$0xff] %v3604_v14  ;;  %3607 = vst [vmem:[%s5352_s25 + $0x90] sm:$0xff] %v3606_v15 }
 0x3b8   : >> { %3645 = vst [vmem:[%s5352_s25 + $0xd4] sm:$0xff] %v3602_v13  ;;  %3647 = vst [vmem:[%s5352_s25 + $0xdc] sm:$0xff] %v3604_v14 }
 0x3b9   : >> { %3649 = vst [vmem:[%s5352_s25 + $0xe4] sm:$0xff] %v3606_v15  ;;  %3609 = vst [vmem:[%s5352_s25 + $0x98] sm:$0xff] %v3608_v16 }
 0x3ba   : >> { %3611 = vst [vmem:[%s5352_s25 + $0xa0] sm:$0xff] %v3610_v17  ;;  %3651 = vst [vmem:[%s5352_s25 + $0xec] sm:$0xff] %v3608_v16  ;;  %3566 = sbr.rel (!%p3563_p0) target bundleno = 928 (0x3a0), region = 301 }
 0x3bb   : >> { %3653 = vst [vmem:[%s5352_s25 + $0xf4] sm:$0xff] %v3610_v17  ;;  %3677 = vst [vmem:[%s5352_s25 + $0x154] sm:$0xff] %v3676_v18 }
 0x3bc   : >> { %3679 = vst [vmem:[%s5352_s25 + $0x15c] sm:$0xff] %v3678_v19  ;;  %3681 = vst [vmem:[%s5352_s25 + $0x164] sm:$0xff] %v3680_v20 }
 0x3bd   : >> { %3683 = vst [vmem:[%s5352_s25 + $0x16c] sm:$0xff] %v3682_v22  ;;  %3685 = vst [vmem:[%s5352_s25 + $0x174] sm:$0xff] %v3684_v23 }
 0x3be   : >> { %3687 = vst [vmem:[%s5352_s25 + $0x17c] sm:$0xff] %v3686_v24  ;;  %3689 = vst [vmem:[%s5352_s25 + $0x184] sm:$0xff] %v3688_v25 }
 0x3bf   : >> { %3691 = vst [vmem:[%s5352_s25 + $0x18c] sm:$0xff] %v3690_v26  ;;  %3693 = vst [vmem:[%s5352_s25 + $0x194] sm:$0xff] %v3692_v27 }
 0x3c0   : >> { %3695 = vst [vmem:[%s5352_s25 + $0x19c] sm:$0xff] %v3694_v28  ;;  %3697 = vst [vmem:[%s5352_s25 + $0x1a4] sm:$0xff] %v3696_v29  ;;  %s7154_s25 = smov %s7027_s7 }
 0x3c1 PF: > { %s7087_s10 = sand.u32 31, %s3557_s4   ;;  %s4378_s5 = sshll.u32 %s6923_s9, 12 }
 0x3c2   : > { %s3709_s22 = sshra.s32 %s4378_s5, 4  ;;  %p4346_p1 = scmp.le.s32.totalorder %s7087_s10, 0 }
 0x3c3   : > { %s7091_s23 = scalar_lea.vmem %s6630_s12, %s3709_s22 [#allocation3]   ;;  %s3713_s15 = scalar_lea.vmem %s6721_s30, %s3709_s22  }
 0x3c4   : > { %3941 = sbr.rel (%p4346_p1) target bundleno = 981 (0x3d5), region = 306  ;;  %s5366_s28 = smov (!%p4346_p1), %s3713_s15  }
 0x3c5   : > { %s5370_s14 = smov (!%p4346_p1), %s7091_s23   ;;  %s5374_s21 = smov (!%p4346_p1), 0  }
 0x3c6   : > { %s5378_s25 = smov (!%p4346_p1), 0  }
 0x3cb LB: >> { %v3725_v31 = vld [vmem:[%s5372_s14] sm:$0xff]  ;;  %v3727_v33 = vld [vmem:[%s5372_s14 + $0x58] sm:$0xff]  ;;  %s3729_s4 = sadd.s32 1, %s5376_s21  ;;  %s3719_s25 = sadd.s32 1, %s5380_s25   ;;  %s5380_s25 = sphi %s5378_s25, %s3719_s25   ;;  %s5376_s21 = sphi %s5374_s21, %s5375_s21   ;;  %s5372_s14 = sphi %s5370_s14, %s3734_s14   ;;  %s5368_s28 = sphi %s5366_s28, %s3735_s28  }
 0x3cc   : >> { %3726 = vst [vmem:[%s5368_s28] sm:$0xff] %v3725_v31  ;;  %3728 = vst [vmem:[%s5368_s28 + $0xac] sm:$0xff] %v3727_v33  ;;  %p3730_p2 = scmp.ge.s32.totalorder %s3729_s4, %s7087_s10  ;;  %p3718_p3 = scmp.ge.s32.totalorder %s3719_s25, %s7087_s10 }
 0x3ce   : >> { %s7179_s4 = smov (%p3730_p2, %s3729_s4), 0  ;;  %3721 = sbr.rel (!%p3718_p3) target bundleno = 971 (0x3cb), region = 312 }
 0x3cf   : >> { %s4347_s9 = sshll.u32 %s7179_s4, 3  ;;  %s5375_s21 = smov %s7179_s4  }
 0x3d0   : >> { %s3734_s14 = scalar_lea.vmem %s7091_s23, %s4347_s9 [#allocation3]   ;;  %s3735_s28 = scalar_lea.vmem %s3713_s15, %s4347_s9  }
 0x3d5 PF: > { %s5385_s26 = smov 0  }
 0x3d6   : > { %s3736_s27 = sshllo.u32 %s5385_s26, %s6727_s20 }
 0x3d7   : > { %v3745_v34 = vld [vmem:[%s6916_s17] sm:%s3736_s27]  ;;  %v3747_v35 = vld [vmem:[%s6916_s17 + $0x58] sm:%s3736_s27] }
 0x3d8   : > { %3746 = vst [vmem:[%s6919_s18] sm:%s3736_s27] %v3745_v34  ;;  %3748 = vst [vmem:[%s6919_s18 + $0xac] sm:%s3736_s27] %v3747_v35 }
 0x3d9 PF: > { %p4349_p5 = scmp.ge.u32.totalorder %s6723_s11, 8 }
 0x3da   : > { %s5386_s24 = smov (!%p4349_p5), 0  }
 0x3db   : > { %3351 = sbr.rel (%p4349_p5) target bundleno = 994 (0x3e2), region = 114  ;;  %s3352_s29 = sshllo.u32 (!%p4349_p5), %s5386_s24, %s6723_s11 }
 0x3dc   : > { %v3361_v36 = vld [vmem:[%s6630_s12] sm:%s3352_s29] (!%p4349_p5)  ;;  %v3363_v37 = vld [vmem:[%s6630_s12 + $0x58] sm:%s3352_s29] (!%p4349_p5) }
 0x3dd   : > { %3362 = vst [vmem:[%s6721_s30] sm:%s3352_s29] (!%p4349_p5), %v3361_v36  ;;  %3364 = vst [vmem:[%s6721_s30 + $0xac] sm:%s3352_s29] (!%p4349_p5), %v3363_v37 }
 0x3e2 PF: > { %p10_p4 = scmp.ge.s32.totalorder %s5426_s16, 4   ;;  %s7157_s12 = smov %s5248_s13 }
 0x3e3   : > { %s7158_s13 = smov %s5436_s19  ;;  %s7159_s14 = smov %s5426_s16 }
 0x3e4   :  { %12 = sbr.rel (!%p10_p4) target bundleno = 2 (0x2), region = 323 }

// kernel: net_forward.6
= control target key start
LH: loop header
LB: loop body
LE: loop exit
PB: predicated region body
PF: predicated region fallthrough
CT: control target
= control target key end

     0   :  { %s1712_s12 = smov 0   ;;  %s1714_s13 = smov 0   ;;  %s2103_s0 = inlined_call_operand.vmem [shape: bf16[16,400], index: 0, kind: input, shape index: {}]   ;;  %s2104_s1 = inlined_call_operand.vmem [shape: f32[16,1], index: 1, kind: input, shape index: {}]   ;;  %s2105_s2 = inlined_call_operand.vmem [shape: bf16[400,968], index: 2, kind: input, shape index: {}]   ;;  %s2106_s3 = inlined_call_operand.vmem [shape: bf16[16,968], index: 3, kind: output, shape index: {}]  }
   0x1   :  { %s1716_s14 = smov 0  }
   0x2 LB: > { %s1338_s15 = sadd.s32 4294967295, %s1689_s14   ;;  %s1729_s16 = sadd.s32 1, %s1689_s14   ;;  %s1689_s14 = sphi %s1716_s14, %s2110_s14   ;;  %s1685_s13 = sphi %s1714_s13, %s2109_s13   ;;  %s1681_s12 = sphi %s1712_s12, %s2108_s12  }
   0x3   : > { %s59_s17 = ssub.s32 %s1689_s14, %s1729_s16  ;;  %s62_s18 = sadd.s32 1, %s1685_s13 }
   0x4   : > { %p60_p0 = scmp.eq.s32.totalorder %s59_s17, 0  ;;  %p69_p1 = scmp.ne.s32.totalorder %s1685_s13, %s1681_s12 }
   0x5   : > { %p70_p2 = scmp.eq.s32.totalorder %s1689_s14, 0  ;;  %p99_p3 = scmp.eq.s32.totalorder %s1338_s15, 1 }
   0x6   : > { %s1740_s19 = scalar_select %p60_p0, %s1685_s13, %s62_s18  }
   0x7   : > { %p71_p4 = por %p70_p2, %p69_p1  ;;  %p1742_p5 = por %p99_p3, %p69_p1 }
   0x8   : > { %p1341_p6 = scmp.ge.s32.totalorder %s1689_s14, 2 }
   0xa   : > { %127 = sbr.rel (%p1341_p6) target bundleno = 71 (0x47), region = 24 }
  0x11   : > { %130 = sbr.rel (!%p71_p4) target bundleno = 71 (0x47), region = 28  ;;  %s132_s21 = sand.u32 (%p71_p4), 1, %s1685_s13  }
  0x12   : > { %s1461_s22 = sshll.u32 (%p71_p4), %s1689_s14, 4  ;;  %s1483_s23 = smul.u32 (%p71_p4), 800, %s132_s21 }
  0x13   : > { %s1752_s26 = scalar_lea.vmem (%p71_p4), %s2105_s2, %s1461_s22 }
  0x14   : > { %v150_v0 = vld [vmem:[%s1752_s26] sm:$0xff] (%p71_p4)  ;;  %v152_v1 = vld [vmem:[%s1752_s26 + $0x8] sm:$0xff] (%p71_p4)  ;;  %s1760_s27 = scalar_lea.vmem (%p71_p4), [#allocation2], %s1483_s23 }
  0x15   : > { %v154_v2 = vld [vmem:[%s1752_s26 + $0x20] sm:$0xff] (%p71_p4)  ;;  %v156_v3 = vld [vmem:[%s1752_s26 + $0x28] sm:$0xff] (%p71_p4)  ;;  %151 = vst [vmem:[%s1760_s27] sm:$0xff] (%p71_p4), %v150_v0  ;;  %153 = vst [vmem:[%s1760_s27 + $0x8] sm:$0xff] (%p71_p4), %v152_v1 }
  0x16   : > { %v158_v4 = vld [vmem:[%s1752_s26 + $0x40] sm:$0xff] (%p71_p4)  ;;  %v160_v5 = vld [vmem:[%s1752_s26 + $0x48] sm:$0xff] (%p71_p4)  ;;  %155 = vst [vmem:[%s1760_s27 + $0x10] sm:$0xff] (%p71_p4), %v154_v2  ;;  %157 = vst [vmem:[%s1760_s27 + $0x18] sm:$0xff] (%p71_p4), %v156_v3 }
  0x17   : > { %159 = vst [vmem:[%s1760_s27 + $0x20] sm:$0xff] (%p71_p4), %v158_v4  ;;  %161 = vst [vmem:[%s1760_s27 + $0x28] sm:$0xff] (%p71_p4), %v160_v5  ;;  %v162_v6 = vld [vmem:[%s1752_s26 + $0x60] sm:$0xff] (%p71_p4)  ;;  %v164_v7 = vld [vmem:[%s1752_s26 + $0x68] sm:$0xff] (%p71_p4) }
  0x18   : > { %v166_v8 = vld [vmem:[%s1752_s26 + $0x80] sm:$0xff]  ;;  %163 = vst [vmem:[%s1760_s27 + $0x30] sm:$0xff] %v162_v6  ;;  %165 = vst [vmem:[%s1760_s27 + $0x38] sm:$0xff] %v164_v7  ;;  %v168_v9 = vld [vmem:[%s1752_s26 + $0x88] sm:$0xff] }
  0x19   : > { %167 = vst [vmem:[%s1760_s27 + $0x40] sm:$0xff] %v166_v8  ;;  %v170_v10 = vld [vmem:[%s1752_s26 + $0xa0] sm:$0xff]  ;;  %v172_v11 = vld [vmem:[%s1752_s26 + $0xa8] sm:$0xff]  ;;  %169 = vst [vmem:[%s1760_s27 + $0x48] sm:$0xff] %v168_v9 }
  0x1a   : > { %171 = vst [vmem:[%s1760_s27 + $0x50] sm:$0xff] %v170_v10  ;;  %173 = vst [vmem:[%s1760_s27 + $0x58] sm:$0xff] %v172_v11  ;;  %v174_v12 = vld [vmem:[%s1752_s26 + $0xc0] sm:$0xff]  ;;  %v176_v13 = vld [vmem:[%s1752_s26 + $0xc8] sm:$0xff] }
  0x1b   : > { %v178_v14 = vld [vmem:[%s1752_s26 + $0xe0] sm:$0xff]  ;;  %175 = vst [vmem:[%s1760_s27 + $0x60] sm:$0xff] %v174_v12  ;;  %177 = vst [vmem:[%s1760_s27 + $0x68] sm:$0xff] %v176_v13  ;;  %v180_v15 = vld [vmem:[%s1752_s26 + $0xe8] sm:$0xff] }
  0x1c   : > { %179 = vst [vmem:[%s1760_s27 + $0x70] sm:$0xff] %v178_v14  ;;  %v182_v16 = vld [vmem:[%s1752_s26 + $0x100] sm:$0xff]  ;;  %v184_v17 = vld [vmem:[%s1752_s26 + $0x108] sm:$0xff]  ;;  %181 = vst [vmem:[%s1760_s27 + $0x78] sm:$0xff] %v180_v15 }
  0x1d   : > { %183 = vst [vmem:[%s1760_s27 + $0x80] sm:$0xff] %v182_v16  ;;  %185 = vst [vmem:[%s1760_s27 + $0x88] sm:$0xff] %v184_v17  ;;  %v186_v18 = vld [vmem:[%s1752_s26 + $0x120] sm:$0xff]  ;;  %v188_v19 = vld [vmem:[%s1752_s26 + $0x128] sm:$0xff] }
  0x1e   : > { %v190_v20 = vld [vmem:[%s1752_s26 + $0x140] sm:$0xff]  ;;  %187 = vst [vmem:[%s1760_s27 + $0x90] sm:$0xff] %v186_v18  ;;  %189 = vst [vmem:[%s1760_s27 + $0x98] sm:$0xff] %v188_v19  ;;  %v192_v21 = vld [vmem:[%s1752_s26 + $0x148] sm:$0xff] }
  0x1f   : > { %191 = vst [vmem:[%s1760_s27 + $0xa0] sm:$0xff] %v190_v20  ;;  %v194_v22 = vld [vmem:[%s1752_s26 + $0x160] sm:$0xff]  ;;  %v196_v23 = vld [vmem:[%s1752_s26 + $0x168] sm:$0xff]  ;;  %193 = vst [vmem:[%s1760_s27 + $0xa8] sm:$0xff] %v192_v21 }
  0x20   : > { %195 = vst [vmem:[%s1760_s27 + $0xb0] sm:$0xff] %v194_v22  ;;  %197 = vst [vmem:[%s1760_s27 + $0xb8] sm:$0xff] %v196_v23  ;;  %v198_v24 = vld [vmem:[%s1752_s26 + $0x180] sm:$0xff]  ;;  %v200_v25 = vld [vmem:[%s1752_s26 + $0x188] sm:$0xff] }
  0x21   : > { %v202_v26 = vld [vmem:[%s1752_s26 + $0x1a0] sm:$0xff]  ;;  %199 = vst [vmem:[%s1760_s27 + $0xc0] sm:$0xff] %v198_v24  ;;  %201 = vst [vmem:[%s1760_s27 + $0xc8] sm:$0xff] %v200_v25  ;;  %v204_v27 = vld [vmem:[%s1752_s26 + $0x1a8] sm:$0xff] }
  0x22   : > { %203 = vst [vmem:[%s1760_s27 + $0xd0] sm:$0xff] %v202_v26  ;;  %v206_v28 = vld [vmem:[%s1752_s26 + $0x1c0] sm:$0xff]  ;;  %v208_v29 = vld [vmem:[%s1752_s26 + $0x1c8] sm:$0xff]  ;;  %205 = vst [vmem:[%s1760_s27 + $0xd8] sm:$0xff] %v204_v27 }
  0x23   : > { %207 = vst [vmem:[%s1760_s27 + $0xe0] sm:$0xff] %v206_v28  ;;  %209 = vst [vmem:[%s1760_s27 + $0xe8] sm:$0xff] %v208_v29  ;;  %v210_v30 = vld [vmem:[%s1752_s26 + $0x1e0] sm:$0xff]  ;;  %v212_v31 = vld [vmem:[%s1752_s26 + $0x1e8] sm:$0xff] }
  0x24   : > { %v214_v32 = vld [vmem:[%s1752_s26 + $0x200] sm:$0xff]  ;;  %211 = vst [vmem:[%s1760_s27 + $0xf0] sm:$0xff] %v210_v30  ;;  %213 = vst [vmem:[%s1760_s27 + $0xf8] sm:$0xff] %v212_v31  ;;  %v216_v33 = vld [vmem:[%s1752_s26 + $0x208] sm:$0xff] }
  0x25   : > { %215 = vst [vmem:[%s1760_s27 + $0x100] sm:$0xff] %v214_v32  ;;  %v218_v34 = vld [vmem:[%s1752_s26 + $0x220] sm:$0xff]  ;;  %v220_v35 = vld [vmem:[%s1752_s26 + $0x228] sm:$0xff]  ;;  %217 = vst [vmem:[%s1760_s27 + $0x108] sm:$0xff] %v216_v33 }
  0x26   : > { %219 = vst [vmem:[%s1760_s27 + $0x110] sm:$0xff] %v218_v34  ;;  %221 = vst [vmem:[%s1760_s27 + $0x118] sm:$0xff] %v220_v35  ;;  %v222_v36 = vld [vmem:[%s1752_s26 + $0x240] sm:$0xff]  ;;  %v224_v37 = vld [vmem:[%s1752_s26 + $0x248] sm:$0xff] }
  0x27   : > { %v226_v38 = vld [vmem:[%s1752_s26 + $0x260] sm:$0xff]  ;;  %223 = vst [vmem:[%s1760_s27 + $0x120] sm:$0xff] %v222_v36  ;;  %225 = vst [vmem:[%s1760_s27 + $0x128] sm:$0xff] %v224_v37  ;;  %v228_v39 = vld [vmem:[%s1752_s26 + $0x268] sm:$0xff] }
  0x28   : > { %227 = vst [vmem:[%s1760_s27 + $0x130] sm:$0xff] %v226_v38  ;;  %v230_v40 = vld [vmem:[%s1752_s26 + $0x280] sm:$0xff]  ;;  %v232_v41 = vld [vmem:[%s1752_s26 + $0x288] sm:$0xff]  ;;  %229 = vst [vmem:[%s1760_s27 + $0x138] sm:$0xff] %v228_v39 }
  0x29   : > { %231 = vst [vmem:[%s1760_s27 + $0x140] sm:$0xff] %v230_v40  ;;  %233 = vst [vmem:[%s1760_s27 + $0x148] sm:$0xff] %v232_v41  ;;  %v234_v42 = vld [vmem:[%s1752_s26 + $0x2a0] sm:$0xff]  ;;  %v236_v43 = vld [vmem:[%s1752_s26 + $0x2a8] sm:$0xff] }
  0x2a   : > { %v238_v44 = vld [vmem:[%s1752_s26 + $0x2c0] sm:$0xff]  ;;  %235 = vst [vmem:[%s1760_s27 + $0x150] sm:$0xff] %v234_v42  ;;  %237 = vst [vmem:[%s1760_s27 + $0x158] sm:$0xff] %v236_v43  ;;  %v240_v45 = vld [vmem:[%s1752_s26 + $0x2c8] sm:$0xff] }
  0x2b   : > { %239 = vst [vmem:[%s1760_s27 + $0x160] sm:$0xff] %v238_v44  ;;  %v242_v46 = vld [vmem:[%s1752_s26 + $0x2e0] sm:$0xff]  ;;  %v244_v47 = vld [vmem:[%s1752_s26 + $0x2e8] sm:$0xff]  ;;  %241 = vst [vmem:[%s1760_s27 + $0x168] sm:$0xff] %v240_v45 }
  0x2c   : > { %243 = vst [vmem:[%s1760_s27 + $0x170] sm:$0xff] %v242_v46  ;;  %245 = vst [vmem:[%s1760_s27 + $0x178] sm:$0xff] %v244_v47  ;;  %v246_v48 = vld [vmem:[%s1752_s26 + $0x300] sm:$0xff]  ;;  %v248_v49 = vld [vmem:[%s1752_s26 + $0x308] sm:$0xff] }
  0x2d   : > { %v250_v50 = vld [vmem:[%s1752_s26 + $0x320] sm:$0xff]  ;;  %247 = vst [vmem:[%s1760_s27 + $0x180] sm:$0xff] %v246_v48  ;;  %249 = vst [vmem:[%s1760_s27 + $0x188] sm:$0xff] %v248_v49  ;;  %v252_v51 = vld [vmem:[%s1752_s26 + $0x328] sm:$0xff] }
  0x2e   : > { %251 = vst [vmem:[%s1760_s27 + $0x190] sm:$0xff] %v250_v50  ;;  %v254_v52 = vld [vmem:[%s1752_s26 + $0x340] sm:$0xff]  ;;  %v256_v53 = vld [vmem:[%s1752_s26 + $0x348] sm:$0xff]  ;;  %253 = vst [vmem:[%s1760_s27 + $0x198] sm:$0xff] %v252_v51 }
  0x2f   : > { %255 = vst [vmem:[%s1760_s27 + $0x1a0] sm:$0xff] %v254_v52  ;;  %257 = vst [vmem:[%s1760_s27 + $0x1a8] sm:$0xff] %v256_v53  ;;  %v258_v54 = vld [vmem:[%s1752_s26 + $0x360] sm:$0xff]  ;;  %v260_v55 = vld [vmem:[%s1752_s26 + $0x368] sm:$0xff] }
  0x30   : > { %v262_v56 = vld [vmem:[%s1752_s26 + $0x380] sm:$0xff]  ;;  %259 = vst [vmem:[%s1760_s27 + $0x1b0] sm:$0xff] %v258_v54  ;;  %261 = vst [vmem:[%s1760_s27 + $0x1b8] sm:$0xff] %v260_v55  ;;  %v264_v57 = vld [vmem:[%s1752_s26 + $0x388] sm:$0xff] }
  0x31   : > { %263 = vst [vmem:[%s1760_s27 + $0x1c0] sm:$0xff] %v262_v56  ;;  %v266_v58 = vld [vmem:[%s1752_s26 + $0x3a0] sm:$0xff]  ;;  %v268_v59 = vld [vmem:[%s1752_s26 + $0x3a8] sm:$0xff]  ;;  %265 = vst [vmem:[%s1760_s27 + $0x1c8] sm:$0xff] %v264_v57 }
  0x32   : > { %267 = vst [vmem:[%s1760_s27 + $0x1d0] sm:$0xff] %v266_v58  ;;  %269 = vst [vmem:[%s1760_s27 + $0x1d8] sm:$0xff] %v268_v59  ;;  %v270_v60 = vld [vmem:[%s1752_s26 + $0x3c0] sm:$0xff]  ;;  %v272_v61 = vld [vmem:[%s1752_s26 + $0x3c8] sm:$0xff] }
  0x33   : > { %v274_v62 = vld [vmem:[%s1752_s26 + $0x3e0] sm:$0xff]  ;;  %271 = vst [vmem:[%s1760_s27 + $0x1e0] sm:$0xff] %v270_v60  ;;  %273 = vst [vmem:[%s1760_s27 + $0x1e8] sm:$0xff] %v272_v61  ;;  %v276_v63 = vld [vmem:[%s1752_s26 + $0x3e8] sm:$0xff] }
  0x34   : > { %275 = vst [vmem:[%s1760_s27 + $0x1f0] sm:$0xff] %v274_v62  ;;  %v278_v0 = vld [vmem:[%s1752_s26 + $0x400] sm:$0xff]  ;;  %v280_v1 = vld [vmem:[%s1752_s26 + $0x408] sm:$0xff]  ;;  %277 = vst [vmem:[%s1760_s27 + $0x1f8] sm:$0xff] %v276_v63 }
  0x35   : > { %279 = vst [vmem:[%s1760_s27 + $0x200] sm:$0xff] %v278_v0  ;;  %281 = vst [vmem:[%s1760_s27 + $0x208] sm:$0xff] %v280_v1  ;;  %v282_v2 = vld [vmem:[%s1752_s26 + $0x420] sm:$0xff]  ;;  %v284_v3 = vld [vmem:[%s1752_s26 + $0x428] sm:$0xff] }
  0x36   : > { %v286_v4 = vld [vmem:[%s1752_s26 + $0x440] sm:$0xff]  ;;  %283 = vst [vmem:[%s1760_s27 + $0x210] sm:$0xff] %v282_v2  ;;  %285 = vst [vmem:[%s1760_s27 + $0x218] sm:$0xff] %v284_v3  ;;  %v288_v5 = vld [vmem:[%s1752_s26 + $0x448] sm:$0xff] }
  0x37   : > { %287 = vst [vmem:[%s1760_s27 + $0x220] sm:$0xff] %v286_v4  ;;  %v290_v6 = vld [vmem:[%s1752_s26 + $0x460] sm:$0xff]  ;;  %v292_v7 = vld [vmem:[%s1752_s26 + $0x468] sm:$0xff]  ;;  %289 = vst [vmem:[%s1760_s27 + $0x228] sm:$0xff] %v288_v5 }
  0x38   : > { %291 = vst [vmem:[%s1760_s27 + $0x230] sm:$0xff] %v290_v6  ;;  %293 = vst [vmem:[%s1760_s27 + $0x238] sm:$0xff] %v292_v7  ;;  %v294_v8 = vld [vmem:[%s1752_s26 + $0x480] sm:$0xff]  ;;  %v296_v9 = vld [vmem:[%s1752_s26 + $0x488] sm:$0xff] }
  0x39   : > { %v298_v10 = vld [vmem:[%s1752_s26 + $0x4a0] sm:$0xff]  ;;  %295 = vst [vmem:[%s1760_s27 + $0x240] sm:$0xff] %v294_v8  ;;  %297 = vst [vmem:[%s1760_s27 + $0x248] sm:$0xff] %v296_v9  ;;  %v300_v11 = vld [vmem:[%s1752_s26 + $0x4a8] sm:$0xff] }
  0x3a   : > { %299 = vst [vmem:[%s1760_s27 + $0x250] sm:$0xff] %v298_v10  ;;  %v302_v12 = vld [vmem:[%s1752_s26 + $0x4c0] sm:$0xff]  ;;  %v304_v13 = vld [vmem:[%s1752_s26 + $0x4c8] sm:$0xff]  ;;  %301 = vst [vmem:[%s1760_s27 + $0x258] sm:$0xff] %v300_v11 }
  0x3b   : > { %303 = vst [vmem:[%s1760_s27 + $0x260] sm:$0xff] %v302_v12  ;;  %305 = vst [vmem:[%s1760_s27 + $0x268] sm:$0xff] %v304_v13  ;;  %v306_v14 = vld [vmem:[%s1752_s26 + $0x4e0] sm:$0xff]  ;;  %v308_v15 = vld [vmem:[%s1752_s26 + $0x4e8] sm:$0xff] }
  0x3c   : > { %v310_v16 = vld [vmem:[%s1752_s26 + $0x500] sm:$0xff]  ;;  %307 = vst [vmem:[%s1760_s27 + $0x270] sm:$0xff] %v306_v14  ;;  %309 = vst [vmem:[%s1760_s27 + $0x278] sm:$0xff] %v308_v15  ;;  %v312_v17 = vld [vmem:[%s1752_s26 + $0x508] sm:$0xff] }
  0x3d   : > { %311 = vst [vmem:[%s1760_s27 + $0x280] sm:$0xff] %v310_v16  ;;  %v314_v18 = vld [vmem:[%s1752_s26 + $0x520] sm:$0xff]  ;;  %v316_v19 = vld [vmem:[%s1752_s26 + $0x528] sm:$0xff]  ;;  %313 = vst [vmem:[%s1760_s27 + $0x288] sm:$0xff] %v312_v17 }
  0x3e   : > { %315 = vst [vmem:[%s1760_s27 + $0x290] sm:$0xff] %v314_v18  ;;  %317 = vst [vmem:[%s1760_s27 + $0x298] sm:$0xff] %v316_v19  ;;  %v318_v20 = vld [vmem:[%s1752_s26 + $0x540] sm:$0xff]  ;;  %v320_v21 = vld [vmem:[%s1752_s26 + $0x548] sm:$0xff] }
  0x3f   : > { %v322_v22 = vld [vmem:[%s1752_s26 + $0x560] sm:$0xff]  ;;  %319 = vst [vmem:[%s1760_s27 + $0x2a0] sm:$0xff] %v318_v20  ;;  %321 = vst [vmem:[%s1760_s27 + $0x2a8] sm:$0xff] %v320_v21  ;;  %v324_v23 = vld [vmem:[%s1752_s26 + $0x568] sm:$0xff] }
  0x40   : > { %323 = vst [vmem:[%s1760_s27 + $0x2b0] sm:$0xff] %v322_v22  ;;  %v326_v24 = vld [vmem:[%s1752_s26 + $0x580] sm:$0xff]  ;;  %v328_v25 = vld [vmem:[%s1752_s26 + $0x588] sm:$0xff]  ;;  %325 = vst [vmem:[%s1760_s27 + $0x2b8] sm:$0xff] %v324_v23 }
  0x41   : > { %327 = vst [vmem:[%s1760_s27 + $0x2c0] sm:$0xff] %v326_v24  ;;  %329 = vst [vmem:[%s1760_s27 + $0x2c8] sm:$0xff] %v328_v25  ;;  %v330_v26 = vld [vmem:[%s1752_s26 + $0x5a0] sm:$0xff]  ;;  %v332_v27 = vld [vmem:[%s1752_s26 + $0x5a8] sm:$0xff] }
  0x42   : > { %v334_v28 = vld [vmem:[%s1752_s26 + $0x5c0] sm:$0xff]  ;;  %331 = vst [vmem:[%s1760_s27 + $0x2d0] sm:$0xff] %v330_v26  ;;  %333 = vst [vmem:[%s1760_s27 + $0x2d8] sm:$0xff] %v332_v27  ;;  %v336_v29 = vld [vmem:[%s1752_s26 + $0x5c8] sm:$0xff] }
  0x43   : > { %335 = vst [vmem:[%s1760_s27 + $0x2e0] sm:$0xff] %v334_v28  ;;  %v338_v30 = vld [vmem:[%s1752_s26 + $0x5e0] sm:$0xff]  ;;  %v340_v31 = vld [vmem:[%s1752_s26 + $0x5e8] sm:$0xff]  ;;  %337 = vst [vmem:[%s1760_s27 + $0x2e8] sm:$0xff] %v336_v29 }
  0x44   : > { %339 = vst [vmem:[%s1760_s27 + $0x2f0] sm:$0xff] %v338_v30  ;;  %341 = vst [vmem:[%s1760_s27 + $0x2f8] sm:$0xff] %v340_v31  ;;  %v342_v32 = vld [vmem:[%s1752_s26 + $0x600] sm:$0xff]  ;;  %v344_v33 = vld [vmem:[%s1752_s26 + $0x608] sm:$0xff] }
  0x45   : > { %v346_v34 = vld [vmem:[%s1752_s26 + $0x620] sm:$0xff]  ;;  %343 = vst [vmem:[%s1760_s27 + $0x300] sm:$0xff] %v342_v32  ;;  %345 = vst [vmem:[%s1760_s27 + $0x308] sm:$0xff] %v344_v33  ;;  %v348_v35 = vld [vmem:[%s1752_s26 + $0x628] sm:$0xff] }
  0x46   : > { %347 = vst [vmem:[%s1760_s27 + $0x310] sm:$0xff] %v346_v34  ;;  %349 = vst [vmem:[%s1760_s27 + $0x318] sm:$0xff] %v348_v35 }
  0x47 PF: > { %p1344_p7 = scmp.ge.s32.totalorder %s1689_s14, 1  ;;  %p354_p8 = scmp.lt.s32.totalorder %s1689_s14, 3 }
  0x49   : > { %p355_p9 = pnand %p1344_p7, %p354_p8 }
  0x4a   : > { %s361_s28 = sand.u32 (!%p355_p9), 1, %s1681_s12   ;;  %v1609_v36 = vld [vmem:[%s2103_s0 + $0x4] ss:$16 sps:$4 sm:$0xff] (!%p355_p9)   ;;  %v1691_v37 = vmov (!%p355_p9), 0   ;;  %v491_v40 = vld [vmem:[%s2104_s1 + $0x8] sm:$0xff] (!%p355_p9)  ;;  %vm1021_vm0 = vcmask (!%p355_p9), 130048  }
  0x4b   : > { %358 = sbr.rel (%p355_p9) target bundleno = 414 (0x19e), region = 51  ;;  %1510 = vset.pattern.permute.xlu0 (!%p355_p9), %v1691_v37  ;;  %v490_v38 = vld [vmem:[%s2104_s1] sm:$0xff] (!%p355_p9)  ;;  %1057 = vmatprep.mubr.bf16.mxu0 (!%p355_p9), %v1609_v36  ;;  %s2083_s23 = sshll.u32 (!%p355_p9), %s361_s28, 5 }
  0x4c   : > { %s1484_s29 = smul.u32 (!%p355_p9), 800, %s361_s28  ;;  %1143 = vmatprep.mubr.bf16.mxu1 (!%p355_p9), %v1609_v36  ;;  %494 = vperm.xlu0 (!%p355_p9), %1510, %v490_v38   ;;  %s382_s12 = scalar_lea.vmem (!%p355_p9), [#allocation3], %s2083_s23 }
  0x4e   : > { %s1967_s7 = scalar_lea.vmem (!%p355_p9), [#allocation2], %s1484_s29 }
  0x4f   : > { %v1511_v39 = vld [vmem:[%s1967_s7 + $0x4] ss:$16 sps:$4 sm:$0xff] (!%p355_p9)   ;;  %v1513_v41 = vld [vmem:[%s1967_s7 + $0xc] ss:$16 sps:$4 sm:$0xff] (!%p355_p9)   ;;  %v1515_v42 = vld [vmem:[%s1967_s7] ss:$16 sps:$4 sm:$0xff] (!%p355_p9)  }
  0x50   : > { %1025 = vmatprep.subr.bf16.mxu0 (!%p355_p9), %v1511_v39  ;;  %v1516_v43 = vld [vmem:[%s1967_s7 + $0x8] ss:$16 sps:$4 sm:$0xff] (!%p355_p9)   ;;  %1111 = vmatprep.subr.bf16.mxu1 (!%p355_p9), %v1513_v41  ;;  %v1517_v44 = vld [vmem:[%s1967_s7 + $0x24] ss:$16 sps:$4 sm:$0xff] (!%p355_p9)   ;;  %v1519_v45 = vld [vmem:[%s1967_s7 + $0x2c] ss:$16 sps:$4 sm:$0xff] (!%p355_p9)  }
  0x51   : > { %1026 = vmatpush1.bf16.msra.mxu0 (!%p355_p9), %v1515_v42  ;;  %1112 = vmatpush1.bf16.msra.mxu1 (!%p355_p9), %v1516_v43  ;;  %v1521_v46 = vld [vmem:[%s1967_s7 + $0x20] ss:$16 sps:$4 sm:$0xff] (!%p355_p9)   ;;  %v1522_v47 = vld [vmem:[%s1967_s7 + $0x28] ss:$16 sps:$4 sm:$0xff] (!%p355_p9)   ;;  %v1523_v48 = vld [vmem:[%s1967_s7 + $0x44] ss:$16 sps:$4 sm:$0xff] (!%p355_p9)  }
  0x52   : > { %1027 = vmatprep.subr.bf16.mxu0 %v1517_v44  ;;  %499 = vperm.xlu0 %1510, %v491_v40   ;;  %v1525_v49 = vld [vmem:[%s1967_s7 + $0x4c] ss:$16 sps:$4 sm:$0xff]   ;;  %v1527_v50 = vld [vmem:[%s1967_s7 + $0x40] ss:$16 sps:$4 sm:$0xff]   ;;  %v1528_v51 = vld [vmem:[%s1967_s7 + $0x48] ss:$16 sps:$4 sm:$0xff]  }
  0x53   : > { %1113 = vmatprep.subr.bf16.mxu1 %v1519_v45  ;;  %v1529_v52 = vld [vmem:[%s1967_s7 + $0x64] ss:$16 sps:$4 sm:$0xff]   ;;  %v1531_v53 = vld [vmem:[%s1967_s7 + $0x6c] ss:$16 sps:$4 sm:$0xff]   ;;  %v1533_v54 = vld [vmem:[%s1967_s7 + $0x60] ss:$16 sps:$4 sm:$0xff]  }
  0x54   : > { %v1534_v55 = vld [vmem:[%s1967_s7 + $0x68] ss:$16 sps:$4 sm:$0xff]   ;;  %v1535_v56 = vld [vmem:[%s1967_s7 + $0x84] ss:$16 sps:$4 sm:$0xff]   ;;  %v1537_v57 = vld [vmem:[%s1967_s7 + $0x8c] ss:$16 sps:$4 sm:$0xff]  }
  0x55   : > { %1028 = vmatpush1.bf16.msra.mxu0 %v1521_v46  ;;  %1114 = vmatpush1.bf16.msra.mxu1 %v1522_v47  ;;  %v1539_v58 = vld [vmem:[%s1967_s7 + $0x80] ss:$16 sps:$4 sm:$0xff]   ;;  %v1540_v59 = vld [vmem:[%s1967_s7 + $0x88] ss:$16 sps:$4 sm:$0xff]   ;;  %v1541_v60 = vld [vmem:[%s1967_s7 + $0xa4] ss:$16 sps:$4 sm:$0xff]  }
  0x56   : > { %1029 = vmatprep.subr.bf16.mxu0 %v1523_v48  ;;  %1115 = vmatprep.subr.bf16.mxu1 %v1525_v49  ;;  %v1543_v61 = vld [vmem:[%s1967_s7 + $0xac] ss:$16 sps:$4 sm:$0xff]   ;;  %v1545_v62 = vld [vmem:[%s1967_s7 + $0xa0] ss:$16 sps:$4 sm:$0xff]   ;;  %v1546_v63 = vld [vmem:[%s1967_s7 + $0xa8] ss:$16 sps:$4 sm:$0xff]  }
  0x57   : > { %v1547_v0 = vld [vmem:[%s1967_s7 + $0xc4] ss:$16 sps:$4 sm:$0xff]   ;;  %v1549_v1 = vld [vmem:[%s1967_s7 + $0xcc] ss:$16 sps:$4 sm:$0xff]   ;;  %v1551_v2 = vld [vmem:[%s1967_s7 + $0xc0] ss:$16 sps:$4 sm:$0xff]  }
  0x58   : > { %v1552_v3 = vld [vmem:[%s1967_s7 + $0xc8] ss:$16 sps:$4 sm:$0xff]   ;;  %v1553_v4 = vld [vmem:[%s1967_s7 + $0xe4] ss:$16 sps:$4 sm:$0xff]   ;;  %v1555_v5 = vld [vmem:[%s1967_s7 + $0xec] ss:$16 sps:$4 sm:$0xff]  }
  0x59   : > { %1030 = vmatpush1.bf16.msra.mxu0 %v1527_v50  ;;  %1116 = vmatpush1.bf16.msra.mxu1 %v1528_v51  ;;  %v1557_v6 = vld [vmem:[%s1967_s7 + $0xe0] ss:$16 sps:$4 sm:$0xff]   ;;  %v1558_v7 = vld [vmem:[%s1967_s7 + $0xe8] ss:$16 sps:$4 sm:$0xff]   ;;  %v1559_v8 = vld [vmem:[%s1967_s7 + $0x104] ss:$16 sps:$4 sm:$0xff]  }
  0x5a   : > { %1031 = vmatprep.subr.bf16.mxu0 %v1529_v52  ;;  %1117 = vmatprep.subr.bf16.mxu1 %v1531_v53  ;;  %v1561_v9 = vld [vmem:[%s1967_s7 + $0x10c] ss:$16 sps:$4 sm:$0xff]   ;;  %v1563_v10 = vld [vmem:[%s1967_s7 + $0x100] ss:$16 sps:$4 sm:$0xff]   ;;  %v1564_v11 = vld [vmem:[%s1967_s7 + $0x108] ss:$16 sps:$4 sm:$0xff]  }
  0x5b   : > { %v1565_v12 = vld [vmem:[%s1967_s7 + $0x124] ss:$16 sps:$4 sm:$0xff]   ;;  %v1567_v13 = vld [vmem:[%s1967_s7 + $0x12c] ss:$16 sps:$4 sm:$0xff]   ;;  %v1569_v14 = vld [vmem:[%s1967_s7 + $0x120] ss:$16 sps:$4 sm:$0xff]  }
  0x5c   : > { %v1570_v15 = vld [vmem:[%s1967_s7 + $0x128] ss:$16 sps:$4 sm:$0xff]   ;;  %v1571_v16 = vld [vmem:[%s1967_s7 + $0x144] ss:$16 sps:$4 sm:$0xff]   ;;  %v1573_v17 = vld [vmem:[%s1967_s7 + $0x14c] ss:$16 sps:$4 sm:$0xff]  }
  0x5d   : > { %1032 = vmatpush1.bf16.msra.mxu0 %v1533_v54  ;;  %1118 = vmatpush1.bf16.msra.mxu1 %v1534_v55  ;;  %v1575_v18 = vld [vmem:[%s1967_s7 + $0x140] ss:$16 sps:$4 sm:$0xff]   ;;  %v1576_v19 = vld [vmem:[%s1967_s7 + $0x148] ss:$16 sps:$4 sm:$0xff]   ;;  %v1577_v20 = vld [vmem:[%s1967_s7 + $0x164] ss:$16 sps:$4 sm:$0xff]  }
  0x5e   : > { %1033 = vmatprep.subr.bf16.mxu0 %v1535_v56  ;;  %1119 = vmatprep.subr.bf16.mxu1 %v1537_v57  ;;  %v1579_v21 = vld [vmem:[%s1967_s7 + $0x16c] ss:$16 sps:$4 sm:$0xff]   ;;  %v1581_v22 = vld [vmem:[%s1967_s7 + $0x160] ss:$16 sps:$4 sm:$0xff]   ;;  %v1582_v23 = vld [vmem:[%s1967_s7 + $0x168] ss:$16 sps:$4 sm:$0xff]  }
  0x5f   : > { %v1583_v24 = vld [vmem:[%s1967_s7 + $0x184] ss:$16 sps:$4 sm:$0xff]   ;;  %v1585_v25 = vld [vmem:[%s1967_s7 + $0x18c] ss:$16 sps:$4 sm:$0xff]   ;;  %v1587_v26 = vld [vmem:[%s1967_s7 + $0x180] ss:$16 sps:$4 sm:$0xff]  }
  0x60   : > { %v1588_v27 = vld [vmem:[%s1967_s7 + $0x188] ss:$16 sps:$4 sm:$0xff]   ;;  %v1589_v28 = vld [vmem:[%s1967_s7 + $0x1a4] ss:$16 sps:$4 sm:$0xff]   ;;  %v1591_v29 = vld [vmem:[%s1967_s7 + $0x1ac] ss:$16 sps:$4 sm:$0xff]  }
  0x61   : > { %1034 = vmatpush1.bf16.msra.mxu0 %v1539_v58  ;;  %1120 = vmatpush1.bf16.msra.mxu1 %v1540_v59  ;;  %v1593_v30 = vld [vmem:[%s1967_s7 + $0x1a0] ss:$16 sps:$4 sm:$0xff]   ;;  %v1594_v31 = vld [vmem:[%s1967_s7 + $0x1a8] ss:$16 sps:$4 sm:$0xff]   ;;  %v1595_v32 = vld [vmem:[%s1967_s7 + $0x1c4] ss:$16 sps:$4 sm:$0xff]  }
  0x62   : > { %1035 = vmatprep.subr.bf16.mxu0 %v1541_v60  ;;  %1121 = vmatprep.subr.bf16.mxu1 %v1543_v61  ;;  %v1597_v33 = vld [vmem:[%s1967_s7 + $0x1cc] ss:$16 sps:$4 sm:$0xff]   ;;  %v1599_v34 = vld [vmem:[%s1967_s7 + $0x1c0] ss:$16 sps:$4 sm:$0xff]   ;;  %v1600_v35 = vld [vmem:[%s1967_s7 + $0x1c8] ss:$16 sps:$4 sm:$0xff]  }
  0x63   : > { %v1601_v36 = vld [vmem:[%s1967_s7 + $0x1e4] ss:$16 sps:$4 sm:$0xff]   ;;  %v1603_v37 = vld [vmem:[%s1967_s7 + $0x1ec] ss:$16 sps:$4 sm:$0xff]   ;;  %v1605_v38 = vld [vmem:[%s1967_s7 + $0x1e0] ss:$16 sps:$4 sm:$0xff]  }
  0x64   : > { %v1606_v39 = vld [vmem:[%s1967_s7 + $0x1e8] ss:$16 sps:$4 sm:$0xff]   ;;  %v1612_v40 = vld [vmem:[%s1967_s7 + $0x204] ss:$16 sps:$4 sm:$0xff]   ;;  %v1615_v41 = vld [vmem:[%s1967_s7 + $0x20c] ss:$16 sps:$4 sm:$0xff]  }
  0x65   : > { %1036 = vmatpush1.bf16.msra.mxu0 %v1545_v62  ;;  %1122 = vmatpush1.bf16.msra.mxu1 %v1546_v63  ;;  %v1607_v42 = vld [vmem:[%s2103_s0] ss:$16 sps:$4 sm:$0xff]   ;;  %v1613_v44 = vld [vmem:[%s1967_s7 + $0x208] ss:$16 sps:$4 sm:$0xff]   ;;  %v1618_v45 = vld [vmem:[%s1967_s7 + $0x224] ss:$16 sps:$4 sm:$0xff]  }
  0x66   : > { %1037 = vmatprep.subr.bf16.mxu0 %v1547_v0  ;;  %1123 = vmatprep.subr.bf16.mxu1 %v1549_v1  ;;  %v1610_v43 = vld [vmem:[%s1967_s7 + $0x200] ss:$16 sps:$4 sm:$0xff]   ;;  %v1621_v46 = vld [vmem:[%s1967_s7 + $0x22c] ss:$16 sps:$4 sm:$0xff]   ;;  %v1619_v49 = vld [vmem:[%s1967_s7 + $0x228] ss:$16 sps:$4 sm:$0xff]  }
  0x67   : > { %v1664_v47 = vld [vmem:[%s2103_s0 + $0xc] ss:$16 sps:$4 sm:$0xff]   ;;  %v1616_v48 = vld [vmem:[%s1967_s7 + $0x220] ss:$16 sps:$4 sm:$0xff]   ;;  %v1624_v50 = vld [vmem:[%s1967_s7 + $0x244] ss:$16 sps:$4 sm:$0xff]  }
  0x68   : > { %v1627_v51 = vld [vmem:[%s1967_s7 + $0x24c] ss:$16 sps:$4 sm:$0xff]   ;;  %v1622_v52 = vld [vmem:[%s1967_s7 + $0x240] ss:$16 sps:$4 sm:$0xff]   ;;  %v1625_v53 = vld [vmem:[%s1967_s7 + $0x248] ss:$16 sps:$4 sm:$0xff]  }
  0x69   : > { %1038 = vmatpush1.bf16.msra.mxu0 %v1551_v2  ;;  %1124 = vmatpush1.bf16.msra.mxu1 %v1552_v3  ;;  %v1630_v54 = vld [vmem:[%s1967_s7 + $0x264] ss:$16 sps:$4 sm:$0xff]   ;;  %v1633_v55 = vld [vmem:[%s1967_s7 + $0x26c] ss:$16 sps:$4 sm:$0xff]   ;;  %v1628_v56 = vld [vmem:[%s1967_s7 + $0x260] ss:$16 sps:$4 sm:$0xff]  }
  0x6a   : > { %1039 = vmatprep.subr.bf16.mxu0 %v1553_v4  ;;  %1125 = vmatprep.subr.bf16.mxu1 %v1555_v5  ;;  %v1631_v57 = vld [vmem:[%s1967_s7 + $0x268] ss:$16 sps:$4 sm:$0xff]   ;;  %v1636_v58 = vld [vmem:[%s1967_s7 + $0x284] ss:$16 sps:$4 sm:$0xff]   ;;  %v1639_v59 = vld [vmem:[%s1967_s7 + $0x28c] ss:$16 sps:$4 sm:$0xff]  }
  0x6b   : > { %v1634_v60 = vld [vmem:[%s1967_s7 + $0x280] ss:$16 sps:$4 sm:$0xff]   ;;  %v1637_v61 = vld [vmem:[%s1967_s7 + $0x288] ss:$16 sps:$4 sm:$0xff]   ;;  %v1642_v62 = vld [vmem:[%s1967_s7 + $0x2a4] ss:$16 sps:$4 sm:$0xff]  }
  0x6c   : > { %v1645_v63 = vld [vmem:[%s1967_s7 + $0x2ac] ss:$16 sps:$4 sm:$0xff]   ;;  %v1640_v0 = vld [vmem:[%s1967_s7 + $0x2a0] ss:$16 sps:$4 sm:$0xff]   ;;  %v1643_v1 = vld [vmem:[%s1967_s7 + $0x2a8] ss:$16 sps:$4 sm:$0xff]  }
  0x6d   : > { %1040 = vmatpush1.bf16.msra.mxu0 %v1557_v6  ;;  %1126 = vmatpush1.bf16.msra.mxu1 %v1558_v7  ;;  %v1648_v2 = vld [vmem:[%s1967_s7 + $0x2c4] ss:$16 sps:$4 sm:$0xff]   ;;  %v1651_v3 = vld [vmem:[%s1967_s7 + $0x2cc] ss:$16 sps:$4 sm:$0xff]   ;;  %v1646_v4 = vld [vmem:[%s1967_s7 + $0x2c0] ss:$16 sps:$4 sm:$0xff]  }
  0x6e   : > { %1041 = vmatprep.subr.bf16.mxu0 %v1559_v8  ;;  %1127 = vmatprep.subr.bf16.mxu1 %v1561_v9  ;;  %v1649_v5 = vld [vmem:[%s1967_s7 + $0x2c8] ss:$16 sps:$4 sm:$0xff]   ;;  %v1654_v6 = vld [vmem:[%s1967_s7 + $0x2e4] ss:$16 sps:$4 sm:$0xff]   ;;  %v1657_v7 = vld [vmem:[%s1967_s7 + $0x2ec] ss:$16 sps:$4 sm:$0xff]  }
  0x6f   : > { %v1652_v8 = vld [vmem:[%s1967_s7 + $0x2e0] ss:$16 sps:$4 sm:$0xff]   ;;  %v1655_v9 = vld [vmem:[%s1967_s7 + $0x2e8] ss:$16 sps:$4 sm:$0xff]   ;;  %s1466_s24 = sshll.u32 (%p1742_p5), %s1338_s15, 4 }
  0x70   : > { %s1258_s27 = scalar_lea.vmem (%p1742_p5), %s2106_s3, %s1466_s24 }
  0x71   : > { %1042 = vmatpush1.bf16.msra.mxu0 %v1563_v10  ;;  %1128 = vmatpush1.bf16.msra.mxu1 %v1564_v11  ;;  %v1660_v10 = vld [vmem:[%s1967_s7 + $0x304] ss:$16 sps:$4 sm:$0xff]   ;;  %v1663_v11 = vld [vmem:[%s1967_s7 + $0x30c] ss:$16 sps:$4 sm:$0xff]  }
  0x72   : > { %1043 = vmatprep.subr.bf16.mxu0 %v1565_v12  ;;  %1129 = vmatprep.subr.bf16.mxu1 %v1567_v13  ;;  %v1658_v12 = vld [vmem:[%s1967_s7 + $0x300] ss:$16 sps:$4 sm:$0xff]   ;;  %v1661_v13 = vld [vmem:[%s1967_s7 + $0x308] ss:$16 sps:$4 sm:$0xff]  }
  0x75   : > { %1044 = vmatpush1.bf16.msra.mxu0 %v1569_v14  ;;  %1130 = vmatpush1.bf16.msra.mxu1 %v1570_v15  ;;  %v1666_v14 = vld [vmem:[%s2103_s0 + $0x8] ss:$16 sps:$4 sm:$0xff]  }
  0x76   : > { %1045 = vmatprep.subr.bf16.mxu0 %v1571_v16  ;;  %1131 = vmatprep.subr.bf16.mxu1 %v1573_v17 }
  0x79   : > { %1046 = vmatpush1.bf16.msra.mxu0 %v1575_v18  ;;  %1132 = vmatpush1.bf16.msra.mxu1 %v1576_v19 }
  0x7a   : > { %1047 = vmatprep.subr.bf16.mxu0 %v1577_v20  ;;  %1133 = vmatprep.subr.bf16.mxu1 %v1579_v21 }
  0x7d   : > { %1048 = vmatpush1.bf16.msra.mxu0 %v1581_v22  ;;  %1134 = vmatpush1.bf16.msra.mxu1 %v1582_v23 }
  0x7e   : > { %1049 = vmatprep.subr.bf16.mxu0 %v1583_v24  ;;  %1135 = vmatprep.subr.bf16.mxu1 %v1585_v25 }
  0x81   : > { %1050 = vmatpush1.bf16.msra.mxu0 %v1587_v26  ;;  %1136 = vmatpush1.bf16.msra.mxu1 %v1588_v27 }
  0x82   : > { %1051 = vmatprep.subr.bf16.mxu0 %v1589_v28  ;;  %1137 = vmatprep.subr.bf16.mxu1 %v1591_v29 }
  0x85   : > { %1052 = vmatpush1.bf16.msra.mxu0 %v1593_v30  ;;  %1138 = vmatpush1.bf16.msra.mxu1 %v1594_v31 }
  0x86   : > { %1053 = vmatprep.subr.bf16.mxu0 %v1595_v32  ;;  %1139 = vmatprep.subr.bf16.mxu1 %v1597_v33 }
  0x89   : > { %1054 = vmatpush1.bf16.msra.mxu0 %v1599_v34  ;;  %1140 = vmatpush1.bf16.msra.mxu1 %v1600_v35 }
  0x8a   : > { %1055 = vmatprep.subr.bf16.mxu0 %v1601_v36  ;;  %1141 = vmatprep.subr.bf16.mxu1 %v1603_v37 }
  0x8d   : > { %1056 = vmatpush1.bf16.msra.mxu0 %v1605_v38  ;;  %1142 = vmatpush1.bf16.msra.mxu1 %v1606_v39 }
  0x8e   : > { %1068 = vmatprep.subr.bf16.mxu0 %v1612_v40  ;;  %1154 = vmatprep.subr.bf16.mxu1 %v1615_v41 }
  0x90   : > { %1058 = vmatmul.mubr.bf16.vlgmr.msra.gmra.mrb[0].mxu0 %v1607_v42  ;;  %1144 = vmatmul.mubr.bf16.vlgmr.msra.gmra.mrb[0].mxu1 %v1607_v42 }
  0x91   : > { %1069 = vmatpush1.bf16.msra.mxu0 %v1610_v43  ;;  %1155 = vmatpush1.bf16.msra.mxu1 %v1613_v44 }
  0x92   : > { %1070 = vmatprep.subr.bf16.mxu0 %v1618_v45  ;;  %1156 = vmatprep.subr.bf16.mxu1 %v1621_v46 }
  0x93   : > { %1450 = vmatprep.mubr.msk.bf16.mxu0 %vm1021_vm0, %v1664_v47  ;;  %1451 = vmatprep.mubr.msk.bf16.mxu1 %vm1021_vm0, %v1664_v47 }
  0x95   : > { %1071 = vmatpush1.bf16.msra.mxu0 %v1616_v48  ;;  %1157 = vmatpush1.bf16.msra.mxu1 %v1619_v49 }
  0x96   : > { %1072 = vmatprep.subr.bf16.mxu0 %v1624_v50  ;;  %1158 = vmatprep.subr.bf16.mxu1 %v1627_v51 }
  0x99   : > { %1073 = vmatpush1.bf16.msra.mxu0 %v1622_v52  ;;  %1159 = vmatpush1.bf16.msra.mxu1 %v1625_v53 }
  0x9a   : > { %1074 = vmatprep.subr.bf16.mxu0 %v1630_v54  ;;  %1160 = vmatprep.subr.bf16.mxu1 %v1633_v55 }
  0x9d   : > { %1075 = vmatpush1.bf16.msra.mxu0 %v1628_v56  ;;  %1161 = vmatpush1.bf16.msra.mxu1 %v1631_v57 }
  0x9e   : > { %1076 = vmatprep.subr.bf16.mxu0 %v1636_v58  ;;  %1162 = vmatprep.subr.bf16.mxu1 %v1639_v59 }
  0xa1   : > { %1077 = vmatpush1.bf16.msra.mxu0 %v1634_v60  ;;  %1163 = vmatpush1.bf16.msra.mxu1 %v1637_v61 }
  0xa2   : > { %1078 = vmatprep.subr.bf16.mxu0 %v1642_v62  ;;  %1164 = vmatprep.subr.bf16.mxu1 %v1645_v63 }
  0xa5   : > { %1079 = vmatpush1.bf16.msra.mxu0 %v1640_v0  ;;  %1165 = vmatpush1.bf16.msra.mxu1 %v1643_v1 }
  0xa6   : > { %1080 = vmatprep.subr.bf16.mxu0 %v1648_v2  ;;  %1166 = vmatprep.subr.bf16.mxu1 %v1651_v3 }
  0xa9   : > { %1081 = vmatpush1.bf16.msra.mxu0 %v1646_v4  ;;  %1167 = vmatpush1.bf16.msra.mxu1 %v1649_v5 }
  0xaa   : > { %1082 = vmatprep.subr.bf16.mxu0 %v1654_v6  ;;  %1168 = vmatprep.subr.bf16.mxu1 %v1657_v7 }
  0xad   : > { %1083 = vmatpush1.bf16.msra.mxu0 %v1652_v8  ;;  %1169 = vmatpush1.bf16.msra.mxu1 %v1655_v9 }
  0xae   : > { %1084 = vmatprep.subr.bf16.mxu0 %v1660_v10  ;;  %1170 = vmatprep.subr.bf16.mxu1 %v1663_v11 }
  0xb1   : > { %1085 = vmatpush1.bf16.msra.mxu0 %v1658_v12  ;;  %1171 = vmatpush1.bf16.msra.mxu1 %v1661_v13 }
  0xb4   : > { %1101 = vmatmul.mubr.bf16.vlgmr.msra.gmra.mrb[0].mxu0 %v1666_v14  ;;  %1187 = vmatmul.mubr.bf16.vlgmr.msra.gmra.mrb[0].mxu1 %v1666_v14 }
  0xcb   : > { %v495_v15 = vpop.permute.xlu0 %494 }
  0xd1   : > { %v500_v28 = vpop.permute.xlu0 %499 }
 0x187   : > { %v1102_v16 = vpop.f32.mrb[0].mxu0  ;;  %v1188_v17 = vpop.f32.mrb[0].mxu1 }
 0x188   : > { %v1467_v18 = vadd.f32 %v1102_v16, %v495_v15  ;;  %v1471_v19 = vadd.f32 %v1188_v17, %v495_v15  ;;  %v1104_v20 = vpop.f32.mrb[1].mxu0  ;;  %v1190_v21 = vpop.f32.mrb[1].mxu1 }
 0x189   : > { %v1468_v22 = vadd.f32 %v1104_v20, %v495_v15  ;;  %v1472_v23 = vadd.f32 %v1190_v21, %v495_v15  ;;  %v1106_v24 = vpop.f32.mrb[2].mxu0  ;;  %v1192_v25 = vpop.f32.mrb[2].mxu1 }
 0x18a   : > { %vm1197_vm1 = vcmp.ge.f32.partialorder %v1467_v18, 0.0  ;;  %v1205_v26 = vmul.f32 0.01, %v1467_v18  ;;  %vm1199_vm2 = vcmp.ge.f32.partialorder %v1471_v19, 0.0  ;;  %v1207_v27 = vmul.f32 0.01, %v1471_v19 }
 0x18b   : > { %vm1198_vm3 = vcmp.ge.f32.partialorder %v1468_v22, 0.0  ;;  %v1206_v29 = vmul.f32 0.01, %v1468_v22  ;;  %vm1200_vm4 = vcmp.ge.f32.partialorder %v1472_v23, 0.0  ;;  %v1208_v30 = vmul.f32 0.01, %v1472_v23 }
 0x18c   : > { %v1213_v31 = vsel %vm1197_vm1, %v1467_v18, %v1205_v26  ;;  %v1215_v32 = vsel %vm1199_vm2, %v1471_v19, %v1207_v27  ;;  %v1469_v33 = vadd.f32 %v1106_v24, %v500_v28  ;;  %v1473_v34 = vadd.f32 %v1192_v25, %v500_v28  ;;  %v1108_v35 = vpop.f32.mrb[3].mxu0  ;;  %v1194_v36 = vpop.f32.mrb[3].mxu1 }
 0x18d   : > { %v1214_v37 = vsel %vm1198_vm3, %v1468_v22, %v1206_v29  ;;  %v1216_v38 = vsel %vm1200_vm4, %v1472_v23, %v1208_v30  ;;  %v1470_v39 = vadd.f32 %v1108_v35, %v500_v28  ;;  %v1474_v40 = vadd.f32 %v1194_v36, %v500_v28 }
 0x18e   : > { %v1462_v41 = vpack.c.bf16 %v1214_v37, %v1213_v31  ;;  %v1463_v42 = vpack.c.bf16 %v1216_v38, %v1215_v32  ;;  %vm1201_vm5 = vcmp.ge.f32.partialorder %v1469_v33, 0.0  ;;  %v1209_v43 = vmul.f32 0.01, %v1469_v33 }
 0x18f   : > { %vm1203_vm6 = vcmp.ge.f32.partialorder %v1473_v34, 0.0  ;;  %v1211_v44 = vmul.f32 0.01, %v1473_v34  ;;  %vm1202_vm7 = vcmp.ge.f32.partialorder %v1470_v39, 0.0  ;;  %v1210_v45 = vmul.f32 0.01, %v1470_v39 }
 0x190   : > { %1245 = vst [vmem:[%s382_s12] sm:$0xff] %v1462_v41  ;;  %1246 = vst [vmem:[%s382_s12 + $0x8] sm:$0xff] %v1463_v42  ;;  %v1217_v46 = vsel %vm1201_vm5, %v1469_v33, %v1209_v43  ;;  %vm1204_vm8 = vcmp.ge.f32.partialorder %v1474_v40, 0.0  ;;  %v1212_v47 = vmul.f32 0.01, %v1474_v40  ;;  %1255 = sbr.rel (!%p1742_p5) target bundleno = 414 (0x19e), region = 59 }
 0x191   : > { %v1219_v48 = vsel %vm1203_vm6, %v1473_v34, %v1211_v44  ;;  %v1218_v49 = vsel %vm1202_vm7, %v1470_v39, %v1210_v45 }
 0x192   : > { %v1464_v50 = vpack.c.bf16 %v1218_v49, %v1217_v46  ;;  %v1220_v51 = vsel %vm1204_vm8, %v1474_v40, %v1212_v47 }
 0x193   : > { %v1465_v52 = vpack.c.bf16 %v1220_v51, %v1219_v48 }
 0x194   : > { %1247 = vst [vmem:[%s382_s12 + $0x10] sm:$0xff] %v1464_v50 }
 0x195   : > { %1248 = vst [vmem:[%s382_s12 + $0x18] sm:$0xff] %v1465_v52 }
 0x197   : > { %v1271_v53 = vld [vmem:[%s382_s12] sm:$0xff]  ;;  %v1273_v54 = vld [vmem:[%s382_s12 + $0x8] sm:$0xff] }
 0x198   : > { %1272 = vst [vmem:[%s1258_s27] sm:$0xff] %v1271_v53  ;;  %1274 = vst [vmem:[%s1258_s27 + $0x8] sm:$0xff] %v1273_v54 }
 0x19b   : > { %v1275_v55 = vld [vmem:[%s382_s12 + $0x10] sm:$0xff] }
 0x19c   : > { %v1277_v56 = vld [vmem:[%s382_s12 + $0x18] sm:$0xff]  ;;  %1276 = vst [vmem:[%s1258_s27 + $0x20] sm:$0xff] %v1275_v55 }
 0x19d   : > { %1278 = vst [vmem:[%s1258_s27 + $0x28] sm:$0xff] %v1277_v56 }
 0x19e PF: > { %p10_p10 = scmp.ge.s32.totalorder %s1729_s16, 4   ;;  %s2108_s12 = smov %s1685_s13 }
 0x19f   : > { %s2109_s13 = smov %s1740_s19  ;;  %s2110_s14 = smov %s1729_s16 }
 0x1a0   :  { %12 = sbr.rel (!%p10_p10) target bundleno = 2 (0x2), region = 113 }

// kernel: net_forward.7
= control target key start
LH: loop header
LB: loop body
LE: loop exit
PB: predicated region body
PF: predicated region fallthrough
CT: control target
= control target key end

     0   :  { %s909_s12 = smov 0   ;;  %s911_s13 = smov 0   ;;  %s1100_s0 = inlined_call_operand.vmem [shape: bf16[16,144], index: 0, kind: input, shape index: {}]   ;;  %s1101_s1 = inlined_call_operand.vmem [shape: f32[16,1], index: 1, kind: input, shape index: {}]   ;;  %s1102_s2 = inlined_call_operand.vmem [shape: bf16[144,648], index: 2, kind: input, shape index: {}]   ;;  %s1103_s3 = inlined_call_operand.vmem [shape: bf16[16,648], index: 3, kind: output, shape index: {}]  }
   0x1   :  { %s913_s14 = smov 0  }
   0x2 LB: > { %s706_s15 = sadd.s32 4294967295, %s886_s14   ;;  %s926_s16 = sadd.s32 1, %s886_s14   ;;  %s886_s14 = sphi %s913_s14, %s1107_s14   ;;  %s882_s13 = sphi %s911_s13, %s1106_s13   ;;  %s878_s12 = sphi %s909_s12, %s1105_s12  }
   0x3   : > { %s59_s17 = ssub.s32 %s886_s14, %s926_s16  ;;  %s62_s18 = sadd.s32 1, %s882_s13 }
   0x4   : > { %p60_p0 = scmp.eq.s32.totalorder %s59_s17, 0  ;;  %p69_p1 = scmp.ne.s32.totalorder %s882_s13, %s878_s12 }
   0x5   : > { %p70_p2 = scmp.eq.s32.totalorder %s886_s14, 0  ;;  %p99_p3 = scmp.eq.s32.totalorder %s706_s15, 1 }
   0x6   : > { %s937_s19 = scalar_select %p60_p0, %s882_s13, %s62_s18  }
   0x7   : > { %p71_p4 = por %p70_p2, %p69_p1  ;;  %p939_p5 = por %p99_p3, %p69_p1 }
   0x8   : > { %p709_p6 = scmp.ge.s32.totalorder %s886_s14, 2 }
   0xa   : > { %127 = sbr.rel (%p709_p6) target bundleno = 43 (0x2b), region = 24 }
  0x11   : > { %130 = sbr.rel (!%p71_p4) target bundleno = 43 (0x2b), region = 28  ;;  %s132_s21 = sand.u32 (%p71_p4), 1, %s882_s13  }
  0x12   : > { %s790_s22 = smul.u32 (%p71_p4), 12, %s886_s14 }
  0x13   : > { %s796_s23 = smul.u32 (%p71_p4), 216, %s132_s21 }
  0x14   : > { %s949_s26 = scalar_lea.vmem (%p71_p4), %s1102_s2, %s790_s22 }
  0x15   : > { %v152_v0 = vld [vmem:[%s949_s26] sm:$0xff] (%p71_p4)  ;;  %v154_v1 = vld [vmem:[%s949_s26 + $0x18] sm:$0xff] (%p71_p4)  ;;  %v156_v2 = vld [vmem:[%s949_s26 + $0x30] sm:$0xff] (%p71_p4)  ;;  %s954_s27 = scalar_lea.vmem (%p71_p4), [#allocation2], %s796_s23 }
  0x16   : > { %153 = vst [vmem:[%s954_s27] sm:$0xff] (%p71_p4), %v152_v0  ;;  %155 = vst [vmem:[%s954_s27 + $0xc] sm:$0xff] (%p71_p4), %v154_v1  ;;  %v158_v3 = vld [vmem:[%s949_s26 + $0x48] sm:$0xff] (%p71_p4)  ;;  %v160_v4 = vld [vmem:[%s949_s26 + $0x60] sm:$0xff] (%p71_p4) }
  0x17   : > { %157 = vst [vmem:[%s954_s27 + $0x18] sm:$0xff] (%p71_p4), %v156_v2  ;;  %v162_v5 = vld [vmem:[%s949_s26 + $0x78] sm:$0xff] (%p71_p4)  ;;  %159 = vst [vmem:[%s954_s27 + $0x24] sm:$0xff] (%p71_p4), %v158_v3  ;;  %v164_v6 = vld [vmem:[%s949_s26 + $0x90] sm:$0xff] (%p71_p4) }
  0x18   : > { %161 = vst [vmem:[%s954_s27 + $0x30] sm:$0xff] %v160_v4  ;;  %163 = vst [vmem:[%s954_s27 + $0x3c] sm:$0xff] %v162_v5  ;;  %v166_v7 = vld [vmem:[%s949_s26 + $0xa8] sm:$0xff]  ;;  %v168_v8 = vld [vmem:[%s949_s26 + $0xc0] sm:$0xff] }
  0x19   : > { %165 = vst [vmem:[%s954_s27 + $0x48] sm:$0xff] %v164_v6  ;;  %167 = vst [vmem:[%s954_s27 + $0x54] sm:$0xff] %v166_v7  ;;  %v170_v9 = vld [vmem:[%s949_s26 + $0xd8] sm:$0xff]  ;;  %v172_v10 = vld [vmem:[%s949_s26 + $0xf0] sm:$0xff] }
  0x1a   : > { %169 = vst [vmem:[%s954_s27 + $0x60] sm:$0xff] %v168_v8  ;;  %v174_v11 = vld [vmem:[%s949_s26 + $0x108] sm:$0xff]  ;;  %171 = vst [vmem:[%s954_s27 + $0x6c] sm:$0xff] %v170_v9  ;;  %v176_v12 = vld [vmem:[%s949_s26 + $0x120] sm:$0xff] }
  0x1b   : > { %173 = vst [vmem:[%s954_s27 + $0x78] sm:$0xff] %v172_v10  ;;  %175 = vst [vmem:[%s954_s27 + $0x84] sm:$0xff] %v174_v11  ;;  %v178_v13 = vld [vmem:[%s949_s26 + $0x138] sm:$0xff]  ;;  %v180_v14 = vld [vmem:[%s949_s26 + $0x150] sm:$0xff] }
  0x1c   : > { %177 = vst [vmem:[%s954_s27 + $0x90] sm:$0xff] %v176_v12  ;;  %179 = vst [vmem:[%s954_s27 + $0x9c] sm:$0xff] %v178_v13  ;;  %v182_v15 = vld [vmem:[%s949_s26 + $0x168] sm:$0xff]  ;;  %v184_v16 = vld [vmem:[%s949_s26 + $0x180] sm:$0xff] }
  0x1d   : > { %181 = vst [vmem:[%s954_s27 + $0xa8] sm:$0xff] %v180_v14  ;;  %v186_v17 = vld [vmem:[%s949_s26 + $0x198] sm:$0xff]  ;;  %183 = vst [vmem:[%s954_s27 + $0xb4] sm:$0xff] %v182_v15  ;;  %v711_v18 = vld [vmem:[%s949_s26 + $0x8] sm:$0xf] }
  0x1e   : > { %185 = vst [vmem:[%s954_s27 + $0xc0] sm:$0xff] %v184_v16  ;;  %187 = vst [vmem:[%s954_s27 + $0xcc] sm:$0xff] %v186_v17  ;;  %v713_v19 = vld [vmem:[%s949_s26 + $0x20] sm:$0xf]  ;;  %v715_v20 = vld [vmem:[%s949_s26 + $0x38] sm:$0xf] }
  0x1f   : > { %712 = vst [vmem:[%s954_s27 + $0x8] sm:$0xf] %v711_v18  ;;  %714 = vst [vmem:[%s954_s27 + $0x14] sm:$0xf] %v713_v19  ;;  %v717_v21 = vld [vmem:[%s949_s26 + $0x50] sm:$0xf] }
  0x20   : > { %716 = vst [vmem:[%s954_s27 + $0x20] sm:$0xf] %v715_v20  ;;  %v719_v22 = vld [vmem:[%s949_s26 + $0x68] sm:$0xf]  ;;  %v721_v23 = vld [vmem:[%s949_s26 + $0x80] sm:$0xf] }
  0x21   : > { %718 = vst [vmem:[%s954_s27 + $0x2c] sm:$0xf] %v717_v21  ;;  %720 = vst [vmem:[%s954_s27 + $0x38] sm:$0xf] %v719_v22  ;;  %v723_v24 = vld [vmem:[%s949_s26 + $0x98] sm:$0xf] }
  0x22   : > { %722 = vst [vmem:[%s954_s27 + $0x44] sm:$0xf] %v721_v23  ;;  %v725_v25 = vld [vmem:[%s949_s26 + $0xb0] sm:$0xf]  ;;  %v727_v26 = vld [vmem:[%s949_s26 + $0xc8] sm:$0xf] }
  0x23   : > { %724 = vst [vmem:[%s954_s27 + $0x50] sm:$0xf] %v723_v24  ;;  %726 = vst [vmem:[%s954_s27 + $0x5c] sm:$0xf] %v725_v25  ;;  %v729_v27 = vld [vmem:[%s949_s26 + $0xe0] sm:$0xf] }
  0x24   : > { %728 = vst [vmem:[%s954_s27 + $0x68] sm:$0xf] %v727_v26  ;;  %v731_v28 = vld [vmem:[%s949_s26 + $0xf8] sm:$0xf]  ;;  %v733_v29 = vld [vmem:[%s949_s26 + $0x110] sm:$0xf] }
  0x25   : > { %730 = vst [vmem:[%s954_s27 + $0x74] sm:$0xf] %v729_v27  ;;  %732 = vst [vmem:[%s954_s27 + $0x80] sm:$0xf] %v731_v28  ;;  %v735_v30 = vld [vmem:[%s949_s26 + $0x128] sm:$0xf] }
  0x26   : > { %734 = vst [vmem:[%s954_s27 + $0x8c] sm:$0xf] %v733_v29  ;;  %v737_v31 = vld [vmem:[%s949_s26 + $0x140] sm:$0xf]  ;;  %v739_v32 = vld [vmem:[%s949_s26 + $0x158] sm:$0xf] }
  0x27   : > { %736 = vst [vmem:[%s954_s27 + $0x98] sm:$0xf] %v735_v30  ;;  %738 = vst [vmem:[%s954_s27 + $0xa4] sm:$0xf] %v737_v31  ;;  %v741_v33 = vld [vmem:[%s949_s26 + $0x170] sm:$0xf] }
  0x28   : > { %740 = vst [vmem:[%s954_s27 + $0xb0] sm:$0xf] %v739_v32  ;;  %v743_v34 = vld [vmem:[%s949_s26 + $0x188] sm:$0xf]  ;;  %v745_v35 = vld [vmem:[%s949_s26 + $0x1a0] sm:$0xf] }
  0x29   : > { %742 = vst [vmem:[%s954_s27 + $0xbc] sm:$0xf] %v741_v33  ;;  %744 = vst [vmem:[%s954_s27 + $0xc8] sm:$0xf] %v743_v34 }
  0x2a   : > { %746 = vst [vmem:[%s954_s27 + $0xd4] sm:$0xf] %v745_v35 }
  0x2b PF: > { %p747_p7 = scmp.ge.s32.totalorder %s886_s14, 1  ;;  %p235_p8 = scmp.lt.s32.totalorder %s886_s14, 3 }
  0x2d   : > { %p236_p9 = pnand %p747_p7, %p235_p8 }
  0x2e   : > { %s242_s28 = sand.u32 (!%p236_p9), 1, %s878_s12   ;;  %v888_v36 = vmov (!%p236_p9), 0   ;;  %v863_v37 = vld [vmem:[%s1100_s0 + $0x4] ss:$8 sps:$4 sm:$0xff] (!%p236_p9)   ;;  %vm470_vm0 = vcmask (!%p236_p9), 130048  }
  0x2f   : > { %239 = sbr.rel (%p236_p9) target bundleno = 321 (0x141), region = 54  ;;  %517 = vmatprep.subr.bf16.mxu1 (!%p236_p9), %v888_v36  ;;  %824 = vset.pattern.permute.xlu0 (!%p236_p9), %v888_v36  ;;  %v305_v38 = vld [vmem:[%s1101_s1] sm:$0xff] (!%p236_p9)  ;;  %v306_v39 = vld [vmem:[%s1101_s1 + $0x8] sm:$0xff] (!%p236_p9) }
  0x30   : > { %s797_s29 = smul.u32 (!%p236_p9), 216, %s242_s28  ;;  %309 = vperm.xlu0 (!%p236_p9), %824, %v305_v38   ;;  %778 = vmatprep.mubr.msk.bf16.mxu1 (!%p236_p9), %vm470_vm0, %v863_v37  ;;  %v861_v3 = vld [vmem:[%s1100_s0] ss:$8 sps:$4 sm:$0xff] (!%p236_p9)  }
  0x31   : > { %777 = vmatprep.mubr.msk.bf16.mxu0 (!%p236_p9), %vm470_vm0, %v863_v37  ;;  %s798_s17 = smul.u32 (!%p236_p9), 24, %s242_s28 }
  0x32   : > { %s1041_s9 = scalar_lea.vmem (!%p236_p9), [#allocation2], %s797_s29 }
  0x33   : > { %v825_v40 = vld [vmem:[%s1041_s9 + $0x4] ss:$12 sps:$4 sm:$0xff] (!%p236_p9)   ;;  %v827_v41 = vld [vmem:[%s1041_s9 + $0x8] ss:$12 sps:$4 sm:$0xff] (!%p236_p9)   ;;  %v828_v42 = vld [vmem:[%s1041_s9] ss:$12 sps:$4 sm:$0xff] (!%p236_p9)  }
  0x34   : > { %474 = vmatprep.subr.bf16.mxu0 (!%p236_p9), %v825_v40  ;;  %314 = vperm.xlu0 (!%p236_p9), %824, %v306_v39   ;;  %v829_v43 = vld [vmem:[%s1041_s9 + $0x1c] ss:$12 sps:$4 sm:$0xff] (!%p236_p9)   ;;  %v831_v44 = vld [vmem:[%s1041_s9 + $0x20] ss:$12 sps:$4 sm:$0xff] (!%p236_p9)   ;;  %v832_v45 = vld [vmem:[%s1041_s9 + $0x18] ss:$12 sps:$4 sm:$0xff] (!%p236_p9)  }
  0x35   : > { %518 = vmatpush1.bf16.msra.mxu1 (!%p236_p9), %v827_v41  ;;  %475 = vmatpush1.bf16.msra.mxu0 (!%p236_p9), %v828_v42  ;;  %v833_v46 = vld [vmem:[%s1041_s9 + $0x34] ss:$12 sps:$4 sm:$0xff] (!%p236_p9)   ;;  %v835_v47 = vld [vmem:[%s1041_s9 + $0x38] ss:$12 sps:$4 sm:$0xff] (!%p236_p9)   ;;  %v836_v48 = vld [vmem:[%s1041_s9 + $0x30] ss:$12 sps:$4 sm:$0xff] (!%p236_p9)  }
  0x36   : > { %519 = vmatprep.subr.bf16.mxu1 %v888_v36  ;;  %476 = vmatprep.subr.bf16.mxu0 %v829_v43  ;;  %v837_v49 = vld [vmem:[%s1041_s9 + $0x4c] ss:$12 sps:$4 sm:$0xff]   ;;  %v839_v50 = vld [vmem:[%s1041_s9 + $0x50] ss:$12 sps:$4 sm:$0xff]   ;;  %v840_v51 = vld [vmem:[%s1041_s9 + $0x48] ss:$12 sps:$4 sm:$0xff]  }
  0x37   : > { %v841_v52 = vld [vmem:[%s1041_s9 + $0x64] ss:$12 sps:$4 sm:$0xff]   ;;  %v843_v53 = vld [vmem:[%s1041_s9 + $0x68] ss:$12 sps:$4 sm:$0xff]   ;;  %v844_v54 = vld [vmem:[%s1041_s9 + $0x60] ss:$12 sps:$4 sm:$0xff]  }
  0x38   : > { %v845_v55 = vld [vmem:[%s1041_s9 + $0x7c] ss:$12 sps:$4 sm:$0xff]   ;;  %v847_v56 = vld [vmem:[%s1041_s9 + $0x80] ss:$12 sps:$4 sm:$0xff]   ;;  %v848_v57 = vld [vmem:[%s1041_s9 + $0x78] ss:$12 sps:$4 sm:$0xff]  }
  0x39   : > { %520 = vmatpush1.bf16.msra.mxu1 %v831_v44  ;;  %477 = vmatpush1.bf16.msra.mxu0 %v832_v45  ;;  %v849_v58 = vld [vmem:[%s1041_s9 + $0x94] ss:$12 sps:$4 sm:$0xff]   ;;  %v851_v59 = vld [vmem:[%s1041_s9 + $0x98] ss:$12 sps:$4 sm:$0xff]   ;;  %v852_v60 = vld [vmem:[%s1041_s9 + $0x90] ss:$12 sps:$4 sm:$0xff]  }
  0x3a   : > { %521 = vmatprep.subr.bf16.mxu1 %v888_v36  ;;  %478 = vmatprep.subr.bf16.mxu0 %v833_v46  ;;  %v853_v61 = vld [vmem:[%s1041_s9 + $0xac] ss:$12 sps:$4 sm:$0xff]   ;;  %v855_v62 = vld [vmem:[%s1041_s9 + $0xb0] ss:$12 sps:$4 sm:$0xff]   ;;  %v856_v63 = vld [vmem:[%s1041_s9 + $0xa8] ss:$12 sps:$4 sm:$0xff]  }
  0x3b   : > { %v857_v0 = vld [vmem:[%s1041_s9 + $0xc4] ss:$12 sps:$4 sm:$0xff]   ;;  %v859_v1 = vld [vmem:[%s1041_s9 + $0xc8] ss:$12 sps:$4 sm:$0xff]   ;;  %v860_v2 = vld [vmem:[%s1041_s9 + $0xc0] ss:$12 sps:$4 sm:$0xff]  }
  0x3c   : > { %s263_s12 = scalar_lea.vmem [#allocation3], %s798_s17  ;;  %s795_s18 = smul.u32 (%p939_p5), 12, %s706_s15 }
  0x3d   : > { %522 = vmatpush1.bf16.msra.mxu1 %v835_v47  ;;  %479 = vmatpush1.bf16.msra.mxu0 %v836_v48 }
  0x3e   : > { %523 = vmatprep.subr.bf16.mxu1 %v888_v36  ;;  %480 = vmatprep.subr.bf16.mxu0 %v837_v49  ;;  %s609_s23 = scalar_lea.vmem (%p939_p5), %s1103_s3, %s795_s18 }
  0x41   : > { %524 = vmatpush1.bf16.msra.mxu1 %v839_v50  ;;  %481 = vmatpush1.bf16.msra.mxu0 %v840_v51 }
  0x42   : > { %525 = vmatprep.subr.bf16.mxu1 %v888_v36  ;;  %482 = vmatprep.subr.bf16.mxu0 %v841_v52 }
  0x45   : > { %526 = vmatpush1.bf16.msra.mxu1 %v843_v53  ;;  %483 = vmatpush1.bf16.msra.mxu0 %v844_v54 }
  0x46   : > { %527 = vmatprep.subr.bf16.mxu1 %v888_v36  ;;  %484 = vmatprep.subr.bf16.mxu0 %v845_v55 }
  0x49   : > { %528 = vmatpush1.bf16.msra.mxu1 %v847_v56  ;;  %485 = vmatpush1.bf16.msra.mxu0 %v848_v57 }
  0x4a   : > { %529 = vmatprep.subr.bf16.mxu1 %v888_v36  ;;  %486 = vmatprep.subr.bf16.mxu0 %v849_v58 }
  0x4d   : > { %530 = vmatpush1.bf16.msra.mxu1 %v851_v59  ;;  %487 = vmatpush1.bf16.msra.mxu0 %v852_v60 }
  0x4e   : > { %531 = vmatprep.subr.bf16.mxu1 %v888_v36  ;;  %488 = vmatprep.subr.bf16.mxu0 %v853_v61 }
  0x51   : > { %532 = vmatpush1.bf16.msra.mxu1 %v855_v62  ;;  %489 = vmatpush1.bf16.msra.mxu0 %v856_v63 }
  0x52   : > { %533 = vmatprep.subr.bf16.mxu1 %v888_v36  ;;  %490 = vmatprep.subr.bf16.mxu0 %v857_v0 }
  0x55   : > { %534 = vmatpush1.bf16.msra.mxu1 %v859_v1  ;;  %491 = vmatpush1.bf16.msra.mxu0 %v860_v2 }
  0x58   : > { %550 = vmatmul.mubr.bf16.vlgmr.msra.gmra.mrb[0].mxu1 %v861_v3  ;;  %507 = vmatmul.mubr.bf16.vlgmr.msra.gmra.mrb[0].mxu0 %v861_v3 }
  0xaf   : > { %v310_v4 = vpop.permute.xlu0 %309 }
  0xb3   : > { %v315_v5 = vpop.permute.xlu0 %314 }
 0x12b   : > { %v551_v6 = vpop.f32.mrb[0].mxu1  ;;  %v508_v8 = vpop.f32.mrb[0].mxu0 }
 0x12c   : > { %v552_v7 = vadd.f32 %v551_v6, %v310_v4  ;;  %v553_v9 = vpop.f32.mrb[1].mxu1  ;;  %v509_v10 = vadd.f32 %v508_v8, %v310_v4  ;;  %v510_v11 = vpop.f32.mrb[1].mxu0 }
 0x12d   : > { %v554_v12 = vpop.f32.mrb[2].mxu1  ;;  %v511_v14 = vadd.f32 %v510_v11, %v310_v4  ;;  %v512_v16 = vpop.f32.mrb[2].mxu0 }
 0x12e   : > { %vm560_vm1 = vcmp.ge.f32.partialorder %v552_v7, 0.0  ;;  %v566_v13 = vmul.f32 0.01, %v552_v7  ;;  %v555_v15 = vadd.f32 %v554_v12, %v315_v5  ;;  %v556_v17 = vpop.f32.mrb[3].mxu1  ;;  %vm558_vm2 = vcmp.ge.f32.partialorder %v509_v10, 0.0  ;;  %v514_v20 = vpop.f32.mrb[3].mxu0 }
 0x12f   : > { %v564_v18 = vmul.f32 0.01, %v509_v10  ;;  %v513_v19 = vadd.f32 %v512_v16, %v315_v5  ;;  %vm559_vm3 = vcmp.ge.f32.partialorder %v511_v14, 0.0  ;;  %v565_v22 = vmul.f32 0.01, %v511_v14 }
 0x130   : > { %v572_v21 = vsel %vm560_vm1, %v552_v7, %v566_v13  ;;  %vm563_vm4 = vcmp.ge.f32.partialorder %v555_v15, 0.0  ;;  %v569_v25 = vmul.f32 0.01, %v555_v15  ;;  %v515_v28 = vadd.f32 %v514_v20, %v315_v5 }
 0x131   : > { %v792_v23 = vpack.c.bf16 %v572_v21, %v572_v21  ;;  %v570_v24 = vsel %vm558_vm2, %v509_v10, %v564_v18  ;;  %vm561_vm5 = vcmp.ge.f32.partialorder %v513_v19, 0.0  ;;  %v571_v26 = vsel %vm559_vm3, %v511_v14, %v565_v22 }
 0x132   : > { %v567_v27 = vmul.f32 0.01, %v513_v19  ;;  %v791_v29 = vpack.c.bf16 %v571_v26, %v570_v24  ;;  %v575_v30 = vsel %vm563_vm4, %v555_v15, %v569_v25  ;;  %vm562_vm6 = vcmp.ge.f32.partialorder %v515_v28, 0.0  ;;  %606 = sbr.rel (!%p939_p5) target bundleno = 321 (0x141), region = 62 }
 0x133   : > { %597 = vst [vmem:[%s263_s12 + $0x8] sm:$0xf] %v792_v23  ;;  %v794_v31 = vpack.c.bf16 %v575_v30, %v575_v30  ;;  %v568_v33 = vmul.f32 0.01, %v515_v28 }
 0x134   : > { %v573_v32 = vsel %vm561_vm5, %v513_v19, %v567_v27  ;;  %596 = vst [vmem:[%s263_s12] sm:$0xff] %v791_v29 }
 0x135   : > { %599 = vst [vmem:[%s263_s12 + $0x14] sm:$0xf] %v794_v31  ;;  %v574_v34 = vsel %vm562_vm6, %v515_v28, %v568_v33 }
 0x136   : > { %v793_v35 = vpack.c.bf16 %v574_v34, %v573_v32 }
 0x138   : > { %598 = vst [vmem:[%s263_s12 + $0xc] sm:$0xff] %v793_v35 }
 0x13a   : > { %v784_v38 = vld [vmem:[%s263_s12 + $0x8] sm:$0xf] }
 0x13b   : > { %v624_v36 = vld [vmem:[%s263_s12] sm:$0xff]  ;;  %785 = vst [vmem:[%s609_s23 + $0x8] sm:$0xf] %v784_v38 }
 0x13c   : > { %v786_v39 = vld [vmem:[%s263_s12 + $0x14] sm:$0xf]  ;;  %625 = vst [vmem:[%s609_s23] sm:$0xff] %v624_v36 }
 0x13d   : > { %787 = vst [vmem:[%s609_s23 + $0x20] sm:$0xf] %v786_v39 }
 0x13f   : > { %v626_v37 = vld [vmem:[%s263_s12 + $0xc] sm:$0xff] }
 0x140   : > { %627 = vst [vmem:[%s609_s23 + $0x18] sm:$0xff] %v626_v37 }
 0x141 PF: > { %p10_p10 = scmp.ge.s32.totalorder %s926_s16, 4   ;;  %s1105_s12 = smov %s882_s13 }
 0x142   : > { %s1106_s13 = smov %s937_s19  ;;  %s1107_s14 = smov %s926_s16 }
 0x143   :  { %12 = sbr.rel (!%p10_p10) target bundleno = 2 (0x2), region = 131 }

// kernel: net_forward.8
= control target key start
LH: loop header
LB: loop body
LE: loop exit
PB: predicated region body
PF: predicated region fallthrough
CT: control target
= control target key end

     0   :  { %s720_s12 = smov 0   ;;  %s722_s13 = smov 0   ;;  %s836_s0 = inlined_call_operand.vmem [shape: bf16[16,144], index: 0, kind: input, shape index: {}]   ;;  %s837_s1 = inlined_call_operand.vmem [shape: f32[16,1], index: 1, kind: input, shape index: {}]   ;;  %s838_s2 = inlined_call_operand.vmem [shape: bf16[144,392], index: 2, kind: input, shape index: {}]   ;;  %s839_s3 = inlined_call_operand.vmem [shape: bf16[16,392], index: 3, kind: output, shape index: {}]  }
   0x1   :  { %s724_s14 = smov 0  }
   0x2 LB: > { %s577_s15 = sadd.s32 4294967295, %s697_s14   ;;  %s737_s16 = sadd.s32 1, %s697_s14   ;;  %s697_s14 = sphi %s724_s14, %s843_s14   ;;  %s693_s13 = sphi %s722_s13, %s842_s13   ;;  %s689_s12 = sphi %s720_s12, %s841_s12  }
   0x3   : > { %s59_s17 = ssub.s32 %s697_s14, %s737_s16  ;;  %s62_s18 = sadd.s32 1, %s693_s13 }
   0x4   : > { %p60_p0 = scmp.eq.s32.totalorder %s59_s17, 0  ;;  %p69_p1 = scmp.ne.s32.totalorder %s693_s13, %s689_s12 }
   0x5   : > { %p70_p2 = scmp.eq.s32.totalorder %s697_s14, 0  ;;  %p99_p3 = scmp.eq.s32.totalorder %s577_s15, 1 }
   0x6   : > { %s748_s19 = scalar_select %p60_p0, %s693_s13, %s62_s18  }
   0x7   : > { %p71_p4 = por %p70_p2, %p69_p1  ;;  %p750_p5 = por %p99_p3, %p69_p1 }
   0x8   : > { %p580_p6 = scmp.ge.s32.totalorder %s697_s14, 2 }
   0xa   : > { %127 = sbr.rel (%p580_p6) target bundleno = 30 (0x1e), region = 24 }
  0x11   : > { %130 = sbr.rel (!%p71_p4) target bundleno = 30 (0x1e), region = 28  ;;  %s132_s21 = sand.u32 (%p71_p4), 1, %s693_s13  }
  0x12   : > { %s613_s22 = sshll.u32 (%p71_p4), %s697_s14, 3  ;;  %s617_s23 = smul.u32 (%p71_p4), 144, %s132_s21 }
  0x13   : > { %s760_s26 = scalar_lea.vmem (%p71_p4), %s838_s2, %s613_s22 }
  0x14   : > { %v199_v0 = vld [vmem:[%s760_s26] sm:$0xff] (%p71_p4)  ;;  %v201_v1 = vld [vmem:[%s760_s26 + $0x10] sm:$0xff] (%p71_p4)  ;;  %s134_s27 = scalar_lea.vmem (%p71_p4), [#allocation2], %s617_s23 }
  0x15   : > { %v203_v2 = vld [vmem:[%s760_s26 + $0x20] sm:$0xff] (%p71_p4)  ;;  %v205_v3 = vld [vmem:[%s760_s26 + $0x30] sm:$0xff] (%p71_p4)  ;;  %200 = vst [vmem:[%s134_s27] sm:$0xff] (%p71_p4), %v199_v0  ;;  %202 = vst [vmem:[%s134_s27 + $0x8] sm:$0xff] (%p71_p4), %v201_v1 }
  0x16   : > { %v207_v4 = vld [vmem:[%s760_s26 + $0x40] sm:$0xff] (%p71_p4)  ;;  %v209_v5 = vld [vmem:[%s760_s26 + $0x50] sm:$0xff] (%p71_p4)  ;;  %204 = vst [vmem:[%s134_s27 + $0x10] sm:$0xff] (%p71_p4), %v203_v2  ;;  %206 = vst [vmem:[%s134_s27 + $0x18] sm:$0xff] (%p71_p4), %v205_v3 }
  0x17   : > { %208 = vst [vmem:[%s134_s27 + $0x20] sm:$0xff] (%p71_p4), %v207_v4  ;;  %210 = vst [vmem:[%s134_s27 + $0x28] sm:$0xff] (%p71_p4), %v209_v5  ;;  %v211_v6 = vld [vmem:[%s760_s26 + $0x60] sm:$0xff] (%p71_p4)  ;;  %v213_v7 = vld [vmem:[%s760_s26 + $0x70] sm:$0xff] (%p71_p4) }
  0x18   : > { %v215_v8 = vld [vmem:[%s760_s26 + $0x80] sm:$0xff]  ;;  %212 = vst [vmem:[%s134_s27 + $0x30] sm:$0xff] %v211_v6  ;;  %214 = vst [vmem:[%s134_s27 + $0x38] sm:$0xff] %v213_v7  ;;  %v217_v9 = vld [vmem:[%s760_s26 + $0x90] sm:$0xff] }
  0x19   : > { %216 = vst [vmem:[%s134_s27 + $0x40] sm:$0xff] %v215_v8  ;;  %v219_v10 = vld [vmem:[%s760_s26 + $0xa0] sm:$0xff]  ;;  %v221_v11 = vld [vmem:[%s760_s26 + $0xb0] sm:$0xff]  ;;  %218 = vst [vmem:[%s134_s27 + $0x48] sm:$0xff] %v217_v9 }
  0x1a   : > { %220 = vst [vmem:[%s134_s27 + $0x50] sm:$0xff] %v219_v10  ;;  %222 = vst [vmem:[%s134_s27 + $0x58] sm:$0xff] %v221_v11  ;;  %v223_v12 = vld [vmem:[%s760_s26 + $0xc0] sm:$0xff]  ;;  %v225_v13 = vld [vmem:[%s760_s26 + $0xd0] sm:$0xff] }
  0x1b   : > { %v227_v14 = vld [vmem:[%s760_s26 + $0xe0] sm:$0xff]  ;;  %224 = vst [vmem:[%s134_s27 + $0x60] sm:$0xff] %v223_v12  ;;  %226 = vst [vmem:[%s134_s27 + $0x68] sm:$0xff] %v225_v13  ;;  %v229_v15 = vld [vmem:[%s760_s26 + $0xf0] sm:$0xff] }
  0x1c   : > { %228 = vst [vmem:[%s134_s27 + $0x70] sm:$0xff] %v227_v14  ;;  %v231_v16 = vld [vmem:[%s760_s26 + $0x100] sm:$0xff]  ;;  %v233_v17 = vld [vmem:[%s760_s26 + $0x110] sm:$0xff]  ;;  %230 = vst [vmem:[%s134_s27 + $0x78] sm:$0xff] %v229_v15 }
  0x1d   : > { %232 = vst [vmem:[%s134_s27 + $0x80] sm:$0xff] %v231_v16  ;;  %234 = vst [vmem:[%s134_s27 + $0x88] sm:$0xff] %v233_v17 }
  0x1e PF: > { %p583_p7 = scmp.ge.s32.totalorder %s697_s14, 1  ;;  %p239_p8 = scmp.lt.s32.totalorder %s697_s14, 3 }
  0x20   : > { %p240_p9 = pnand %p583_p7, %p239_p8 }
  0x21   : > { %s246_s28 = sand.u32 (!%p240_p9), 1, %s689_s12   ;;  %vm402_vm0 = vcmask (!%p240_p9), 130048   ;;  %v674_v18 = vld [vmem:[%s836_s0 + $0x4] ss:$8 sps:$4 sm:$0xff] (!%p240_p9)   ;;  %v699_v20 = vmov (!%p240_p9), 0  }
  0x22   : > { %243 = sbr.rel (%p240_p9) target bundleno = 306 (0x132), region = 66  ;;  %v291_v19 = vld [vmem:[%s837_s1] sm:$0xff] (!%p240_p9)  ;;  %644 = vset.pattern.permute.xlu0 (!%p240_p9), %v699_v20  ;;  %605 = vmatprep.mubr.msk.bf16.mxu0 (!%p240_p9), %vm402_vm0, %v674_v18  ;;  %v292_v21 = vld [vmem:[%s837_s1 + $0x8] sm:$0xff] (!%p240_p9)  ;;  %s584_s17 = sshll.u32 (!%p240_p9), %s246_s28, 4 }
  0x23   : > { %s618_s29 = smul.u32 (!%p240_p9), 144, %s246_s28  ;;  %295 = vperm.xlu0 (!%p240_p9), %644, %v291_v19   ;;  %v672_v40 = vld [vmem:[%s836_s0] ss:$8 sps:$4 sm:$0xff] (!%p240_p9)   ;;  %s267_s18 = scalar_lea.vmem (!%p240_p9), [#allocation3], %s584_s17 }
  0x25   : > { %s794_s9 = scalar_lea.vmem (!%p240_p9), [#allocation2], %s618_s29 }
  0x26   : > { %v645_v22 = vld [vmem:[%s794_s9 + $0x4] ss:$8 sps:$4 sm:$0xff] (!%p240_p9)   ;;  %v647_v23 = vld [vmem:[%s794_s9] ss:$8 sps:$4 sm:$0xff] (!%p240_p9)   ;;  %v648_v24 = vld [vmem:[%s794_s9 + $0x14] ss:$8 sps:$4 sm:$0xff] (!%p240_p9)  }
  0x27   : > { %406 = vmatprep.subr.bf16.mxu0 (!%p240_p9), %v645_v22  ;;  %v650_v25 = vld [vmem:[%s794_s9 + $0x10] ss:$8 sps:$4 sm:$0xff] (!%p240_p9)   ;;  %300 = vperm.xlu0 (!%p240_p9), %644, %v292_v21   ;;  %v651_v26 = vld [vmem:[%s794_s9 + $0x24] ss:$8 sps:$4 sm:$0xff] (!%p240_p9)   ;;  %v653_v27 = vld [vmem:[%s794_s9 + $0x20] ss:$8 sps:$4 sm:$0xff] (!%p240_p9)  }
  0x28   : > { %407 = vmatpush1.bf16.msra.mxu0 (!%p240_p9), %v647_v23  ;;  %v654_v28 = vld [vmem:[%s794_s9 + $0x34] ss:$8 sps:$4 sm:$0xff] (!%p240_p9)   ;;  %v656_v29 = vld [vmem:[%s794_s9 + $0x30] ss:$8 sps:$4 sm:$0xff] (!%p240_p9)   ;;  %v657_v30 = vld [vmem:[%s794_s9 + $0x44] ss:$8 sps:$4 sm:$0xff] (!%p240_p9)  }
  0x29   : > { %408 = vmatprep.subr.bf16.mxu0 %v648_v24  ;;  %v659_v31 = vld [vmem:[%s794_s9 + $0x40] ss:$8 sps:$4 sm:$0xff]   ;;  %v660_v32 = vld [vmem:[%s794_s9 + $0x54] ss:$8 sps:$4 sm:$0xff]   ;;  %v662_v33 = vld [vmem:[%s794_s9 + $0x50] ss:$8 sps:$4 sm:$0xff]  }
  0x2a   : > { %v663_v34 = vld [vmem:[%s794_s9 + $0x64] ss:$8 sps:$4 sm:$0xff]   ;;  %v665_v35 = vld [vmem:[%s794_s9 + $0x60] ss:$8 sps:$4 sm:$0xff]   ;;  %v666_v36 = vld [vmem:[%s794_s9 + $0x74] ss:$8 sps:$4 sm:$0xff]  }
  0x2b   : > { %v668_v37 = vld [vmem:[%s794_s9 + $0x70] ss:$8 sps:$4 sm:$0xff]   ;;  %v669_v38 = vld [vmem:[%s794_s9 + $0x84] ss:$8 sps:$4 sm:$0xff]   ;;  %v671_v39 = vld [vmem:[%s794_s9 + $0x80] ss:$8 sps:$4 sm:$0xff]  }
  0x2c   : > { %409 = vmatpush1.bf16.msra.mxu0 %v650_v25  ;;  %s616_s12 = sshll.u32 (%p750_p5), %s577_s15, 3 }
  0x2d   : > { %410 = vmatprep.subr.bf16.mxu0 %v651_v26  ;;  %s484_s23 = scalar_lea.vmem (%p750_p5), %s839_s3, %s616_s12 }
  0x30   : > { %411 = vmatpush1.bf16.msra.mxu0 %v653_v27 }
  0x31   : > { %412 = vmatprep.subr.bf16.mxu0 %v654_v28 }
  0x34   : > { %413 = vmatpush1.bf16.msra.mxu0 %v656_v29 }
  0x35   : > { %414 = vmatprep.subr.bf16.mxu0 %v657_v30 }
  0x38   : > { %415 = vmatpush1.bf16.msra.mxu0 %v659_v31 }
  0x39   : > { %416 = vmatprep.subr.bf16.mxu0 %v660_v32 }
  0x3c   : > { %417 = vmatpush1.bf16.msra.mxu0 %v662_v33 }
  0x3d   : > { %418 = vmatprep.subr.bf16.mxu0 %v663_v34 }
  0x40   : > { %419 = vmatpush1.bf16.msra.mxu0 %v665_v35 }
  0x41   : > { %420 = vmatprep.subr.bf16.mxu0 %v666_v36 }
  0x44   : > { %421 = vmatpush1.bf16.msra.mxu0 %v668_v37 }
  0x45   : > { %422 = vmatprep.subr.bf16.mxu0 %v669_v38 }
  0x48   : > { %423 = vmatpush1.bf16.msra.mxu0 %v671_v39 }
  0x4b   : > { %439 = vmatmul.mubr.bf16.vlgmr.msra.gmra.mrb[0].mxu0 %v672_v40 }
  0xa2   : > { %v296_v41 = vpop.permute.xlu0 %295 }
  0xa6   : > { %v301_v45 = vpop.permute.xlu0 %300 }
 0x11e   : > { %v440_v42 = vpop.f32.mrb[0].mxu0 }
 0x11f   : > { %v441_v43 = vadd.f32 %v440_v42, %v296_v41  ;;  %v442_v44 = vpop.f32.mrb[1].mxu0 }
 0x120   : > { %v443_v46 = vadd.f32 %v442_v44, %v296_v41  ;;  %v444_v47 = vpop.f32.mrb[2].mxu0 }
 0x121   : > { %vm449_vm1 = vcmp.ge.f32.partialorder %v441_v43, 0.0  ;;  %v453_v48 = vmul.f32 0.01, %v441_v43  ;;  %v445_v49 = vadd.f32 %v444_v47, %v301_v45  ;;  %v446_v50 = vpop.f32.mrb[3].mxu0 }
 0x122   : > { %vm450_vm2 = vcmp.ge.f32.partialorder %v443_v46, 0.0  ;;  %v454_v51 = vmul.f32 0.01, %v443_v46  ;;  %v447_v52 = vadd.f32 %v446_v50, %v301_v45 }
 0x123   : > { %v457_v53 = vsel %vm449_vm1, %v441_v43, %v453_v48  ;;  %vm451_vm3 = vcmp.ge.f32.partialorder %v445_v49, 0.0  ;;  %v455_v54 = vmul.f32 0.01, %v445_v49  ;;  %481 = sbr.rel (!%p750_p5) target bundleno = 306 (0x132), region = 74 }
 0x124   : > { %v458_v55 = vsel %vm450_vm2, %v443_v46, %v454_v51  ;;  %vm452_vm4 = vcmp.ge.f32.partialorder %v447_v52, 0.0  ;;  %v456_v56 = vmul.f32 0.01, %v447_v52 }
 0x125   : > { %v614_v57 = vpack.c.bf16 %v458_v55, %v457_v53  ;;  %v459_v58 = vsel %vm451_vm3, %v445_v49, %v455_v54 }
 0x126   : > { %v460_v59 = vsel %vm452_vm4, %v447_v52, %v456_v56 }
 0x127   : > { %473 = vst [vmem:[%s267_s18] sm:$0xff] %v614_v57  ;;  %v615_v60 = vpack.c.bf16 %v460_v59, %v459_v58 }
 0x129   : > { %474 = vst [vmem:[%s267_s18 + $0x8] sm:$0xff] %v615_v60 }
 0x12e   : > { %v514_v61 = vld [vmem:[%s267_s18] sm:$0xff] }
 0x12f   : > { %515 = vst [vmem:[%s484_s23] sm:$0xff] %v514_v61 }
 0x130   : > { %v516_v62 = vld [vmem:[%s267_s18 + $0x8] sm:$0xff] }
 0x131   : > { %517 = vst [vmem:[%s484_s23 + $0x10] sm:$0xff] %v516_v62 }
 0x132 PF: > { %p10_p10 = scmp.ge.s32.totalorder %s737_s16, 4   ;;  %s841_s12 = smov %s693_s13 }
 0x133   : > { %s842_s13 = smov %s748_s19  ;;  %s843_s14 = smov %s737_s16 }
 0x134   :  { %12 = sbr.rel (!%p10_p10) target bundleno = 2 (0x2), region = 143 }

// kernel: net_forward.9
= control target key start
LH: loop header
LB: loop body
LE: loop exit
PB: predicated region body
PF: predicated region fallthrough
CT: control target
= control target key end

     0   :  { %v1324_v1 = vmov 0   ;;  %vm635_vm0 = vcmask 130048   ;;  %vm1326_vm1 = vmmov 0   ;;  %vm947_vm10 = vcmask 523264   ;;  %s1654_s4 = inlined_call_operand.vmem [shape: bf16[784,128], index: 4, kind: input, shape index: {}]   ;;  %s1655_s3 = inlined_call_operand.<no memory space> [shape: f32[1,1], index: 3, kind: input, shape index: {}]   ;;  %s1656_s0 = inlined_call_operand.vmem [shape: bf16[64,784], index: 0, kind: input, shape index: {}]   ;;  %s1657_s1 = inlined_call_operand.vmem [shape: f32[64,1], index: 1, kind: input, shape index: {}]   ;;  %s1658_s2 = inlined_call_operand.vmem [shape: bf16[1,64], index: 2, kind: input, shape index: {}]   ;;  %s1659_s5 = inlined_call_operand.vmem [shape: f32[1,128], index: 5, kind: output, shape index: {}]  }
   0x1   :  { %v1235_v0 = vld [vmem:[%s1654_s4 + $0x40] sm:$0xff]   ;;  %1233 = vset.pattern.permute.xlu0 %v1324_v1  ;;  %1234 = vset.pattern.permute.xlu1 %v1324_v1  ;;  %v10_v2 = vstv %s1655_s3  ;;  %v1239_v6 = vld [vmem:[%s1654_s4 + $0x48] sm:$0xff]   ;;  %v1243_v10 = vld [vmem:[%s1654_s4 + $0x50] sm:$0xff]  }
   0x2   :  { %v1236_v3 = vld [vmem:[%s1654_s4] sm:$0xff]   ;;  %11 = vst [vmem:[#allocation2] sm:$0x1] %v10_v2  ;;  %1078 = vmatprep.subr.bf16.mxu0 %v1235_v0  ;;  %v1240_v7 = vld [vmem:[%s1654_s4 + $0x8] sm:$0xff]   ;;  %v1244_v11 = vld [vmem:[%s1654_s4 + $0x10] sm:$0xff]  }
   0x3   :  { %v1237_v4 = vld [vmem:[%s1654_s4 + $0xc0] sm:$0xff]   ;;  %1079 = vmatpush3.bf16.msra.mxu0 %v1236_v3  ;;  %v1241_v8 = vld [vmem:[%s1654_s4 + $0xc8] sm:$0xff]   ;;  %v1245_v12 = vld [vmem:[%s1654_s4 + $0xd0] sm:$0xff]  }
   0x4   :  { %v1238_v5 = vld [vmem:[%s1654_s4 + $0x80] sm:$0xff]   ;;  %1118 = vmatprep.subr.bf16.mxu1 %v1237_v4  ;;  %1080 = vmatprep.subr.bf16.mxu0 %v1239_v6  ;;  %v1242_v9 = vld [vmem:[%s1654_s4 + $0x88] sm:$0xff]   ;;  %v1246_v13 = vld [vmem:[%s1654_s4 + $0x90] sm:$0xff]  }
   0x5   :  { %1119 = vmatpush3.bf16.msra.mxu1 %v1238_v5  ;;  %v1247_v14 = vld [vmem:[%s1654_s4 + $0x58] sm:$0xff]   ;;  %v1251_v18 = vld [vmem:[%s1654_s4 + $0x60] sm:$0xff]   ;;  %v1255_v22 = vld [vmem:[%s1654_s4 + $0x68] sm:$0xff]  }
   0x6   :  { %1120 = vmatprep.subr.bf16.mxu1 %v1241_v8  ;;  %v1248_v15 = vld [vmem:[%s1654_s4 + $0x18] sm:$0xff]   ;;  %v1252_v19 = vld [vmem:[%s1654_s4 + $0x20] sm:$0xff]   ;;  %v1256_v23 = vld [vmem:[%s1654_s4 + $0x28] sm:$0xff]  }
   0x7   :  { %1081 = vmatpush3.bf16.msra.mxu0 %v1240_v7  ;;  %v1249_v16 = vld [vmem:[%s1654_s4 + $0xd8] sm:$0xff]   ;;  %v1253_v20 = vld [vmem:[%s1654_s4 + $0xe0] sm:$0xff]   ;;  %v1257_v24 = vld [vmem:[%s1654_s4 + $0xe8] sm:$0xff]  }
   0x8   :  { %1082 = vmatprep.subr.bf16.mxu0 %v1243_v10  ;;  %v1250_v17 = vld [vmem:[%s1654_s4 + $0x98] sm:$0xff]   ;;  %v1254_v21 = vld [vmem:[%s1654_s4 + $0xa0] sm:$0xff]   ;;  %v1258_v25 = vld [vmem:[%s1654_s4 + $0xa8] sm:$0xff]  }
   0x9   :  { %1121 = vmatpush3.bf16.msra.mxu1 %v1242_v9  ;;  %v1259_v26 = vld [vmem:[%s1654_s4 + $0x70] sm:$0xff]   ;;  %v1263_v30 = vld [vmem:[%s1654_s4 + $0x78] sm:$0xff]   ;;  %v1268_v34 = vld [vmem:[%s1656_s0 + $0x4] ss:$28 sps:$4 sm:$0xff]  }
   0xa   :  { %1122 = vmatprep.subr.bf16.mxu1 %v1245_v12  ;;  %v1260_v27 = vld [vmem:[%s1654_s4 + $0x30] sm:$0xff]   ;;  %v1264_v31 = vld [vmem:[%s1654_s4 + $0x38] sm:$0xff]   ;;  %680 = vmatprep.mubr.bf16.mxu0 %v1268_v34  ;;  %v1270_v36 = vld [vmem:[%s1654_s4 + $0x140] sm:$0xff]  }
   0xb   :  { %1083 = vmatpush3.bf16.msra.mxu0 %v1244_v11  ;;  %v1261_v28 = vld [vmem:[%s1654_s4 + $0xf0] sm:$0xff]   ;;  %v1265_v32 = vld [vmem:[%s1654_s4 + $0xf8] sm:$0xff]   ;;  %v1271_v37 = vld [vmem:[%s1656_s0 + $0x8] ss:$28 sps:$4 sm:$0xff]  }
   0xc   :  { %1084 = vmatprep.subr.bf16.mxu0 %v1247_v14  ;;  %v1262_v29 = vld [vmem:[%s1654_s4 + $0xb0] sm:$0xff]   ;;  %v1266_v33 = vld [vmem:[%s1656_s0] ss:$28 sps:$4 sm:$0xff]   ;;  %v1273_v38 = vld [vmem:[%s1656_s0 + $0xc] ss:$28 sps:$4 sm:$0xff]  }
   0xd   :  { %1123 = vmatpush3.bf16.msra.mxu1 %v1246_v13  ;;  %v1269_v35 = vld [vmem:[%s1654_s4 + $0xb8] sm:$0xff]   ;;  %v1274_v39 = vld [vmem:[%s1654_s4 + $0x100] sm:$0xff]   ;;  %745 = vmatprep.mubr.bf16.mxu1 %v1273_v38  ;;  %v1275_v40 = vld [vmem:[%s1654_s4 + $0x148] sm:$0xff]  }
   0xe   :  { %1124 = vmatprep.subr.bf16.mxu1 %v1249_v16  ;;  %v1276_v41 = vld [vmem:[%s1654_s4 + $0x108] sm:$0xff]   ;;  %v1277_v42 = vld [vmem:[%s1656_s0 + $0x3c] ss:$28 sps:$4 sm:$0xff]   ;;  %v1280_v44 = vld [vmem:[%s1654_s4 + $0x150] sm:$0xff]  }
   0xf   :  { %1085 = vmatpush3.bf16.msra.mxu0 %v1248_v15  ;;  %v1279_v43 = vld [vmem:[%s1656_s0 + $0x38] ss:$28 sps:$4 sm:$0xff]   ;;  %v1281_v45 = vld [vmem:[%s1656_s0 + $0x44] ss:$28 sps:$4 sm:$0xff]   ;;  %v1289_v51 = vld [vmem:[%s1656_s0 + $0x70] ss:$28 sps:$4 sm:$0xff]  }
  0x10   :  { %1086 = vmatprep.subr.bf16.mxu0 %v1251_v18  ;;  %v1283_v46 = vld [vmem:[%s1654_s4 + $0x110] sm:$0xff]   ;;  %v1284_v47 = vld [vmem:[%s1656_s0 + $0x40] ss:$28 sps:$4 sm:$0xff]   ;;  %v1296_v57 = vld [vmem:[%s1654_s4 + $0x168] sm:$0xff]  }
  0x11   :  { %1125 = vmatpush3.bf16.msra.mxu1 %v1250_v17  ;;  %v1285_v48 = vld [vmem:[%s1654_s4 + $0x158] sm:$0xff]   ;;  %v1287_v50 = vld [vmem:[%s1656_s0 + $0x74] ss:$28 sps:$4 sm:$0xff]   ;;  %v1290_v52 = vld [vmem:[%s1654_s4 + $0x160] sm:$0xff]  }
  0x12   :  { %1126 = vmatprep.subr.bf16.mxu1 %v1253_v20  ;;  %v1286_v49 = vld [vmem:[%s1654_s4 + $0x118] sm:$0xff]   ;;  %v1291_v53 = vld [vmem:[%s1654_s4 + $0x180] sm:$0xff]   ;;  %v1297_v58 = vld [vmem:[%s1654_s4 + $0x128] sm:$0xff]  }
  0x13   :  { %1087 = vmatpush3.bf16.msra.mxu0 %v1252_v19  ;;  %v1292_v54 = vld [vmem:[%s1656_s0 + $0x7c] ss:$28 sps:$4 sm:$0xff]   ;;  %v1294_v55 = vld [vmem:[%s1654_s4 + $0x120] sm:$0xff]   ;;  %v1298_v59 = vld [vmem:[%s1656_s0 + $0xac] ss:$28 sps:$4 sm:$0xff]  }
  0x14   :  { %1088 = vmatprep.subr.bf16.mxu0 %v1255_v22  ;;  %v1295_v56 = vld [vmem:[%s1656_s0 + $0x78] ss:$28 sps:$4 sm:$0xff]   ;;  %v1300_v60 = vld [vmem:[%s1656_s0 + $0xa8] ss:$28 sps:$4 sm:$0xff]   ;;  %v1305_v0 = vld [vmem:[%s1656_s0 + $0xb0] ss:$28 sps:$4 sm:$0xff]  }
  0x15   :  { %1127 = vmatpush3.bf16.msra.mxu1 %v1254_v21  ;;  %v1301_v61 = vld [vmem:[%s1654_s4 + $0x170] sm:$0xff]   ;;  %v1306_v1 = vld [vmem:[%s1654_s4 + $0x178] sm:$0xff]   ;;  %v1313_v7 = vld [vmem:[%s1656_s0 + $0x4c] ss:$28 sps:$4 sm:$0xff]  }
  0x16   :  { %1128 = vmatprep.subr.bf16.mxu1 %v1257_v24  ;;  %v1302_v62 = vld [vmem:[%s1656_s0 + $0xb4] ss:$28 sps:$4 sm:$0xff]   ;;  %v1307_v4 = vld [vmem:[%s1654_s4 + $0x138] sm:$0xff]   ;;  %v1319_v8 = vld [vmem:[%s1656_s0 + $0x88] ss:$28 sps:$4 sm:$0xff]   ;;  %v1325_v24 = vmov 0.0  }
  0x17   :  { %1089 = vmatpush3.bf16.msra.mxu0 %v1256_v23  ;;  %v1304_v63 = vld [vmem:[%s1654_s4 + $0x130] sm:$0xff]   ;;  %v153_v9 = vld [vmem:[%s1657_s1] sm:$0xff]  ;;  %v154_v11 = vld [vmem:[%s1657_s1 + $0x8] sm:$0xff] }
  0x18   :  { %1090 = vmatprep.subr.bf16.mxu0 %v1259_v26  ;;  %v1310_v2 = vld [vmem:[%s1656_s0 + $0x14] ss:$28 sps:$4 sm:$0xff]   ;;  %163 = vperm.xlu0 %1233, %v153_v9   ;;  %v1315_v12 = vld [vmem:[%s1656_s0 + $0x48] ss:$28 sps:$4 sm:$0xff]   ;;  %v156_v13 = vld [vmem:[%s1657_s1 + $0x18] sm:$0xff] }
  0x19   :  { %1129 = vmatpush3.bf16.msra.mxu1 %v1258_v25  ;;  %v1311_v3 = vld [vmem:[%s1656_s0 + $0x18] ss:$28 sps:$4 sm:$0xff]   ;;  %v1308_v5 = vld [vmem:[%s1656_s0 + $0x10] ss:$28 sps:$4 sm:$0xff]   ;;  %v1316_v14 = vld [vmem:[%s1656_s0 + $0x84] ss:$28 sps:$4 sm:$0xff]  }
  0x1a   :  { %1130 = vmatprep.subr.bf16.mxu1 %v1261_v28  ;;  %v1312_v6 = vld [vmem:[%s1656_s0 + $0x50] ss:$28 sps:$4 sm:$0xff]   ;;  %v1320_v15 = vld [vmem:[%s1656_s0 + $0xc0] ss:$28 sps:$4 sm:$0xff]   ;;  %v1323_v23 = vld [vmem:[%s1656_s0 + $0xb8] ss:$28 sps:$4 sm:$0xff]  }
  0x1b   :  { %1091 = vmatpush3.bf16.msra.mxu0 %v1260_v27  ;;  %v155_v10 = vld [vmem:[%s1657_s1 + $0x10] sm:$0xff]  ;;  %v157_v16 = vld [vmem:[%s1657_s1 + $0x20] sm:$0xff]  ;;  %v158_v17 = vld [vmem:[%s1657_s1 + $0x28] sm:$0xff] }
  0x1c   :  { %1092 = vmatprep.subr.bf16.mxu0 %v1263_v30  ;;  %173 = vperm.xlu1 %1234, %v155_v10   ;;  %v159_v18 = vld [vmem:[%s1657_s1 + $0x30] sm:$0xff]  ;;  %v1318_v19 = vld [vmem:[%s1656_s0 + $0x80] ss:$28 sps:$4 sm:$0xff]  }
  0x1d   :  { %1131 = vmatpush3.bf16.msra.mxu1 %v1262_v29  ;;  %168 = vperm.xlu0 %1233, %v154_v11   ;;  %v160_v20 = vld [vmem:[%s1657_s1 + $0x38] sm:$0xff]  ;;  %v937_v22 = vld [vmem:[#allocation2] sm:$0x1] }
  0x1e   :  { %1132 = vmatprep.subr.bf16.mxu1 %v1265_v32  ;;  %v1321_v21 = vld [vmem:[%s1656_s0 + $0xbc] ss:$28 sps:$4 sm:$0xff]  }
  0x1f   :  { %1093 = vmatpush3.bf16.msra.mxu0 %v1264_v31 }
  0x20   :  { %1158 = vmatprep.subr.bf16.mxu0 %v1270_v36  ;;  %178 = vperm.xlu1 %1234, %v156_v13  }
  0x21   :  { %1133 = vmatpush3.bf16.msra.mxu1 %v1269_v35  ;;  %183 = vperm.xlu0 %1233, %v157_v16  }
  0x22   :  { %681 = vmatmul.mubr.bf16.vlgmr.msra.gmra.mrb[0].mxu0 %v1266_v33  ;;  %1208 = vmatprep.subr.bf16.mxu1 %v1291_v53 }
  0x23   :  { %1159 = vmatpush3.bf16.msra.mxu0 %v1274_v39  ;;  %688 = vmatprep.mubr.bf16.mxu0 %v1277_v42 }
  0x24   :  { %746 = vmatmul.mubr.bf16.vlgmr.msra.gmra.mrb[0].mxu1 %v1271_v37  ;;  %1160 = vmatprep.subr.bf16.mxu0 %v1275_v40 }
  0x25   :  { %753 = vmatprep.mubr.bf16.mxu1 %v1281_v45  ;;  %1209 = vmatpush3.bf16.msra.mxu1 %v1291_v53 }
  0x26   :  { %188 = vperm.xlu1 %1234, %v158_v17   ;;  %193 = vperm.xlu0 %1233, %v159_v18  }
  0x27   :  { %1161 = vmatpush3.bf16.msra.mxu0 %v1276_v41  ;;  %1218 = vmatprep.subr.bf16.mxu1 %v1325_v24 }
  0x28   :  { %1162 = vmatprep.subr.bf16.mxu0 %v1280_v44 }
  0x2a   :  { %689 = vmatmul.mubr.bf16.gmra.mrb[4].mxu0 %v1279_v43  ;;  %198 = vperm.xlu1 %1234, %v160_v20  }
  0x2b   :  { %1163 = vmatpush3.bf16.msra.mxu0 %v1283_v46  ;;  %696 = vmatprep.mubr.bf16.mxu0 %v1287_v50 }
  0x2c   :  { %754 = vmatmul.mubr.bf16.gmra.mrb[4].mxu1 %v1284_v47  ;;  %1164 = vmatprep.subr.bf16.mxu0 %v1285_v48 }
  0x2d   :  { %761 = vmatprep.mubr.bf16.mxu1 %v1292_v54  ;;  %940 = vperm.xlu0 %1233, %v937_v22  }
  0x2f   :  { %1165 = vmatpush3.bf16.msra.mxu0 %v1286_v49 }
  0x30   :  { %1166 = vmatprep.subr.bf16.mxu0 %v1290_v52 }
  0x32   :  { %697 = vmatmul.mubr.bf16.gmra.mrb[8].mxu0 %v1289_v51 }
  0x33   :  { %1167 = vmatpush3.bf16.msra.mxu0 %v1294_v55  ;;  %704 = vmatprep.mubr.bf16.mxu0 %v1298_v59 }
  0x34   :  { %762 = vmatmul.mubr.bf16.gmra.mrb[8].mxu1 %v1295_v56  ;;  %1168 = vmatprep.subr.bf16.mxu0 %v1296_v57 }
  0x35   :  { %769 = vmatprep.mubr.bf16.mxu1 %v1302_v62 }
  0x37   :  { %1169 = vmatpush3.bf16.msra.mxu0 %v1297_v58 }
  0x38   :  { %1170 = vmatprep.subr.bf16.mxu0 %v1301_v61 }
  0x3a   :  { %705 = vmatmul.mubr.bf16.gmra.mrb[12].mxu0 %v1300_v60 }
  0x3b   :  { %1171 = vmatpush3.bf16.msra.mxu0 %v1304_v63  ;;  %810 = vmatprep.mubr.bf16.mxu0 %v1310_v2 }
  0x3c   :  { %770 = vmatmul.mubr.bf16.gmra.mrb[12].mxu1 %v1305_v0  ;;  %1172 = vmatprep.subr.bf16.mxu0 %v1306_v1 }
  0x3d   :  { %1210 = vmatprep.mubr.msk.bf16.mxu1 %vm635_vm0, %v1311_v3 }
  0x3f   :  { %1173 = vmatpush3.bf16.msra.mxu0 %v1307_v4 }
  0x42   :  { %811 = vmatmul.mubr.bf16.vlgmr.msra.gmra.mrb[16].mxu0 %v1308_v5 }
  0x43   :  { %818 = vmatprep.mubr.bf16.mxu0 %v1313_v7 }
  0x44   :  { %1211 = vmatmul.mubr.msk.bf16.vlgmr.msra.gmra.mrb[16].mxu1 %vm635_vm0, %v1312_v6 }
  0x45   :  { %1214 = vmatprep.mubr.msk.bf16.mxu1 %vm635_vm0, %v1319_v8 }
  0x4a   :  { %819 = vmatmul.mubr.bf16.gmra.mrb[20].mxu0 %v1315_v12 }
  0x4b   :  { %826 = vmatprep.mubr.bf16.mxu0 %v1316_v14 }
  0x4c   :  { %1215 = vmatmul.mubr.msk.bf16.gmra.mrb[20].mxu1 %vm635_vm0, %v1320_v15 }
  0x4d   :  { %1226 = vmatprep.mubr.msk.bf16.mxu1 %vm1326_vm1, %v1325_v24 }
  0x52   :  { %827 = vmatmul.mubr.bf16.gmra.mrb[24].mxu0 %v1318_v19 }
  0x53   :  { %834 = vmatprep.mubr.bf16.mxu0 %v1321_v21 }
  0x5a   :  { %835 = vmatmul.mubr.bf16.gmra.mrb[28].mxu0 %v1323_v23 }
  0x97   :  { %v164_v25 = vpop.permute.xlu0 %163 }
  0x9b   :  { %v174_v36 = vpop.permute.xlu1 %173 }
  0x9c   :  { %v169_v30 = vpop.permute.xlu0 %168 }
  0x9f   :  { %v179_v48 = vpop.permute.xlu1 %178 }
  0xa0   :  { %v184_v63 = vpop.permute.xlu0 %183 }
  0xa5   :  { %v189_v2 = vpop.permute.xlu1 %188  ;;  %v194_v17 = vpop.permute.xlu0 %193 }
  0xa9   :  { %v199_v20 = vpop.permute.xlu1 %198 }
  0xf5   :  { %v1094_v26 = vpop.f32.mrb[0].mxu0 }
  0xf6   :  { %v1095_v27 = vpop.f32.mrb[1].mxu0 }
  0xf7   :  { %v1096_v28 = vadd.f32 %v1095_v27, %v1094_v26  ;;  %v1097_v29 = vpop.f32.mrb[2].mxu0  ;;  %v1134_v31 = vpop.f32.mrb[0].mxu1 }
  0xf8   :  { %v1098_v32 = vpop.f32.mrb[3].mxu0  ;;  %v1135_v35 = vpop.f32.mrb[1].mxu1 }
  0xf9   :  { %v683_v33 = vadd.f32 %v1096_v28, %v164_v25  ;;  %v1099_v34 = vadd.f32 %v1098_v32, %v1097_v29  ;;  %v1136_v37 = vadd.f32 %v1135_v35, %v1134_v31  ;;  %v1137_v38 = vpop.f32.mrb[2].mxu1 }
  0xfa   :  { %v1138_v40 = vpop.f32.mrb[3].mxu1 }
  0xfb   :  { %v686_v39 = vadd.f32 %v1099_v34, %v169_v30  ;;  %v1621_v41 = vadd.f32 %v1136_v37, %v683_v33  ;;  %v1139_v42 = vadd.f32 %v1138_v40, %v1137_v38 }
  0xfd   :  { %v1100_v43 = vpop.f32.mrb[4].mxu0  ;;  %v1623_v44 = vadd.f32 %v1139_v42, %v686_v39 }
  0xfe   :  { %v1101_v45 = vpop.f32.mrb[5].mxu0 }
  0xff   :  { %v1102_v46 = vadd.f32 %v1101_v45, %v1100_v43  ;;  %v1103_v47 = vpop.f32.mrb[6].mxu0  ;;  %v1140_v49 = vpop.f32.mrb[4].mxu1 }
 0x100   :  { %v1104_v50 = vpop.f32.mrb[7].mxu0  ;;  %v1141_v53 = vpop.f32.mrb[5].mxu1 }
 0x101   :  { %v691_v51 = vadd.f32 %v1102_v46, %v174_v36  ;;  %v1105_v52 = vadd.f32 %v1104_v50, %v1103_v47  ;;  %v1142_v54 = vadd.f32 %v1141_v53, %v1140_v49  ;;  %v1143_v55 = vpop.f32.mrb[6].mxu1 }
 0x102   :  { %v1144_v57 = vpop.f32.mrb[7].mxu1 }
 0x103   :  { %v694_v56 = vadd.f32 %v1105_v52, %v179_v48  ;;  %v1625_v58 = vadd.f32 %v1142_v54, %v691_v51  ;;  %v1145_v59 = vadd.f32 %v1144_v57, %v1143_v55 }
 0x105   :  { %v1106_v60 = vpop.f32.mrb[8].mxu0  ;;  %v1627_v61 = vadd.f32 %v1145_v59, %v694_v56 }
 0x106   :  { %v1107_v62 = vpop.f32.mrb[9].mxu0 }
 0x107   :  { %v1108_v0 = vadd.f32 %v1107_v62, %v1106_v60  ;;  %v1109_v1 = vpop.f32.mrb[10].mxu0  ;;  %v1146_v3 = vpop.f32.mrb[8].mxu1 }
 0x108   :  { %v1110_v4 = vpop.f32.mrb[11].mxu0  ;;  %v1147_v7 = vpop.f32.mrb[9].mxu1 }
 0x109   :  { %v699_v5 = vadd.f32 %v1108_v0, %v184_v63  ;;  %v1111_v6 = vadd.f32 %v1110_v4, %v1109_v1  ;;  %v1148_v8 = vadd.f32 %v1147_v7, %v1146_v3  ;;  %v1149_v9 = vpop.f32.mrb[10].mxu1 }
 0x10a   :  { %v1150_v11 = vpop.f32.mrb[11].mxu1 }
 0x10b   :  { %v702_v10 = vadd.f32 %v1111_v6, %v189_v2  ;;  %v1629_v12 = vadd.f32 %v1148_v8, %v699_v5  ;;  %v1151_v13 = vadd.f32 %v1150_v11, %v1149_v9 }
 0x10d   :  { %v1112_v14 = vpop.f32.mrb[12].mxu0  ;;  %v1631_v15 = vadd.f32 %v1151_v13, %v702_v10 }
 0x10e   :  { %v1113_v16 = vpop.f32.mrb[13].mxu0 }
 0x10f   :  { %v1114_v18 = vadd.f32 %v1113_v16, %v1112_v14  ;;  %v1115_v19 = vpop.f32.mrb[14].mxu0  ;;  %v1152_v21 = vpop.f32.mrb[12].mxu1 }
 0x110   :  { %v1116_v22 = vpop.f32.mrb[15].mxu0  ;;  %v1153_v26 = vpop.f32.mrb[13].mxu1 }
 0x111   :  { %v707_v23 = vadd.f32 %v1114_v18, %v194_v17  ;;  %v1117_v25 = vadd.f32 %v1116_v22, %v1115_v19  ;;  %v1154_v27 = vadd.f32 %v1153_v26, %v1152_v21  ;;  %v1155_v28 = vpop.f32.mrb[14].mxu1 }
 0x112   :  { %v1156_v30 = vpop.f32.mrb[15].mxu1 }
 0x113   :  { %v710_v29 = vadd.f32 %v1117_v25, %v199_v20  ;;  %v1633_v31 = vadd.f32 %v1154_v27, %v707_v23  ;;  %v1157_v32 = vadd.f32 %v1156_v30, %v1155_v28 }
 0x115   :  { %v1635_v33 = vadd.f32 %v1157_v32, %v710_v29  ;;  %v1174_v34 = vpop.f32.mrb[16].mxu0 }
 0x116   :  { %v1175_v35 = vpop.f32.mrb[17].mxu0 }
 0x117   :  { %v1212_v36 = vpop.f32.mrb[16].mxu1  ;;  %v1176_v37 = vadd.f32 %v1175_v35, %v1174_v34  ;;  %v1177_v38 = vpop.f32.mrb[18].mxu0 }
 0x118   :  { %v877_v39 = vpop.f32.mrb[17].mxu1  ;;  %v1178_v40 = vpop.f32.mrb[19].mxu0 }
 0x119   :  { %v1213_v42 = vpop.f32.mrb[18].mxu1  ;;  %v1179_v43 = vadd.f32 %v1178_v40, %v1177_v38  ;;  %v813_v45 = vadd.f32 %v1176_v37, %v1621_v41 }
 0x11a   :  { %v880_v46 = vpop.f32.mrb[19].mxu1 }
 0x11b   :  { %v878_v47 = vadd.f32 %v877_v39, %v813_v45  ;;  %v816_v48 = vadd.f32 %v1179_v43, %v1623_v44  ;;  %v941_v45 = vpop.permute.xlu0 %940 }
 0x11d   :  { %v916_v49 = vmul.f32 0.01, %v878_v47  ;;  %v881_v50 = vadd.f32 %v880_v46, %v816_v48  ;;  %v1180_v51 = vpop.f32.mrb[20].mxu0  ;;  %vm908_vm2 = vcmp.ge.f32.partialorder %v878_v47, 0.0 }
 0x11e   :  { %v1181_v52 = vpop.f32.mrb[21].mxu0 }
 0x11f   :  { %v1216_v53 = vpop.f32.mrb[20].mxu1  ;;  %vm909_vm3 = vcmp.ge.f32.partialorder %v881_v50, 0.0  ;;  %v917_v54 = vmul.f32 0.01, %v881_v50  ;;  %v1182_v55 = vadd.f32 %v1181_v52, %v1180_v51  ;;  %v1183_v56 = vpop.f32.mrb[22].mxu0  ;;  %v924_v62 = vsel %vm908_vm2, %v878_v47, %v916_v49 }
 0x120   :  { %v893_v57 = vpop.f32.mrb[21].mxu1  ;;  %v1184_v59 = vpop.f32.mrb[23].mxu0 }
 0x121   :  { %v1217_v60 = vpop.f32.mrb[22].mxu1  ;;  %v925_v63 = vsel %vm909_vm3, %v881_v50, %v917_v54  ;;  %v821_v41 = vadd.f32 %v1182_v55, %v1625_v58  ;;  %v1185_v0 = vadd.f32 %v1184_v59, %v1183_v56 }
 0x122   :  { %v896_v1 = vpop.f32.mrb[23].mxu1  ;;  %v933_v44 = vpack.c.bf16 %v925_v63, %v924_v62 }
 0x123   :  { %v886_v2 = vadd.f32 %v1212_v36, %v821_v41  ;;  %v824_v3 = vadd.f32 %v1185_v0, %v1627_v61 }
 0x124   :  { %1219 = vmatpush3.bf16.msra.mxu1 %v933_v44 }
 0x125   :  { %v918_v4 = vmul.f32 0.01, %v886_v2  ;;  %v889_v5 = vadd.f32 %v1213_v42, %v824_v3  ;;  %v1186_v6 = vpop.f32.mrb[24].mxu0  ;;  %1220 = vmatprep.subr.bf16.mxu1 %v1325_v24  ;;  %vm910_vm4 = vcmp.ge.f32.partialorder %v886_v2, 0.0  ;;  %v943_v42 = vlaneseq }
 0x126   :  { %v1187_v7 = vpop.f32.mrb[25].mxu0 }
 0x127   :  { %vm911_vm5 = vcmp.ge.f32.partialorder %v889_v5, 0.0  ;;  %v919_v8 = vmul.f32 0.01, %v889_v5  ;;  %v1188_v9 = vadd.f32 %v1187_v7, %v1186_v6  ;;  %v1189_v10 = vpop.f32.mrb[26].mxu0  ;;  %v926_v14 = vsel %vm910_vm4, %v886_v2, %v918_v4 }
 0x128   :  { %v1190_v11 = vpop.f32.mrb[27].mxu0 }
 0x129   :  { %v1191_v58 = vadd.f32 %v1190_v11, %v1189_v10  ;;  %v829_v13 = vadd.f32 %v1188_v9, %v1629_v12  ;;  %v927_v16 = vsel %vm911_vm5, %v889_v5, %v919_v8 }
 0x12a   :  { %v934_v17 = vpack.c.bf16 %v927_v16, %v926_v14 }
 0x12b   :  { %v894_v61 = vadd.f32 %v893_v57, %v829_v13  ;;  %v832_v18 = vadd.f32 %v1191_v58, %v1631_v15 }
 0x12c   :  { %1221 = vmatpush3.bf16.msra.mxu1 %v934_v17 }
 0x12d   :  { %v920_v19 = vmul.f32 0.01, %v894_v61  ;;  %v897_v20 = vadd.f32 %v896_v1, %v832_v18  ;;  %v1192_v21 = vpop.f32.mrb[28].mxu0  ;;  %1222 = vmatprep.subr.bf16.mxu1 %v1325_v24  ;;  %vm912_vm6 = vcmp.ge.f32.partialorder %v894_v61, 0.0 }
 0x12e   :  { %v1193_v22 = vpop.f32.mrb[29].mxu0 }
 0x12f   :  { %vm913_vm7 = vcmp.ge.f32.partialorder %v897_v20, 0.0  ;;  %v921_v23 = vmul.f32 0.01, %v897_v20  ;;  %v1194_v25 = vadd.f32 %v1193_v22, %v1192_v21  ;;  %v1195_v26 = vpop.f32.mrb[30].mxu0  ;;  %v928_v12 = vsel %vm912_vm6, %v894_v61, %v920_v19 }
 0x130   :  { %v1196_v27 = vpop.f32.mrb[31].mxu0 }
 0x131   :  { %v929_v28 = vsel %vm913_vm7, %v897_v20, %v921_v23  ;;  %v837_v29 = vadd.f32 %v1194_v25, %v1633_v31  ;;  %v1197_v30 = vadd.f32 %v1196_v27, %v1195_v26  ;;  %v932_v31 = vld [vmem:[%s1658_s2] sm:$0x1] }
 0x132   :  { %v935_v32 = vpack.c.bf16 %v929_v28, %v928_v12 }
 0x133   :  { %v902_v15 = vadd.f32 %v1216_v53, %v837_v29  ;;  %v840_v34 = vadd.f32 %v1197_v30, %v1635_v33  ;;  %v944_v33 = vshrl.u32 %v943_v42, 7 }
 0x134   :  { %1223 = vmatpush3.bf16.msra.mxu1 %v935_v32 }
 0x135   :  { %v922_v35 = vmul.f32 0.01, %v902_v15  ;;  %v905_v36 = vadd.f32 %v1217_v60, %v840_v34  ;;  %1224 = vmatprep.subr.bf16.mxu1 %v1325_v24  ;;  %vm914_vm8 = vcmp.ge.f32.partialorder %v902_v15, 0.0  ;;  %v945_v43 = vsub.s32 0, %v944_v33 }
 0x137   :  { %vm915_vm9 = vcmp.ge.f32.partialorder %v905_v36, 0.0  ;;  %v923_v37 = vmul.f32 0.01, %v905_v36  ;;  %v930_v38 = vsel %vm914_vm8, %v902_v15, %v922_v35  ;;  %v946_v46 = vrot.slane %v941_v45, %v945_v43 }
 0x139   :  { %v931_v39 = vsel %vm915_vm9, %v905_v36, %v923_v37 }
 0x13a   :  { %v936_v40 = vpack.c.bf16 %v931_v39, %v930_v38 }
 0x13c   :  { %1225 = vmatpush3.bf16.msra.mxu1 %v936_v40 }
 0x13f   :  { %1227 = vmatmul.mubr.msk.bf16.vlgmr.msra.gmra.mrb[24].mxu1 %vm947_vm10, %v932_v31 }
 0x212   :  { %v985_v47 = vpop.f32.mrb[24].mxu1 }
 0x213   :  { %v986_v24 = vadd.f32 %v985_v47, %v946_v46  ;;  %v1228_v48 = vpop.f32.mrb[25].mxu1 }
 0x214   :  { %v988_v49 = vpop.f32.mrb[26].mxu1 }
 0x215   :  { %991 = vst [vmem:[%s1659_s5] sm:$0x1] %v986_v24  ;;  %v1229_v50 = vpop.f32.mrb[27].mxu1 }

</bundles_post_ra>
